<compile_context>
chip_gen: v6e
topology: v6e:2x2x1
jax: 0.10.0
libtpu: 0.0.40
codegen_flags: <defaults>
</compile_context>

<pallas_src>
import math
from functools import partial

import jax
import jax.numpy as jnp
from jax.experimental import pallas as pl
from jax.experimental.pallas import tpu as pltpu

# ------------------------- synthetic "AST" configuration -------------------------
B = 2                 # batch
T_FRAMES = 16         # time frames
N_MELS = 16           # mel bins
PATCH = 4             # patch size (square, stride == kernel)
HIDDEN = 32           # AST hidden size
NUM_HEADS = 4
HEAD_DIM = HIDDEN // NUM_HEADS
INTERMEDIATE = 64
NUM_LAYERS = 2
NUM_CLASSES = 4       # len(Config.CLASSES) stand-in
CLS_H1 = 512          # classifier hidden sizes (as in the PyTorch module)
CLS_H2 = 256

F_P = N_MELS // PATCH
T_P = T_FRAMES // PATCH
NUM_PATCHES = F_P * T_P
SEQ = NUM_PATCHES + 2                    # [CLS] + [DIST] + patches
SEQ_P = ((SEQ + 7) // 8) * 8             # sublane-aligned padded sequence (keys masked)
PATCH_DIM = PATCH * PATCH
LN_EPS = 1e-12
BN_EPS = 1e-5

VEC_W = 128                              # lane width of the bias/LN/base slab
ENC_W = 64                               # lane width of the encoder-weight slab
ENC_LAYER_ROWS = 5 * HIDDEN + INTERMEDIATE   # wq+wk+wv+wo (4*32) + wi (32) + wd (64) = 224
VEC_LAYER_ROWS = 10                          # ln1w,ln1b,bq,bk,bv,bo,ln2w,ln2b,bi,bd


# ------------------------------ in-kernel helpers --------------------------------
def _layer_norm(x, w, b, eps=LN_EPS):
    mu = jnp.mean(x, axis=-1, keepdims=True)
    var = jnp.mean((x - mu) ** 2, axis=-1, keepdims=True)
    return (x - mu) * jax.lax.rsqrt(var + eps) * w + b


def _gelu(x):
    # tanh-approx GELU (single EUP tanh instead of a long VALU erf polynomial).
    # TODO(synk): switch to exact-erf GELU if lax.erf gets a guaranteed Mosaic lowering.
    c = math.sqrt(2.0 / math.pi)
    return 0.5 * x * (1.0 + jnp.tanh(c * (x + 0.044715 * x * x * x)))


def _silu(x):
    # x * sigmoid(x); sigmoid written as 0.5*(1+tanh(x/2)) (exact identity, EUP op).
    return x * (0.5 * (1.0 + jnp.tanh(0.5 * x)))


# ----------------------------- single fused kernel --------------------------------
def fused_forward_kernel(x_ref, vec_ref, enc_ref, ca_ref, cb_ref,
                         feat_ref, logits_ref, s_ref, ctx_ref, *, batch):
    """x_ref:   (batch*SEQ_P, PATCH_DIM)   patch pixels; token/pad rows are zero
       vec_ref: (R, 128)                   base + key mask + all LN params / biases
       enc_ref: (R, 64)                    patch-embed + encoder matmul weights
       ca_ref:  (33, 512)                  classifier L1 (BN folded) + bias
       cb_ref:  (517, 256)                 classifier L2 (BN folded) + bias + L3^T
       s_ref:   scratch (batch*NUM_HEADS, SEQ_P, SEQ_P)   stacked attention scores
       ctx_ref: scratch (batch*SEQ_P, HIDDEN)             per-head context accumulator
    """
    f32 = jnp.float32
    nrows = batch * SEQ_P

    # ---- unpack packed parameter slabs (static slices: cheap VMEM views) ----
    pw = enc_ref[0:PATCH_DIM, 0:HIDDEN]                       # (PATCH_DIM, H)
    base = vec_ref[0:nrows, 0:HIDDEN]                         # cls/dist/pos emb + patch bias
    mask = vec_ref[nrows:nrows + 1, 0:SEQ_P]                  # (1, SEQ_P) additive key mask

    # ---- patch embedding + token/positional embedding (token/pad rows of x are 0) ----
    h = jnp.dot(x_ref[...], pw, preferred_element_type=f32) + base     # (batch*SEQ_P, H)

    bias0 = nrows + 1
    for l in range(NUM_LAYERS):
        br = bias0 + l * VEC_LAYER_ROWS
        wr = PATCH_DIM + l * ENC_LAYER_ROWS
        ln1w = vec_ref[br + 0:br + 1, 0:HIDDEN]
        ln1b = vec_ref[br + 1:br + 2, 0:HIDDEN]
        bq = vec_ref[br + 2:br + 3, 0:HIDDEN]       # 1/sqrt(head_dim) pre-folded
        bk = vec_ref[br + 3:br + 4, 0:HIDDEN]
        bv = vec_ref[br + 4:br + 5, 0:HIDDEN]
        bo = vec_ref[br + 5:br + 6, 0:HIDDEN]
        ln2w = vec_ref[br + 6:br + 7, 0:HIDDEN]
        ln2b = vec_ref[br + 7:br + 8, 0:HIDDEN]
        bi = vec_ref[br + 8:br + 9, 0:INTERMEDIATE]
        bd = vec_ref[br + 9:br + 10, 0:HIDDEN]
        wq = enc_ref[wr + 0 * HIDDEN:wr + 1 * HIDDEN, 0:HIDDEN]
        wk = enc_ref[wr + 1 * HIDDEN:wr + 2 * HIDDEN, 0:HIDDEN]
        wv = enc_ref[wr + 2 * HIDDEN:wr + 3 * HIDDEN, 0:HIDDEN]
        wo = enc_ref[wr + 3 * HIDDEN:wr + 4 * HIDDEN, 0:HIDDEN]
        wi = enc_ref[wr + 4 * HIDDEN:wr + 5 * HIDDEN, 0:INTERMEDIATE]
        wd = enc_ref[wr + 5 * HIDDEN:wr + 5 * HIDDEN + INTERMEDIATE, 0:HIDDEN]

        # ---- pre-LN self-attention (scale folded into wq/bq) ----
        hn = _layer_norm(h, ln1w, ln1b)
        q = jnp.dot(hn, wq, preferred_element_type=f32) + bq
        k = jnp.dot(hn, wk, preferred_element_type=f32) + bk
        v = jnp.dot(hn, wv, preferred_element_type=f32) + bv

        # all (batch, head) score tiles -> scratch, then ONE stacked softmax chain
        for b in range(batch):
            r0 = b * SEQ_P
            for hh in range(NUM_HEADS):
                c0 = hh * HEAD_DIM
                s_ref[b * NUM_HEADS + hh] = jax.lax.dot_general(
                    q[r0:r0 + SEQ_P, c0:c0 + HEAD_DIM],
                    k[r0:r0 + SEQ_P, c0:c0 + HEAD_DIM],
                    (((1,), (1,)), ((), ())),
                    preferred_element_type=f32,
                )
        s_all = s_ref[...] + mask                                  # mask padded key cols
        s_all = s_all - jnp.max(s_all, axis=-1, keepdims=True)
        e = jnp.exp(s_all)
        p_all = e * pl.reciprocal(jnp.sum(e, axis=-1, keepdims=True), approx=True)

        # per-head P @ V written straight into the context scratch at static offsets
        for b in range(batch):
            r0 = b * SEQ_P
            for hh in range(NUM_HEADS):
                c0 = hh * HEAD_DIM
                ctx_ref[r0:r0 + SEQ_P, c0:c0 + HEAD_DIM] = jnp.dot(
                    p_all[b * NUM_HEADS + hh],
                    v[r0:r0 + SEQ_P, c0:c0 + HEAD_DIM],
                    preferred_element_type=f32,
                )
        h = h + jnp.dot(ctx_ref[...], wo, preferred_element_type=f32) + bo

        # ---- MLP block ----
        hn2 = _layer_norm(h, ln2w, ln2b)
        inter = _gelu(jnp.dot(hn2, wi, preferred_element_type=f32) + bi)
        h = h + jnp.dot(inter, wd, preferred_element_type=f32) + bd

    # ---- [CLS] token, final LN, classifier (BN folded, dropout = identity) ----
    fr = bias0 + NUM_LAYERS * VEC_LAYER_ROWS
    flnw = vec_ref[fr + 0:fr + 1, 0:HIDDEN]
    flnb = vec_ref[fr + 1:fr + 2, 0:HIDDEN]
    b3 = vec_ref[fr + 2:fr + 3, 0:NUM_CLASSES]

    cls = jnp.concatenate([h[b * SEQ_P:b * SEQ_P + 1] for b in range(batch)], axis=0)
    feat = _layer_norm(cls, flnw, flnb)                            # (batch, H)
    feat_ref[...] = feat

    w1 = ca_ref[0:HIDDEN, :]                                       # (H, 512)
    b1 = ca_ref[HIDDEN:HIDDEN + 1, :]
    w2 = cb_ref[0:CLS_H1, :]                                       # (512, 256)
    b2 = cb_ref[CLS_H1:CLS_H1 + 1, :]
    w3t = cb_ref[CLS_H1 + 1:CLS_H1 + 1 + NUM_CLASSES, :]           # (num_classes, 256)

    c1 = _silu(jnp.dot(feat, w1, preferred_element_type=f32) + b1)
    c2 = _silu(jnp.dot(c1, w2, preferred_element_type=f32) + b2)
    logits_ref[...] = jax.lax.dot_general(
        c2, w3t, (((1,), (1,)), ((), ())), preferred_element_type=f32) + b3


# ---------------------------- parameter slab packing -------------------------------
def prepare_fused_params(p, bb):
    """Pack all parameters into 4 slabs (constant-folded under jit):
    vec (rows,128), enc (rows,64), cls_a (33,512), cls_b (517,256)."""
    scale = 1.0 / math.sqrt(HEAD_DIM)

    def row(v, width):
        v = v.reshape(1, -1)
        return jnp.pad(v, ((0, 0), (0, width - v.shape[1])))

    def blk(w):
        return jnp.pad(w, ((0, 0), (0, ENC_W - w.shape[1])))

    # per-token additive base (cls/dist tokens + positional emb + patch bias), seq-padded
    base = jnp.concatenate(
        [
            p["cls_token"][0] + p["pos_emb"][0, 0:1],
            p["dist_token"][0] + p["pos_emb"][0, 1:2],
            p["pos_emb"][0, 2:] + p["patch_b"],
            jnp.zeros((SEQ_P - SEQ, HIDDEN), jnp.float32),
        ],
        axis=0,
    )                                                    # (SEQ_P, HIDDEN)
    base_tiled = jnp.tile(base, (bb, 1))                 # (bb*SEQ_P, HIDDEN)
    mask = jnp.where(jnp.arange(SEQ_P) < SEQ, 0.0, -1e30).astype(jnp.float32)

    vec_rows = [jnp.pad(base_tiled, ((0, 0), (0, VEC_W - HIDDEN))), row(mask, VEC_W)]
    enc_parts = [blk(p["patch_w"])]
    for (ln1w, ln1b, qw, qb, kw, kb, vw, vb, ow, ob,
         ln2w, ln2b, iw, ib, dw, db) in p["layers"]:
        for v in (ln1w, ln1b, qb * scale, kb, vb, ob, ln2w, ln2b, ib, db):
            vec_rows.append(row(v, VEC_W))
        enc_parts += [blk(qw * scale), blk(kw), blk(vw), blk(ow), blk(iw), blk(dw)]
    for v in (p["final_ln_w"], p["final_ln_b"], p["cb3"]):
        vec_rows.append(row(v, VEC_W))

    vec_slab = jnp.concatenate(vec_rows, axis=0)
    enc_slab = jnp.concatenate(enc_parts, axis=0)

    # classifier: fold eval-mode BatchNorm1d into the adjacent Linears (exact)
    s1 = p["bn1_g"] * jax.lax.rsqrt(p["bn1_v"] + BN_EPS)
    w1 = p["cw1"] * s1
    b1 = (p["cb1"] - p["bn1_m"]) * s1 + p["bn1_b"]
    s2 = p["bn2_g"] * jax.lax.rsqrt(p["bn2_v"] + BN_EPS)
    w2 = p["cw2"] * s2
    b2 = (p["cb2"] - p["bn2_m"]) * s2 + p["bn2_b"]

    cls_a = jnp.concatenate([w1, b1], axis=0)                      # (33, 512)
    cls_b = jnp.concatenate([w2, b2, p["cw3"].T], axis=0)          # (517, 256)
    return vec_slab, enc_slab, cls_a, cls_b


# ---------------------------------- wrapper ----------------------------------------
def ast_respiratory_forward(params, input_values):
    """Equivalent of ASTRespiratoryModel.forward(input_values) in eval mode."""
    bb = input_values.shape[0]
    vec_slab, enc_slab, cls_a, cls_b = prepare_fused_params(params, bb)

    # im2col for the non-overlapping patch conv: (B, time, mel) -> (B, NP, PATCH_DIM),
    # then pad to the token/sequence-padded layout (rows 0,1 and SEQ..SEQ_P-1 are zero).
    x = jnp.transpose(input_values, (0, 2, 1))                     # (B, mel, time)
    x = x.reshape(bb, F_P, PATCH, T_P, PATCH)
    x = jnp.transpose(x, (0, 1, 3, 2, 4)).reshape(bb, NUM_PATCHES, PATCH_DIM)
    x = jnp.pad(x, ((0, 0), (SEQ - NUM_PATCHES, SEQ_P - SEQ), (0, 0)))
    x_full = x.reshape(bb * SEQ_P, PATCH_DIM)

    ins = [x_full, vec_slab, enc_slab, cls_a, cls_b]
    vmem = lambda: pl.BlockSpec(memory_space=pltpu.MemorySpace.VMEM)

    feats, logits = pl.pallas_call(
        partial(fused_forward_kernel, batch=bb),
        in_specs=[vmem() for _ in ins],
        out_specs=(vmem(), vmem()),
        out_shape=(
            jax.ShapeDtypeStruct((bb, HIDDEN), jnp.float32),
            jax.ShapeDtypeStruct((bb, NUM_CLASSES), jnp.float32),
        ),
        scratch_shapes=[
            pltpu.VMEM((bb * NUM_HEADS, SEQ_P, SEQ_P), jnp.float32),   # stacked scores
            pltpu.VMEM((bb * SEQ_P, HIDDEN), jnp.float32),             # head contexts
        ],
    )(*ins)
    return {"logits": logits, "features": feats}


# ---------------------------- deterministic parameters -----------------------------
def init_params(key):
    keys = iter(jax.random.split(key, 64))

    def nrm(shape, scale=0.02):
        return scale * jax.random.normal(next(keys), shape, jnp.float32)

    p = {}
    p["patch_w"] = nrm((PATCH_DIM, HIDDEN))        # conv weight reshaped to (patch_dim, H)
    p["patch_b"] = nrm((1, HIDDEN))
    p["cls_token"] = nrm((1, 1, HIDDEN))
    p["dist_token"] = nrm((1, 1, HIDDEN))
    p["pos_emb"] = nrm((1, SEQ, HIDDEN))

    layers = []
    for _ in range(NUM_LAYERS):
        layers.append((
            jnp.ones((1, HIDDEN), jnp.float32), jnp.zeros((1, HIDDEN), jnp.float32),  # ln_before
            nrm((HIDDEN, HIDDEN)), nrm((1, HIDDEN)),                                  # q
            nrm((HIDDEN, HIDDEN)), nrm((1, HIDDEN)),                                  # k
            nrm((HIDDEN, HIDDEN)), nrm((1, HIDDEN)),                                  # v
            nrm((HIDDEN, HIDDEN)), nrm((1, HIDDEN)),                                  # attn out proj
            jnp.ones((1, HIDDEN), jnp.float32), jnp.zeros((1, HIDDEN), jnp.float32),  # ln_after
            nrm((HIDDEN, INTERMEDIATE)), nrm((1, INTERMEDIATE)),                      # intermediate
            nrm((INTERMEDIATE, HIDDEN)), nrm((1, HIDDEN)),                            # output
        ))
    p["layers"] = layers

    p["final_ln_w"] = jnp.ones((1, HIDDEN), jnp.float32)
    p["final_ln_b"] = jnp.zeros((1, HIDDEN), jnp.float32)

    # classifier (weights stored as (in, out); PyTorch Linear uses (out, in) + transpose)
    p["cw1"] = nrm((HIDDEN, CLS_H1)); p["cb1"] = nrm((1, CLS_H1))
    p["bn1_g"] = jnp.ones((1, CLS_H1), jnp.float32); p["bn1_b"] = jnp.zeros((1, CLS_H1), jnp.float32)
    p["bn1_m"] = nrm((1, CLS_H1))
    p["bn1_v"] = 0.5 + jax.random.uniform(next(keys), (1, CLS_H1), jnp.float32)
    p["cw2"] = nrm((CLS_H1, CLS_H2)); p["cb2"] = nrm((1, CLS_H2))
    p["bn2_g"] = jnp.ones((1, CLS_H2), jnp.float32); p["bn2_b"] = jnp.zeros((1, CLS_H2), jnp.float32)
    p["bn2_m"] = nrm((1, CLS_H2))
    p["bn2_v"] = 0.5 + jax.random.uniform(next(keys), (1, CLS_H2), jnp.float32)
    p["cw3"] = nrm((CLS_H2, NUM_CLASSES)); p["cb3"] = nrm((1, NUM_CLASSES))
    return p


# -------------------------------------- main ---------------------------------------
if __name__ == "__main__":
    key = jax.random.PRNGKey(0)
    pkey, xkey = jax.random.split(key)
    params = init_params(pkey)

    input_values = jax.random.normal(xkey, (B, T_FRAMES, N_MELS), jnp.float32)

    fwd = jax.jit(lambda x: ast_respiratory_forward(params, x))
    out = fwd(input_values)
    jax.block_until_ready(out)

    assert out["logits"].shape == (B, NUM_CLASSES)
    assert out["features"].shape == (B, HIDDEN)
    assert out["logits"].dtype == jnp.float32
    assert bool(jnp.all(jnp.isfinite(out["logits"])))
    assert bool(jnp.all(jnp.isfinite(out["features"])))
    print("KERNEL_OK")
</pallas_src>

<mosaic_0001>
module attributes {stable_mosaic.version = 11 : i64} {
  func.func @fused_forward_kernel(%arg0: memref<48x16xf32, #tpu.memory_space<vmem>>, %arg1: memref<72x128xf32, #tpu.memory_space<vmem>>, %arg2: memref<464x64xf32, #tpu.memory_space<vmem>>, %arg3: memref<33x512xf32, #tpu.memory_space<vmem>>, %arg4: memref<517x256xf32, #tpu.memory_space<vmem>>, %arg5: memref<2x32xf32, #tpu.memory_space<vmem>>, %arg6: memref<2x4xf32, #tpu.memory_space<vmem>>, %arg7: memref<8x24x24xf32, #tpu.memory_space<vmem>>, %arg8: memref<48x32xf32, #tpu.memory_space<vmem>>) attributes {dimension_semantics = [], scalar_prefetch = 0 : i64, scratch_operands = 2 : i64, tpu.core_type = #tpu.core_type<tc>} {
    %c0 = arith.constant 0 : index
    %c0_0 = arith.constant 0 : index
    %0 = vector.load %arg2[%c0, %c0_0] : memref<464x64xf32, #tpu.memory_space<vmem>>, vector<16x32xf32>
    %c0_1 = arith.constant 0 : index
    %c0_2 = arith.constant 0 : index
    %1 = vector.load %arg1[%c0_1, %c0_2] : memref<72x128xf32, #tpu.memory_space<vmem>>, vector<48x32xf32>
    %c48 = arith.constant 48 : index
    %c0_3 = arith.constant 0 : index
    %2 = vector.load %arg1[%c48, %c0_3] : memref<72x128xf32, #tpu.memory_space<vmem>>, vector<1x24xf32>
    %c0_4 = arith.constant 0 : index
    %c0_5 = arith.constant 0 : index
    %3 = vector.load %arg0[%c0_4, %c0_5] : memref<48x16xf32, #tpu.memory_space<vmem>>, vector<48x16xf32>
    %cst = arith.constant dense<0.000000e+00> : vector<48x32xf32>
    %4 = tpu.matmul %3, %0, %cst {dimension_numbers = #tpu.dot_dimension_numbers<[1], [0], [0], [1], [0, 0, 1, 1], [], []>} : vector<48x16xf32>, vector<16x32xf32>, vector<48x32xf32> -> vector<48x32xf32>
    %5 = arith.addf %4, %1 : vector<48x32xf32>
    %c49 = arith.constant 49 : index
    %c0_6 = arith.constant 0 : index
    %6 = vector.load %arg1[%c49, %c0_6] : memref<72x128xf32, #tpu.memory_space<vmem>>, vector<1x32xf32>
    %c50 = arith.constant 50 : index
    %c0_7 = arith.constant 0 : index
    %7 = vector.load %arg1[%c50, %c0_7] : memref<72x128xf32, #tpu.memory_space<vmem>>, vector<1x32xf32>
    %c51 = arith.constant 51 : index
    %c0_8 = arith.constant 0 : index
    %8 = vector.load %arg1[%c51, %c0_8] : memref<72x128xf32, #tpu.memory_space<vmem>>, vector<1x32xf32>
    %c52 = arith.constant 52 : index
    %c0_9 = arith.constant 0 : index
    %9 = vector.load %arg1[%c52, %c0_9] : memref<72x128xf32, #tpu.memory_space<vmem>>, vector<1x32xf32>
    %c53 = arith.constant 53 : index
    %c0_10 = arith.constant 0 : index
    %10 = vector.load %arg1[%c53, %c0_10] : memref<72x128xf32, #tpu.memory_space<vmem>>, vector<1x32xf32>
    %c54 = arith.constant 54 : index
    %c0_11 = arith.constant 0 : index
    %11 = vector.load %arg1[%c54, %c0_11] : memref<72x128xf32, #tpu.memory_space<vmem>>, vector<1x32xf32>
    %c55 = arith.constant 55 : index
    %c0_12 = arith.constant 0 : index
    %12 = vector.load %arg1[%c55, %c0_12] : memref<72x128xf32, #tpu.memory_space<vmem>>, vector<1x32xf32>
    %c56 = arith.constant 56 : index
    %c0_13 = arith.constant 0 : index
    %13 = vector.load %arg1[%c56, %c0_13] : memref<72x128xf32, #tpu.memory_space<vmem>>, vector<1x32xf32>
    %c57 = arith.constant 57 : index
    %c0_14 = arith.constant 0 : index
    %14 = vector.load %arg1[%c57, %c0_14] : memref<72x128xf32, #tpu.memory_space<vmem>>, vector<1x64xf32>
    %c58 = arith.constant 58 : index
    %c0_15 = arith.constant 0 : index
    %15 = vector.load %arg1[%c58, %c0_15] : memref<72x128xf32, #tpu.memory_space<vmem>>, vector<1x32xf32>
    %c16 = arith.constant 16 : index
    %c0_16 = arith.constant 0 : index
    %16 = vector.load %arg2[%c16, %c0_16] : memref<464x64xf32, #tpu.memory_space<vmem>>, vector<32x32xf32>
    %c48_17 = arith.constant 48 : index
    %c0_18 = arith.constant 0 : index
    %17 = vector.load %arg2[%c48_17, %c0_18] : memref<464x64xf32, #tpu.memory_space<vmem>>, vector<32x32xf32>
    %c80 = arith.constant 80 : index
    %c0_19 = arith.constant 0 : index
    %18 = vector.load %arg2[%c80, %c0_19] : memref<464x64xf32, #tpu.memory_space<vmem>>, vector<32x32xf32>
    %c112 = arith.constant 112 : index
    %c0_20 = arith.constant 0 : index
    %19 = vector.load %arg2[%c112, %c0_20] : memref<464x64xf32, #tpu.memory_space<vmem>>, vector<32x32xf32>
    %c144 = arith.constant 144 : index
    %c0_21 = arith.constant 0 : index
    %20 = vector.load %arg2[%c144, %c0_21] : memref<464x64xf32, #tpu.memory_space<vmem>>, vector<32x64xf32>
    %c176 = arith.constant 176 : index
    %c0_22 = arith.constant 0 : index
    %21 = vector.load %arg2[%c176, %c0_22] : memref<464x64xf32, #tpu.memory_space<vmem>>, vector<64x32xf32>
    %cst_23 = arith.constant dense<0.000000e+00> : vector<48xf32>
    %22 = vector.multi_reduction <add>, %5, %cst_23 [1] : vector<48x32xf32> to vector<48xf32>
    %23 = vector.shape_cast %22 : vector<48xf32> to vector<48x1xf32>
    %cst_24 = arith.constant 3.200000e+01 : f32
    %24 = vector.broadcast %cst_24 : f32 to vector<48x1xf32>
    %25 = arith.divf %23, %24 : vector<48x1xf32>
    %26 = vector.broadcast %25 : vector<48x1xf32> to vector<48x32xf32>
    %27 = arith.subf %5, %26 : vector<48x32xf32>
    %28 = arith.mulf %27, %27 : vector<48x32xf32>
    %cst_25 = arith.constant dense<0.000000e+00> : vector<48xf32>
    %29 = vector.multi_reduction <add>, %28, %cst_25 [1] : vector<48x32xf32> to vector<48xf32>
    %30 = vector.shape_cast %29 : vector<48xf32> to vector<48x1xf32>
    %cst_26 = arith.constant 3.200000e+01 : f32
    %31 = vector.broadcast %cst_26 : f32 to vector<48x1xf32>
    %32 = arith.divf %30, %31 : vector<48x1xf32>
    %33 = vector.broadcast %25 : vector<48x1xf32> to vector<48x32xf32>
    %34 = arith.subf %5, %33 : vector<48x32xf32>
    %cst_27 = arith.constant 9.99999996E-13 : f32
    %35 = vector.broadcast %cst_27 : f32 to vector<48x1xf32>
    %36 = arith.addf %32, %35 : vector<48x1xf32>
    %37 = math.rsqrt %36 : vector<48x1xf32>
    %38 = vector.broadcast %37 : vector<48x1xf32> to vector<48x32xf32>
    %39 = arith.mulf %34, %38 : vector<48x32xf32>
    %40 = vector.broadcast %6 : vector<1x32xf32> to vector<48x32xf32>
    %41 = arith.mulf %39, %40 : vector<48x32xf32>
    %42 = vector.broadcast %7 : vector<1x32xf32> to vector<48x32xf32>
    %43 = arith.addf %41, %42 : vector<48x32xf32>
    %cst_28 = arith.constant dense<0.000000e+00> : vector<48x32xf32>
    %44 = tpu.matmul %43, %16, %cst_28 {dimension_numbers = #tpu.dot_dimension_numbers<[1], [0], [0], [1], [0, 0, 1, 1], [], []>} : vector<48x32xf32>, vector<32x32xf32>, vector<48x32xf32> -> vector<48x32xf32>
    %45 = vector.broadcast %8 : vector<1x32xf32> to vector<48x32xf32>
    %46 = arith.addf %44, %45 : vector<48x32xf32>
    %cst_29 = arith.constant dense<0.000000e+00> : vector<48x32xf32>
    %47 = tpu.matmul %43, %17, %cst_29 {dimension_numbers = #tpu.dot_dimension_numbers<[1], [0], [0], [1], [0, 0, 1, 1], [], []>} : vector<48x32xf32>, vector<32x32xf32>, vector<48x32xf32> -> vector<48x32xf32>
    %48 = vector.broadcast %9 : vector<1x32xf32> to vector<48x32xf32>
    %49 = arith.addf %47, %48 : vector<48x32xf32>
    %cst_30 = arith.constant dense<0.000000e+00> : vector<48x32xf32>
    %50 = tpu.matmul %43, %18, %cst_30 {dimension_numbers = #tpu.dot_dimension_numbers<[1], [0], [0], [1], [0, 0, 1, 1], [], []>} : vector<48x32xf32>, vector<32x32xf32>, vector<48x32xf32> -> vector<48x32xf32>
    %51 = vector.broadcast %10 : vector<1x32xf32> to vector<48x32xf32>
    %52 = arith.addf %50, %51 : vector<48x32xf32>
    %53 = vector.extract_strided_slice %46 {offsets = [0, 0], sizes = [24, 8], strides = [1, 1]} : vector<48x32xf32> to vector<24x8xf32>
    %54 = vector.extract_strided_slice %49 {offsets = [0, 0], sizes = [24, 8], strides = [1, 1]} : vector<48x32xf32> to vector<24x8xf32>
    %cst_31 = arith.constant dense<0.000000e+00> : vector<24x24xf32>
    %55 = tpu.matmul %53, %54, %cst_31 {dimension_numbers = #tpu.dot_dimension_numbers<[1], [1], [0], [0], [0, 0, 1, 0], [], []>} : vector<24x8xf32>, vector<24x8xf32>, vector<24x24xf32> -> vector<24x24xf32>
    %c0_32 = arith.constant 0 : index
    %c0_33 = arith.constant 0 : index
    %c0_34 = arith.constant 0 : index
    %56 = vector.load %arg7[%c0_32, %c0_33, %c0_34] : memref<8x24x24xf32, #tpu.memory_space<vmem>>, vector<1x24x24xf32>
    %57 = vector.shape_cast %56 : vector<1x24x24xf32> to vector<24x24xf32>
    %58 = vector.shape_cast %55 : vector<24x24xf32> to vector<1x24x24xf32>
    tpu.vector_store %arg7[%c0_32, %c0_33, %c0_34], %58 {strides = array<i32>} : memref<8x24x24xf32, #tpu.memory_space<vmem>>, vector<1x24x24xf32>,
    %59 = vector.extract_strided_slice %46 {offsets = [0, 8], sizes = [24, 8], strides = [1, 1]} : vector<48x32xf32> to vector<24x8xf32>
    %60 = vector.extract_strided_slice %49 {offsets = [0, 8], sizes = [24, 8], strides = [1, 1]} : vector<48x32xf32> to vector<24x8xf32>
    %cst_35 = arith.constant dense<0.000000e+00> : vector<24x24xf32>
    %61 = tpu.matmul %59, %60, %cst_35 {dimension_numbers = #tpu.dot_dimension_numbers<[1], [1], [0], [0], [0, 0, 1, 0], [], []>} : vector<24x8xf32>, vector<24x8xf32>, vector<24x24xf32> -> vector<24x24xf32>
    %c1 = arith.constant 1 : index
    %c0_36 = arith.constant 0 : index
    %c0_37 = arith.constant 0 : index
    %62 = vector.load %arg7[%c1, %c0_36, %c0_37] : memref<8x24x24xf32, #tpu.memory_space<vmem>>, vector<1x24x24xf32>
    %63 = vector.shape_cast %62 : vector<1x24x24xf32> to vector<24x24xf32>
    %64 = vector.shape_cast %61 : vector<24x24xf32> to vector<1x24x24xf32>
    tpu.vector_store %arg7[%c1, %c0_36, %c0_37], %64 {strides = array<i32>} : memref<8x24x24xf32, #tpu.memory_space<vmem>>, vector<1x24x24xf32>,
    %65 = vector.extract_strided_slice %46 {offsets = [0, 16], sizes = [24, 8], strides = [1, 1]} : vector<48x32xf32> to vector<24x8xf32>
    %66 = vector.extract_strided_slice %49 {offsets = [0, 16], sizes = [24, 8], strides = [1, 1]} : vector<48x32xf32> to vector<24x8xf32>
    %cst_38 = arith.constant dense<0.000000e+00> : vector<24x24xf32>
    %67 = tpu.matmul %65, %66, %cst_38 {dimension_numbers = #tpu.dot_dimension_numbers<[1], [1], [0], [0], [0, 0, 1, 0], [], []>} : vector<24x8xf32>, vector<24x8xf32>, vector<24x24xf32> -> vector<24x24xf32>
    %c2 = arith.constant 2 : index
    %c0_39 = arith.constant 0 : index
    %c0_40 = arith.constant 0 : index
    %68 = vector.load %arg7[%c2, %c0_39, %c0_40] : memref<8x24x24xf32, #tpu.memory_space<vmem>>, vector<1x24x24xf32>
    %69 = vector.shape_cast %68 : vector<1x24x24xf32> to vector<24x24xf32>
    %70 = vector.shape_cast %67 : vector<24x24xf32> to vector<1x24x24xf32>
    tpu.vector_store %arg7[%c2, %c0_39, %c0_40], %70 {strides = array<i32>} : memref<8x24x24xf32, #tpu.memory_space<vmem>>, vector<1x24x24xf32>,
    %71 = vector.extract_strided_slice %46 {offsets = [0, 24], sizes = [24, 8], strides = [1, 1]} : vector<48x32xf32> to vector<24x8xf32>
    %72 = vector.extract_strided_slice %49 {offsets = [0, 24], sizes = [24, 8], strides = [1, 1]} : vector<48x32xf32> to vector<24x8xf32>
    %cst_41 = arith.constant dense<0.000000e+00> : vector<24x24xf32>
    %73 = tpu.matmul %71, %72, %cst_41 {dimension_numbers = #tpu.dot_dimension_numbers<[1], [1], [0], [0], [0, 0, 1, 0], [], []>} : vector<24x8xf32>, vector<24x8xf32>, vector<24x24xf32> -> vector<24x24xf32>
    %c3 = arith.constant 3 : index
    %c0_42 = arith.constant 0 : index
    %c0_43 = arith.constant 0 : index
    %74 = vector.load %arg7[%c3, %c0_42, %c0_43] : memref<8x24x24xf32, #tpu.memory_space<vmem>>, vector<1x24x24xf32>
    %75 = vector.shape_cast %74 : vector<1x24x24xf32> to vector<24x24xf32>
    %76 = vector.shape_cast %73 : vector<24x24xf32> to vector<1x24x24xf32>
    tpu.vector_store %arg7[%c3, %c0_42, %c0_43], %76 {strides = array<i32>} : memref<8x24x24xf32, #tpu.memory_space<vmem>>, vector<1x24x24xf32>,
    %77 = vector.extract_strided_slice %46 {offsets = [24, 0], sizes = [24, 8], strides = [1, 1]} : vector<48x32xf32> to vector<24x8xf32>
    %78 = vector.extract_strided_slice %49 {offsets = [24, 0], sizes = [24, 8], strides = [1, 1]} : vector<48x32xf32> to vector<24x8xf32>
    %cst_44 = arith.constant dense<0.000000e+00> : vector<24x24xf32>
    %79 = tpu.matmul %77, %78, %cst_44 {dimension_numbers = #tpu.dot_dimension_numbers<[1], [1], [0], [0], [0, 0, 1, 0], [], []>} : vector<24x8xf32>, vector<24x8xf32>, vector<24x24xf32> -> vector<24x24xf32>
    %c4 = arith.constant 4 : index
    %c0_45 = arith.constant 0 : index
    %c0_46 = arith.constant 0 : index
    %80 = vector.load %arg7[%c4, %c0_45, %c0_46] : memref<8x24x24xf32, #tpu.memory_space<vmem>>, vector<1x24x24xf32>
    %81 = vector.shape_cast %80 : vector<1x24x24xf32> to vector<24x24xf32>
    %82 = vector.shape_cast %79 : vector<24x24xf32> to vector<1x24x24xf32>
    tpu.vector_store %arg7[%c4, %c0_45, %c0_46], %82 {strides = array<i32>} : memref<8x24x24xf32, #tpu.memory_space<vmem>>, vector<1x24x24xf32>,
    %83 = vector.extract_strided_slice %46 {offsets = [24, 8], sizes = [24, 8], strides = [1, 1]} : vector<48x32xf32> to vector<24x8xf32>
    %84 = vector.extract_strided_slice %49 {offsets = [24, 8], sizes = [24, 8], strides = [1, 1]} : vector<48x32xf32> to vector<24x8xf32>
    %cst_47 = arith.constant dense<0.000000e+00> : vector<24x24xf32>
    %85 = tpu.matmul %83, %84, %cst_47 {dimension_numbers = #tpu.dot_dimension_numbers<[1], [1], [0], [0], [0, 0, 1, 0], [], []>} : vector<24x8xf32>, vector<24x8xf32>, vector<24x24xf32> -> vector<24x24xf32>
    %c5 = arith.constant 5 : index
    %c0_48 = arith.constant 0 : index
    %c0_49 = arith.constant 0 : index
    %86 = vector.load %arg7[%c5, %c0_48, %c0_49] : memref<8x24x24xf32, #tpu.memory_space<vmem>>, vector<1x24x24xf32>
    %87 = vector.shape_cast %86 : vector<1x24x24xf32> to vector<24x24xf32>
    %88 = vector.shape_cast %85 : vector<24x24xf32> to vector<1x24x24xf32>
    tpu.vector_store %arg7[%c5, %c0_48, %c0_49], %88 {strides = array<i32>} : memref<8x24x24xf32, #tpu.memory_space<vmem>>, vector<1x24x24xf32>,
    %89 = vector.extract_strided_slice %46 {offsets = [24, 16], sizes = [24, 8], strides = [1, 1]} : vector<48x32xf32> to vector<24x8xf32>
    %90 = vector.extract_strided_slice %49 {offsets = [24, 16], sizes = [24, 8], strides = [1, 1]} : vector<48x32xf32> to vector<24x8xf32>
    %cst_50 = arith.constant dense<0.000000e+00> : vector<24x24xf32>
    %91 = tpu.matmul %89, %90, %cst_50 {dimension_numbers = #tpu.dot_dimension_numbers<[1], [1], [0], [0], [0, 0, 1, 0], [], []>} : vector<24x8xf32>, vector<24x8xf32>, vector<24x24xf32> -> vector<24x24xf32>
    %c6 = arith.constant 6 : index
    %c0_51 = arith.constant 0 : index
    %c0_52 = arith.constant 0 : index
    %92 = vector.load %arg7[%c6, %c0_51, %c0_52] : memref<8x24x24xf32, #tpu.memory_space<vmem>>, vector<1x24x24xf32>
    %93 = vector.shape_cast %92 : vector<1x24x24xf32> to vector<24x24xf32>
    %94 = vector.shape_cast %91 : vector<24x24xf32> to vector<1x24x24xf32>
    tpu.vector_store %arg7[%c6, %c0_51, %c0_52], %94 {strides = array<i32>} : memref<8x24x24xf32, #tpu.memory_space<vmem>>, vector<1x24x24xf32>,
    %95 = vector.extract_strided_slice %46 {offsets = [24, 24], sizes = [24, 8], strides = [1, 1]} : vector<48x32xf32> to vector<24x8xf32>
    %96 = vector.extract_strided_slice %49 {offsets = [24, 24], sizes = [24, 8], strides = [1, 1]} : vector<48x32xf32> to vector<24x8xf32>
    %cst_53 = arith.constant dense<0.000000e+00> : vector<24x24xf32>
    %97 = tpu.matmul %95, %96, %cst_53 {dimension_numbers = #tpu.dot_dimension_numbers<[1], [1], [0], [0], [0, 0, 1, 0], [], []>} : vector<24x8xf32>, vector<24x8xf32>, vector<24x24xf32> -> vector<24x24xf32>
    %c7 = arith.constant 7 : index
    %c0_54 = arith.constant 0 : index
    %c0_55 = arith.constant 0 : index
    %98 = vector.load %arg7[%c7, %c0_54, %c0_55] : memref<8x24x24xf32, #tpu.memory_space<vmem>>, vector<1x24x24xf32>
    %99 = vector.shape_cast %98 : vector<1x24x24xf32> to vector<24x24xf32>
    %100 = vector.shape_cast %97 : vector<24x24xf32> to vector<1x24x24xf32>
    tpu.vector_store %arg7[%c7, %c0_54, %c0_55], %100 {strides = array<i32>} : memref<8x24x24xf32, #tpu.memory_space<vmem>>, vector<1x24x24xf32>,
    %c0_56 = arith.constant 0 : index
    %c0_57 = arith.constant 0 : index
    %c0_58 = arith.constant 0 : index
    %101 = vector.load %arg7[%c0_56, %c0_57, %c0_58] : memref<8x24x24xf32, #tpu.memory_space<vmem>>, vector<8x24x24xf32>
    %102 = vector.shape_cast %2 : vector<1x24xf32> to vector<1x1x24xf32>
    %103 = vector.broadcast %102 : vector<1x1x24xf32> to vector<8x24x24xf32>
    %104 = arith.addf %101, %103 : vector<8x24x24xf32>
    %cst_59 = arith.constant dense<0xFF800000> : vector<8x24xf32>
    %105 = vector.multi_reduction <maximumf>, %104, %cst_59 [2] : vector<8x24x24xf32> to vector<8x24xf32>
    %106 = vector.shape_cast %105 : vector<8x24xf32> to vector<8x24x1xf32>
    %107 = vector.broadcast %106 : vector<8x24x1xf32> to vector<8x24x24xf32>
    %108 = arith.subf %104, %107 : vector<8x24x24xf32>
    %109 = math.exp %108 : vector<8x24x24xf32>
    %cst_60 = arith.constant dense<0.000000e+00> : vector<8x24xf32>
    %110 = vector.multi_reduction <add>, %109, %cst_60 [2] : vector<8x24x24xf32> to vector<8x24xf32>
    %111 = vector.shape_cast %110 : vector<8x24xf32> to vector<8x24x1xf32>
    %112 = tpu.reciprocal %111 {approx = true} : vector<8x24x1xf32> -> vector<8x24x1xf32>
    %113 = vector.broadcast %112 : vector<8x24x1xf32> to vector<8x24x24xf32>
    %114 = arith.mulf %109, %113 : vector<8x24x24xf32>
    %115 = vector.extract_strided_slice %114 {offsets = [0, 0, 0], sizes = [1, 24, 24], strides = [1, 1, 1]} : vector<8x24x24xf32> to vector<1x24x24xf32>
    %116 = vector.shape_cast %115 : vector<1x24x24xf32> to vector<24x24xf32>
    %117 = vector.extract_strided_slice %52 {offsets = [0, 0], sizes = [24, 8], strides = [1, 1]} : vector<48x32xf32> to vector<24x8xf32>
    %cst_61 = arith.constant dense<0.000000e+00> : vector<24x8xf32>
    %118 = tpu.matmul %116, %117, %cst_61 {dimension_numbers = #tpu.dot_dimension_numbers<[1], [0], [0], [1], [0, 0, 1, 1], [], []>} : vector<24x24xf32>, vector<24x8xf32>, vector<24x8xf32> -> vector<24x8xf32>
    %c0_62 = arith.constant 0 : index
    %c0_63 = arith.constant 0 : index
    %119 = vector.load %arg8[%c0_62, %c0_63] : memref<48x32xf32, #tpu.memory_space<vmem>>, vector<24x8xf32>
    tpu.vector_store %arg8[%c0_62, %c0_63], %118 {strides = array<i32>} : memref<48x32xf32, #tpu.memory_space<vmem>>, vector<24x8xf32>,
    %120 = vector.extract_strided_slice %114 {offsets = [1, 0, 0], sizes = [1, 24, 24], strides = [1, 1, 1]} : vector<8x24x24xf32> to vector<1x24x24xf32>
    %121 = vector.shape_cast %120 : vector<1x24x24xf32> to vector<24x24xf32>
    %122 = vector.extract_strided_slice %52 {offsets = [0, 8], sizes = [24, 8], strides = [1, 1]} : vector<48x32xf32> to vector<24x8xf32>
    %cst_64 = arith.constant dense<0.000000e+00> : vector<24x8xf32>
    %123 = tpu.matmul %121, %122, %cst_64 {dimension_numbers = #tpu.dot_dimension_numbers<[1], [0], [0], [1], [0, 0, 1, 1], [], []>} : vector<24x24xf32>, vector<24x8xf32>, vector<24x8xf32> -> vector<24x8xf32>
    %c0_65 = arith.constant 0 : index
    %c8 = arith.constant 8 : index
    %124 = vector.load %arg8[%c0_65, %c8] : memref<48x32xf32, #tpu.memory_space<vmem>>, vector<24x8xf32>
    tpu.vector_store %arg8[%c0_65, %c8], %123 {strides = array<i32>} : memref<48x32xf32, #tpu.memory_space<vmem>>, vector<24x8xf32>,
    %125 = vector.extract_strided_slice %114 {offsets = [2, 0, 0], sizes = [1, 24, 24], strides = [1, 1, 1]} : vector<8x24x24xf32> to vector<1x24x24xf32>
    %126 = vector.shape_cast %125 : vector<1x24x24xf32> to vector<24x24xf32>
    %127 = vector.extract_strided_slice %52 {offsets = [0, 16], sizes = [24, 8], strides = [1, 1]} : vector<48x32xf32> to vector<24x8xf32>
    %cst_66 = arith.constant dense<0.000000e+00> : vector<24x8xf32>
    %128 = tpu.matmul %126, %127, %cst_66 {dimension_numbers = #tpu.dot_dimension_numbers<[1], [0], [0], [1], [0, 0, 1, 1], [], []>} : vector<24x24xf32>, vector<24x8xf32>, vector<24x8xf32> -> vector<24x8xf32>
    %c0_67 = arith.constant 0 : index
    %c16_68 = arith.constant 16 : index
    %129 = vector.load %arg8[%c0_67, %c16_68] : memref<48x32xf32, #tpu.memory_space<vmem>>, vector<24x8xf32>
    tpu.vector_store %arg8[%c0_67, %c16_68], %128 {strides = array<i32>} : memref<48x32xf32, #tpu.memory_space<vmem>>, vector<24x8xf32>,
    %130 = vector.extract_strided_slice %114 {offsets = [3, 0, 0], sizes = [1, 24, 24], strides = [1, 1, 1]} : vector<8x24x24xf32> to vector<1x24x24xf32>
    %131 = vector.shape_cast %130 : vector<1x24x24xf32> to vector<24x24xf32>
    %132 = vector.extract_strided_slice %52 {offsets = [0, 24], sizes = [24, 8], strides = [1, 1]} : vector<48x32xf32> to vector<24x8xf32>
    %cst_69 = arith.constant dense<0.000000e+00> : vector<24x8xf32>
    %133 = tpu.matmul %131, %132, %cst_69 {dimension_numbers = #tpu.dot_dimension_numbers<[1], [0], [0], [1], [0, 0, 1, 1], [], []>} : vector<24x24xf32>, vector<24x8xf32>, vector<24x8xf32> -> vector<24x8xf32>
    %c0_70 = arith.constant 0 : index
    %c24 = arith.constant 24 : index
    %134 = vector.load %arg8[%c0_70, %c24] : memref<48x32xf32, #tpu.memory_space<vmem>>, vector<24x8xf32>
    tpu.vector_store %arg8[%c0_70, %c24], %133 {strides = array<i32>} : memref<48x32xf32, #tpu.memory_space<vmem>>, vector<24x8xf32>,
    %135 = vector.extract_strided_slice %114 {offsets = [4, 0, 0], sizes = [1, 24, 24], strides = [1, 1, 1]} : vector<8x24x24xf32> to vector<1x24x24xf32>
    %136 = vector.shape_cast %135 : vector<1x24x24xf32> to vector<24x24xf32>
    %137 = vector.extract_strided_slice %52 {offsets = [24, 0], sizes = [24, 8], strides = [1, 1]} : vector<48x32xf32> to vector<24x8xf32>
    %cst_71 = arith.constant dense<0.000000e+00> : vector<24x8xf32>
    %138 = tpu.matmul %136, %137, %cst_71 {dimension_numbers = #tpu.dot_dimension_numbers<[1], [0], [0], [1], [0, 0, 1, 1], [], []>} : vector<24x24xf32>, vector<24x8xf32>, vector<24x8xf32> -> vector<24x8xf32>
    %c24_72 = arith.constant 24 : index
    %c0_73 = arith.constant 0 : index
    %139 = vector.load %arg8[%c24_72, %c0_73] : memref<48x32xf32, #tpu.memory_space<vmem>>, vector<24x8xf32>
    tpu.vector_store %arg8[%c24_72, %c0_73], %138 {strides = array<i32>} : memref<48x32xf32, #tpu.memory_space<vmem>>, vector<24x8xf32>,
    %140 = vector.extract_strided_slice %114 {offsets = [5, 0, 0], sizes = [1, 24, 24], strides = [1, 1, 1]} : vector<8x24x24xf32> to vector<1x24x24xf32>
    %141 = vector.shape_cast %140 : vector<1x24x24xf32> to vector<24x24xf32>
    %142 = vector.extract_strided_slice %52 {offsets = [24, 8], sizes = [24, 8], strides = [1, 1]} : vector<48x32xf32> to vector<24x8xf32>
    %cst_74 = arith.constant dense<0.000000e+00> : vector<24x8xf32>
    %143 = tpu.matmul %141, %142, %cst_74 {dimension_numbers = #tpu.dot_dimension_numbers<[1], [0], [0], [1], [0, 0, 1, 1], [], []>} : vector<24x24xf32>, vector<24x8xf32>, vector<24x8xf32> -> vector<24x8xf32>
    %c24_75 = arith.constant 24 : index
    %c8_76 = arith.constant 8 : index
    %144 = vector.load %arg8[%c24_75, %c8_76] : memref<48x32xf32, #tpu.memory_space<vmem>>, vector<24x8xf32>
    tpu.vector_store %arg8[%c24_75, %c8_76], %143 {strides = array<i32>} : memref<48x32xf32, #tpu.memory_space<vmem>>, vector<24x8xf32>,
    %145 = vector.extract_strided_slice %114 {offsets = [6, 0, 0], sizes = [1, 24, 24], strides = [1, 1, 1]} : vector<8x24x24xf32> to vector<1x24x24xf32>
    %146 = vector.shape_cast %145 : vector<1x24x24xf32> to vector<24x24xf32>
    %147 = vector.extract_strided_slice %52 {offsets = [24, 16], sizes = [24, 8], strides = [1, 1]} : vector<48x32xf32> to vector<24x8xf32>
    %cst_77 = arith.constant dense<0.000000e+00> : vector<24x8xf32>
    %148 = tpu.matmul %146, %147, %cst_77 {dimension_numbers = #tpu.dot_dimension_numbers<[1], [0], [0], [1], [0, 0, 1, 1], [], []>} : vector<24x24xf32>, vector<24x8xf32>, vector<24x8xf32> -> vector<24x8xf32>
    %c24_78 = arith.constant 24 : index
    %c16_79 = arith.constant 16 : index
    %149 = vector.load %arg8[%c24_78, %c16_79] : memref<48x32xf32, #tpu.memory_space<vmem>>, vector<24x8xf32>
    tpu.vector_store %arg8[%c24_78, %c16_79], %148 {strides = array<i32>} : memref<48x32xf32, #tpu.memory_space<vmem>>, vector<24x8xf32>,
    %150 = vector.extract_strided_slice %114 {offsets = [7, 0, 0], sizes = [1, 24, 24], strides = [1, 1, 1]} : vector<8x24x24xf32> to vector<1x24x24xf32>
    %151 = vector.shape_cast %150 : vector<1x24x24xf32> to vector<24x24xf32>
    %152 = vector.extract_strided_slice %52 {offsets = [24, 24], sizes = [24, 8], strides = [1, 1]} : vector<48x32xf32> to vector<24x8xf32>
    %cst_80 = arith.constant dense<0.000000e+00> : vector<24x8xf32>
    %153 = tpu.matmul %151, %152, %cst_80 {dimension_numbers = #tpu.dot_dimension_numbers<[1], [0], [0], [1], [0, 0, 1, 1], [], []>} : vector<24x24xf32>, vector<24x8xf32>, vector<24x8xf32> -> vector<24x8xf32>
    %c24_81 = arith.constant 24 : index
    %c24_82 = arith.constant 24 : index
    %154 = vector.load %arg8[%c24_81, %c24_82] : memref<48x32xf32, #tpu.memory_space<vmem>>, vector<24x8xf32>
    tpu.vector_store %arg8[%c24_81, %c24_82], %153 {strides = array<i32>} : memref<48x32xf32, #tpu.memory_space<vmem>>, vector<24x8xf32>,
    %c0_83 = arith.constant 0 : index
    %c0_84 = arith.constant 0 : index
    %155 = vector.load %arg8[%c0_83, %c0_84] : memref<48x32xf32, #tpu.memory_space<vmem>>, vector<48x32xf32>
    %cst_85 = arith.constant dense<0.000000e+00> : vector<48x32xf32>
    %156 = tpu.matmul %155, %19, %cst_85 {dimension_numbers = #tpu.dot_dimension_numbers<[1], [0], [0], [1], [0, 0, 1, 1], [], []>} : vector<48x32xf32>, vector<32x32xf32>, vector<48x32xf32> -> vector<48x32xf32>
    %157 = arith.addf %5, %156 : vector<48x32xf32>
    %158 = vector.broadcast %11 : vector<1x32xf32> to vector<48x32xf32>
    %159 = arith.addf %157, %158 : vector<48x32xf32>
    %cst_86 = arith.constant dense<0.000000e+00> : vector<48xf32>
    %160 = vector.multi_reduction <add>, %159, %cst_86 [1] : vector<48x32xf32> to vector<48xf32>
    %161 = vector.shape_cast %160 : vector<48xf32> to vector<48x1xf32>
    %cst_87 = arith.constant 3.200000e+01 : f32
    %162 = vector.broadcast %cst_87 : f32 to vector<48x1xf32>
    %163 = arith.divf %161, %162 : vector<48x1xf32>
    %164 = vector.broadcast %163 : vector<48x1xf32> to vector<48x32xf32>
    %165 = arith.subf %159, %164 : vector<48x32xf32>
    %166 = arith.mulf %165, %165 : vector<48x32xf32>
    %cst_88 = arith.constant dense<0.000000e+00> : vector<48xf32>
    %167 = vector.multi_reduction <add>, %166, %cst_88 [1] : vector<48x32xf32> to vector<48xf32>
    %168 = vector.shape_cast %167 : vector<48xf32> to vector<48x1xf32>
    %cst_89 = arith.constant 3.200000e+01 : f32
    %169 = vector.broadcast %cst_89 : f32 to vector<48x1xf32>
    %170 = arith.divf %168, %169 : vector<48x1xf32>
    %171 = vector.broadcast %163 : vector<48x1xf32> to vector<48x32xf32>
    %172 = arith.subf %159, %171 : vector<48x32xf32>
    %cst_90 = arith.constant 9.99999996E-13 : f32
    %173 = vector.broadcast %cst_90 : f32 to vector<48x1xf32>
    %174 = arith.addf %170, %173 : vector<48x1xf32>
    %175 = math.rsqrt %174 : vector<48x1xf32>
    %176 = vector.broadcast %175 : vector<48x1xf32> to vector<48x32xf32>
    %177 = arith.mulf %172, %176 : vector<48x32xf32>
    %178 = vector.broadcast %12 : vector<1x32xf32> to vector<48x32xf32>
    %179 = arith.mulf %177, %178 : vector<48x32xf32>
    %180 = vector.broadcast %13 : vector<1x32xf32> to vector<48x32xf32>
    %181 = arith.addf %179, %180 : vector<48x32xf32>
    %cst_91 = arith.constant dense<0.000000e+00> : vector<48x64xf32>
    %182 = tpu.matmul %181, %20, %cst_91 {dimension_numbers = #tpu.dot_dimension_numbers<[1], [0], [0], [1], [0, 0, 1, 1], [], []>} : vector<48x32xf32>, vector<32x64xf32>, vector<48x64xf32> -> vector<48x64xf32>
    %183 = vector.broadcast %14 : vector<1x64xf32> to vector<48x64xf32>
    %184 = arith.addf %182, %183 : vector<48x64xf32>
    %cst_92 = arith.constant 5.000000e-01 : f32
    %185 = vector.broadcast %cst_92 : f32 to vector<48x64xf32>
    %186 = arith.mulf %185, %184 : vector<48x64xf32>
    %cst_93 = arith.constant 4.471500e-02 : f32
    %187 = vector.broadcast %cst_93 : f32 to vector<48x64xf32>
    %188 = arith.mulf %187, %184 : vector<48x64xf32>
    %189 = arith.mulf %188, %184 : vector<48x64xf32>
    %190 = arith.mulf %189, %184 : vector<48x64xf32>
    %191 = arith.addf %184, %190 : vector<48x64xf32>
    %cst_94 = arith.constant 0.797884583 : f32
    %192 = vector.broadcast %cst_94 : f32 to vector<48x64xf32>
    %193 = arith.mulf %192, %191 : vector<48x64xf32>
    %194 = math.tanh %193 : vector<48x64xf32>
    %cst_95 = arith.constant 1.000000e+00 : f32
    %195 = vector.broadcast %cst_95 : f32 to vector<48x64xf32>
    %196 = arith.addf %195, %194 : vector<48x64xf32>
    %197 = arith.mulf %186, %196 : vector<48x64xf32>
    %cst_96 = arith.constant dense<0.000000e+00> : vector<48x32xf32>
    %198 = tpu.matmul %197, %21, %cst_96 {dimension_numbers = #tpu.dot_dimension_numbers<[1], [0], [0], [1], [0, 0, 1, 1], [], []>} : vector<48x64xf32>, vector<64x32xf32>, vector<48x32xf32> -> vector<48x32xf32>
    %199 = arith.addf %159, %198 : vector<48x32xf32>
    %200 = vector.broadcast %15 : vector<1x32xf32> to vector<48x32xf32>
    %201 = arith.addf %199, %200 : vector<48x32xf32>
    %c59 = arith.constant 59 : index
    %c0_97 = arith.constant 0 : index
    %202 = vector.load %arg1[%c59, %c0_97] : memref<72x128xf32, #tpu.memory_space<vmem>>, vector<1x32xf32>
    %c60 = arith.constant 60 : index
    %c0_98 = arith.constant 0 : index
    %203 = vector.load %arg1[%c60, %c0_98] : memref<72x128xf32, #tpu.memory_space<vmem>>, vector<1x32xf32>
    %c61 = arith.constant 61 : index
    %c0_99 = arith.constant 0 : index
    %204 = vector.load %arg1[%c61, %c0_99] : memref<72x128xf32, #tpu.memory_space<vmem>>, vector<1x32xf32>
    %c62 = arith.constant 62 : index
    %c0_100 = arith.constant 0 : index
    %205 = vector.load %arg1[%c62, %c0_100] : memref<72x128xf32, #tpu.memory_space<vmem>>, vector<1x32xf32>
    %c63 = arith.constant 63 : index
    %c0_101 = arith.constant 0 : index
    %206 = vector.load %arg1[%c63, %c0_101] : memref<72x128xf32, #tpu.memory_space<vmem>>, vector<1x32xf32>
    %c64 = arith.constant 64 : index
    %c0_102 = arith.constant 0 : index
    %207 = vector.load %arg1[%c64, %c0_102] : memref<72x128xf32, #tpu.memory_space<vmem>>, vector<1x32xf32>
    %c65 = arith.constant 65 : index
    %c0_103 = arith.constant 0 : index
    %208 = vector.load %arg1[%c65, %c0_103] : memref<72x128xf32, #tpu.memory_space<vmem>>, vector<1x32xf32>
    %c66 = arith.constant 66 : index
    %c0_104 = arith.constant 0 : index
    %209 = vector.load %arg1[%c66, %c0_104] : memref<72x128xf32, #tpu.memory_space<vmem>>, vector<1x32xf32>
    %c67 = arith.constant 67 : index
    %c0_105 = arith.constant 0 : index
    %210 = vector.load %arg1[%c67, %c0_105] : memref<72x128xf32, #tpu.memory_space<vmem>>, vector<1x64xf32>
    %c68 = arith.constant 68 : index
    %c0_106 = arith.constant 0 : index
    %211 = vector.load %arg1[%c68, %c0_106] : memref<72x128xf32, #tpu.memory_space<vmem>>, vector<1x32xf32>
    %c240 = arith.constant 240 : index
    %c0_107 = arith.constant 0 : index
    %212 = vector.load %arg2[%c240, %c0_107] : memref<464x64xf32, #tpu.memory_space<vmem>>, vector<32x32xf32>
    %c272 = arith.constant 272 : index
    %c0_108 = arith.constant 0 : index
    %213 = vector.load %arg2[%c272, %c0_108] : memref<464x64xf32, #tpu.memory_space<vmem>>, vector<32x32xf32>
    %c304 = arith.constant 304 : index
    %c0_109 = arith.constant 0 : index
    %214 = vector.load %arg2[%c304, %c0_109] : memref<464x64xf32, #tpu.memory_space<vmem>>, vector<32x32xf32>
    %c336 = arith.constant 336 : index
    %c0_110 = arith.constant 0 : index
    %215 = vector.load %arg2[%c336, %c0_110] : memref<464x64xf32, #tpu.memory_space<vmem>>, vector<32x32xf32>
    %c368 = arith.constant 368 : index
    %c0_111 = arith.constant 0 : index
    %216 = vector.load %arg2[%c368, %c0_111] : memref<464x64xf32, #tpu.memory_space<vmem>>, vector<32x64xf32>
    %c400 = arith.constant 400 : index
    %c0_112 = arith.constant 0 : index
    %217 = vector.load %arg2[%c400, %c0_112] : memref<464x64xf32, #tpu.memory_space<vmem>>, vector<64x32xf32>
    %cst_113 = arith.constant dense<0.000000e+00> : vector<48xf32>
    %218 = vector.multi_reduction <add>, %201, %cst_113 [1] : vector<48x32xf32> to vector<48xf32>
    %219 = vector.shape_cast %218 : vector<48xf32> to vector<48x1xf32>
    %cst_114 = arith.constant 3.200000e+01 : f32
    %220 = vector.broadcast %cst_114 : f32 to vector<48x1xf32>
    %221 = arith.divf %219, %220 : vector<48x1xf32>
    %222 = vector.broadcast %221 : vector<48x1xf32> to vector<48x32xf32>
    %223 = arith.subf %201, %222 : vector<48x32xf32>
    %224 = arith.mulf %223, %223 : vector<48x32xf32>
    %cst_115 = arith.constant dense<0.000000e+00> : vector<48xf32>
    %225 = vector.multi_reduction <add>, %224, %cst_115 [1] : vector<48x32xf32> to vector<48xf32>
    %226 = vector.shape_cast %225 : vector<48xf32> to vector<48x1xf32>
    %cst_116 = arith.constant 3.200000e+01 : f32
    %227 = vector.broadcast %cst_116 : f32 to vector<48x1xf32>
    %228 = arith.divf %226, %227 : vector<48x1xf32>
    %229 = vector.broadcast %221 : vector<48x1xf32> to vector<48x32xf32>
    %230 = arith.subf %201, %229 : vector<48x32xf32>
    %cst_117 = arith.constant 9.99999996E-13 : f32
    %231 = vector.broadcast %cst_117 : f32 to vector<48x1xf32>
    %232 = arith.addf %228, %231 : vector<48x1xf32>
    %233 = math.rsqrt %232 : vector<48x1xf32>
    %234 = vector.broadcast %233 : vector<48x1xf32> to vector<48x32xf32>
    %235 = arith.mulf %230, %234 : vector<48x32xf32>
    %236 = vector.broadcast %202 : vector<1x32xf32> to vector<48x32xf32>
    %237 = arith.mulf %235, %236 : vector<48x32xf32>
    %238 = vector.broadcast %203 : vector<1x32xf32> to vector<48x32xf32>
    %239 = arith.addf %237, %238 : vector<48x32xf32>
    %cst_118 = arith.constant dense<0.000000e+00> : vector<48x32xf32>
    %240 = tpu.matmul %239, %212, %cst_118 {dimension_numbers = #tpu.dot_dimension_numbers<[1], [0], [0], [1], [0, 0, 1, 1], [], []>} : vector<48x32xf32>, vector<32x32xf32>, vector<48x32xf32> -> vector<48x32xf32>
    %241 = vector.broadcast %204 : vector<1x32xf32> to vector<48x32xf32>
    %242 = arith.addf %240, %241 : vector<48x32xf32>
    %cst_119 = arith.constant dense<0.000000e+00> : vector<48x32xf32>
    %243 = tpu.matmul %239, %213, %cst_119 {dimension_numbers = #tpu.dot_dimension_numbers<[1], [0], [0], [1], [0, 0, 1, 1], [], []>} : vector<48x32xf32>, vector<32x32xf32>, vector<48x32xf32> -> vector<48x32xf32>
    %244 = vector.broadcast %205 : vector<1x32xf32> to vector<48x32xf32>
    %245 = arith.addf %243, %244 : vector<48x32xf32>
    %cst_120 = arith.constant dense<0.000000e+00> : vector<48x32xf32>
    %246 = tpu.matmul %239, %214, %cst_120 {dimension_numbers = #tpu.dot_dimension_numbers<[1], [0], [0], [1], [0, 0, 1, 1], [], []>} : vector<48x32xf32>, vector<32x32xf32>, vector<48x32xf32> -> vector<48x32xf32>
    %247 = vector.broadcast %206 : vector<1x32xf32> to vector<48x32xf32>
    %248 = arith.addf %246, %247 : vector<48x32xf32>
    %249 = vector.extract_strided_slice %242 {offsets = [0, 0], sizes = [24, 8], strides = [1, 1]} : vector<48x32xf32> to vector<24x8xf32>
    %250 = vector.extract_strided_slice %245 {offsets = [0, 0], sizes = [24, 8], strides = [1, 1]} : vector<48x32xf32> to vector<24x8xf32>
    %cst_121 = arith.constant dense<0.000000e+00> : vector<24x24xf32>
    %251 = tpu.matmul %249, %250, %cst_121 {dimension_numbers = #tpu.dot_dimension_numbers<[1], [1], [0], [0], [0, 0, 1, 0], [], []>} : vector<24x8xf32>, vector<24x8xf32>, vector<24x24xf32> -> vector<24x24xf32>
    %c0_122 = arith.constant 0 : index
    %c0_123 = arith.constant 0 : index
    %c0_124 = arith.constant 0 : index
    %252 = vector.load %arg7[%c0_122, %c0_123, %c0_124] : memref<8x24x24xf32, #tpu.memory_space<vmem>>, vector<1x24x24xf32>
    %253 = vector.shape_cast %252 : vector<1x24x24xf32> to vector<24x24xf32>
    %254 = vector.shape_cast %251 : vector<24x24xf32> to vector<1x24x24xf32>
    tpu.vector_store %arg7[%c0_122, %c0_123, %c0_124], %254 {strides = array<i32>} : memref<8x24x24xf32, #tpu.memory_space<vmem>>, vector<1x24x24xf32>,
    %255 = vector.extract_strided_slice %242 {offsets = [0, 8], sizes = [24, 8], strides = [1, 1]} : vector<48x32xf32> to vector<24x8xf32>
    %256 = vector.extract_strided_slice %245 {offsets = [0, 8], sizes = [24, 8], strides = [1, 1]} : vector<48x32xf32> to vector<24x8xf32>
    %cst_125 = arith.constant dense<0.000000e+00> : vector<24x24xf32>
    %257 = tpu.matmul %255, %256, %cst_125 {dimension_numbers = #tpu.dot_dimension_numbers<[1], [1], [0], [0], [0, 0, 1, 0], [], []>} : vector<24x8xf32>, vector<24x8xf32>, vector<24x24xf32> -> vector<24x24xf32>
    %c1_126 = arith.constant 1 : index
    %c0_127 = arith.constant 0 : index
    %c0_128 = arith.constant 0 : index
    %258 = vector.load %arg7[%c1_126, %c0_127, %c0_128] : memref<8x24x24xf32, #tpu.memory_space<vmem>>, vector<1x24x24xf32>
    %259 = vector.shape_cast %258 : vector<1x24x24xf32> to vector<24x24xf32>
    %260 = vector.shape_cast %257 : vector<24x24xf32> to vector<1x24x24xf32>
    tpu.vector_store %arg7[%c1_126, %c0_127, %c0_128], %260 {strides = array<i32>} : memref<8x24x24xf32, #tpu.memory_space<vmem>>, vector<1x24x24xf32>,
    %261 = vector.extract_strided_slice %242 {offsets = [0, 16], sizes = [24, 8], strides = [1, 1]} : vector<48x32xf32> to vector<24x8xf32>
    %262 = vector.extract_strided_slice %245 {offsets = [0, 16], sizes = [24, 8], strides = [1, 1]} : vector<48x32xf32> to vector<24x8xf32>
    %cst_129 = arith.constant dense<0.000000e+00> : vector<24x24xf32>
    %263 = tpu.matmul %261, %262, %cst_129 {dimension_numbers = #tpu.dot_dimension_numbers<[1], [1], [0], [0], [0, 0, 1, 0], [], []>} : vector<24x8xf32>, vector<24x8xf32>, vector<24x24xf32> -> vector<24x24xf32>
    %c2_130 = arith.constant 2 : index
    %c0_131 = arith.constant 0 : index
    %c0_132 = arith.constant 0 : index
    %264 = vector.load %arg7[%c2_130, %c0_131, %c0_132] : memref<8x24x24xf32, #tpu.memory_space<vmem>>, vector<1x24x24xf32>
    %265 = vector.shape_cast %264 : vector<1x24x24xf32> to vector<24x24xf32>
    %266 = vector.shape_cast %263 : vector<24x24xf32> to vector<1x24x24xf32>
    tpu.vector_store %arg7[%c2_130, %c0_131, %c0_132], %266 {strides = array<i32>} : memref<8x24x24xf32, #tpu.memory_space<vmem>>, vector<1x24x24xf32>,
    %267 = vector.extract_strided_slice %242 {offsets = [0, 24], sizes = [24, 8], strides = [1, 1]} : vector<48x32xf32> to vector<24x8xf32>
    %268 = vector.extract_strided_slice %245 {offsets = [0, 24], sizes = [24, 8], strides = [1, 1]} : vector<48x32xf32> to vector<24x8xf32>
    %cst_133 = arith.constant dense<0.000000e+00> : vector<24x24xf32>
    %269 = tpu.matmul %267, %268, %cst_133 {dimension_numbers = #tpu.dot_dimension_numbers<[1], [1], [0], [0], [0, 0, 1, 0], [], []>} : vector<24x8xf32>, vector<24x8xf32>, vector<24x24xf32> -> vector<24x24xf32>
    %c3_134 = arith.constant 3 : index
    %c0_135 = arith.constant 0 : index
    %c0_136 = arith.constant 0 : index
    %270 = vector.load %arg7[%c3_134, %c0_135, %c0_136] : memref<8x24x24xf32, #tpu.memory_space<vmem>>, vector<1x24x24xf32>
    %271 = vector.shape_cast %270 : vector<1x24x24xf32> to vector<24x24xf32>
    %272 = vector.shape_cast %269 : vector<24x24xf32> to vector<1x24x24xf32>
    tpu.vector_store %arg7[%c3_134, %c0_135, %c0_136], %272 {strides = array<i32>} : memref<8x24x24xf32, #tpu.memory_space<vmem>>, vector<1x24x24xf32>,
    %273 = vector.extract_strided_slice %242 {offsets = [24, 0], sizes = [24, 8], strides = [1, 1]} : vector<48x32xf32> to vector<24x8xf32>
    %274 = vector.extract_strided_slice %245 {offsets = [24, 0], sizes = [24, 8], strides = [1, 1]} : vector<48x32xf32> to vector<24x8xf32>
    %cst_137 = arith.constant dense<0.000000e+00> : vector<24x24xf32>
    %275 = tpu.matmul %273, %274, %cst_137 {dimension_numbers = #tpu.dot_dimension_numbers<[1], [1], [0], [0], [0, 0, 1, 0], [], []>} : vector<24x8xf32>, vector<24x8xf32>, vector<24x24xf32> -> vector<24x24xf32>
    %c4_138 = arith.constant 4 : index
    %c0_139 = arith.constant 0 : index
    %c0_140 = arith.constant 0 : index
    %276 = vector.load %arg7[%c4_138, %c0_139, %c0_140] : memref<8x24x24xf32, #tpu.memory_space<vmem>>, vector<1x24x24xf32>
    %277 = vector.shape_cast %276 : vector<1x24x24xf32> to vector<24x24xf32>
    %278 = vector.shape_cast %275 : vector<24x24xf32> to vector<1x24x24xf32>
    tpu.vector_store %arg7[%c4_138, %c0_139, %c0_140], %278 {strides = array<i32>} : memref<8x24x24xf32, #tpu.memory_space<vmem>>, vector<1x24x24xf32>,
    %279 = vector.extract_strided_slice %242 {offsets = [24, 8], sizes = [24, 8], strides = [1, 1]} : vector<48x32xf32> to vector<24x8xf32>
    %280 = vector.extract_strided_slice %245 {offsets = [24, 8], sizes = [24, 8], strides = [1, 1]} : vector<48x32xf32> to vector<24x8xf32>
    %cst_141 = arith.constant dense<0.000000e+00> : vector<24x24xf32>
    %281 = tpu.matmul %279, %280, %cst_141 {dimension_numbers = #tpu.dot_dimension_numbers<[1], [1], [0], [0], [0, 0, 1, 0], [], []>} : vector<24x8xf32>, vector<24x8xf32>, vector<24x24xf32> -> vector<24x24xf32>
    %c5_142 = arith.constant 5 : index
    %c0_143 = arith.constant 0 : index
    %c0_144 = arith.constant 0 : index
    %282 = vector.load %arg7[%c5_142, %c0_143, %c0_144] : memref<8x24x24xf32, #tpu.memory_space<vmem>>, vector<1x24x24xf32>
    %283 = vector.shape_cast %282 : vector<1x24x24xf32> to vector<24x24xf32>
    %284 = vector.shape_cast %281 : vector<24x24xf32> to vector<1x24x24xf32>
    tpu.vector_store %arg7[%c5_142, %c0_143, %c0_144], %284 {strides = array<i32>} : memref<8x24x24xf32, #tpu.memory_space<vmem>>, vector<1x24x24xf32>,
    %285 = vector.extract_strided_slice %242 {offsets = [24, 16], sizes = [24, 8], strides = [1, 1]} : vector<48x32xf32> to vector<24x8xf32>
    %286 = vector.extract_strided_slice %245 {offsets = [24, 16], sizes = [24, 8], strides = [1, 1]} : vector<48x32xf32> to vector<24x8xf32>
    %cst_145 = arith.constant dense<0.000000e+00> : vector<24x24xf32>
    %287 = tpu.matmul %285, %286, %cst_145 {dimension_numbers = #tpu.dot_dimension_numbers<[1], [1], [0], [0], [0, 0, 1, 0], [], []>} : vector<24x8xf32>, vector<24x8xf32>, vector<24x24xf32> -> vector<24x24xf32>
    %c6_146 = arith.constant 6 : index
    %c0_147 = arith.constant 0 : index
    %c0_148 = arith.constant 0 : index
    %288 = vector.load %arg7[%c6_146, %c0_147, %c0_148] : memref<8x24x24xf32, #tpu.memory_space<vmem>>, vector<1x24x24xf32>
    %289 = vector.shape_cast %288 : vector<1x24x24xf32> to vector<24x24xf32>
    %290 = vector.shape_cast %287 : vector<24x24xf32> to vector<1x24x24xf32>
    tpu.vector_store %arg7[%c6_146, %c0_147, %c0_148], %290 {strides = array<i32>} : memref<8x24x24xf32, #tpu.memory_space<vmem>>, vector<1x24x24xf32>,
    %291 = vector.extract_strided_slice %242 {offsets = [24, 24], sizes = [24, 8], strides = [1, 1]} : vector<48x32xf32> to vector<24x8xf32>
    %292 = vector.extract_strided_slice %245 {offsets = [24, 24], sizes = [24, 8], strides = [1, 1]} : vector<48x32xf32> to vector<24x8xf32>
    %cst_149 = arith.constant dense<0.000000e+00> : vector<24x24xf32>
    %293 = tpu.matmul %291, %292, %cst_149 {dimension_numbers = #tpu.dot_dimension_numbers<[1], [1], [0], [0], [0, 0, 1, 0], [], []>} : vector<24x8xf32>, vector<24x8xf32>, vector<24x24xf32> -> vector<24x24xf32>
    %c7_150 = arith.constant 7 : index
    %c0_151 = arith.constant 0 : index
    %c0_152 = arith.constant 0 : index
    %294 = vector.load %arg7[%c7_150, %c0_151, %c0_152] : memref<8x24x24xf32, #tpu.memory_space<vmem>>, vector<1x24x24xf32>
    %295 = vector.shape_cast %294 : vector<1x24x24xf32> to vector<24x24xf32>
    %296 = vector.shape_cast %293 : vector<24x24xf32> to vector<1x24x24xf32>
    tpu.vector_store %arg7[%c7_150, %c0_151, %c0_152], %296 {strides = array<i32>} : memref<8x24x24xf32, #tpu.memory_space<vmem>>, vector<1x24x24xf32>,
    %c0_153 = arith.constant 0 : index
    %c0_154 = arith.constant 0 : index
    %c0_155 = arith.constant 0 : index
    %297 = vector.load %arg7[%c0_153, %c0_154, %c0_155] : memref<8x24x24xf32, #tpu.memory_space<vmem>>, vector<8x24x24xf32>
    %298 = vector.shape_cast %2 : vector<1x24xf32> to vector<1x1x24xf32>
    %299 = vector.broadcast %298 : vector<1x1x24xf32> to vector<8x24x24xf32>
    %300 = arith.addf %297, %299 : vector<8x24x24xf32>
    %cst_156 = arith.constant dense<0xFF800000> : vector<8x24xf32>
    %301 = vector.multi_reduction <maximumf>, %300, %cst_156 [2] : vector<8x24x24xf32> to vector<8x24xf32>
    %302 = vector.shape_cast %301 : vector<8x24xf32> to vector<8x24x1xf32>
    %303 = vector.broadcast %302 : vector<8x24x1xf32> to vector<8x24x24xf32>
    %304 = arith.subf %300, %303 : vector<8x24x24xf32>
    %305 = math.exp %304 : vector<8x24x24xf32>
    %cst_157 = arith.constant dense<0.000000e+00> : vector<8x24xf32>
    %306 = vector.multi_reduction <add>, %305, %cst_157 [2] : vector<8x24x24xf32> to vector<8x24xf32>
    %307 = vector.shape_cast %306 : vector<8x24xf32> to vector<8x24x1xf32>
    %308 = tpu.reciprocal %307 {approx = true} : vector<8x24x1xf32> -> vector<8x24x1xf32>
    %309 = vector.broadcast %308 : vector<8x24x1xf32> to vector<8x24x24xf32>
    %310 = arith.mulf %305, %309 : vector<8x24x24xf32>
    %311 = vector.extract_strided_slice %310 {offsets = [0, 0, 0], sizes = [1, 24, 24], strides = [1, 1, 1]} : vector<8x24x24xf32> to vector<1x24x24xf32>
    %312 = vector.shape_cast %311 : vector<1x24x24xf32> to vector<24x24xf32>
    %313 = vector.extract_strided_slice %248 {offsets = [0, 0], sizes = [24, 8], strides = [1, 1]} : vector<48x32xf32> to vector<24x8xf32>
    %cst_158 = arith.constant dense<0.000000e+00> : vector<24x8xf32>
    %314 = tpu.matmul %312, %313, %cst_158 {dimension_numbers = #tpu.dot_dimension_numbers<[1], [0], [0], [1], [0, 0, 1, 1], [], []>} : vector<24x24xf32>, vector<24x8xf32>, vector<24x8xf32> -> vector<24x8xf32>
    %c0_159 = arith.constant 0 : index
    %c0_160 = arith.constant 0 : index
    %315 = vector.load %arg8[%c0_159, %c0_160] : memref<48x32xf32, #tpu.memory_space<vmem>>, vector<24x8xf32>
    tpu.vector_store %arg8[%c0_159, %c0_160], %314 {strides = array<i32>} : memref<48x32xf32, #tpu.memory_space<vmem>>, vector<24x8xf32>,
    %316 = vector.extract_strided_slice %310 {offsets = [1, 0, 0], sizes = [1, 24, 24], strides = [1, 1, 1]} : vector<8x24x24xf32> to vector<1x24x24xf32>
    %317 = vector.shape_cast %316 : vector<1x24x24xf32> to vector<24x24xf32>
    %318 = vector.extract_strided_slice %248 {offsets = [0, 8], sizes = [24, 8], strides = [1, 1]} : vector<48x32xf32> to vector<24x8xf32>
    %cst_161 = arith.constant dense<0.000000e+00> : vector<24x8xf32>
    %319 = tpu.matmul %317, %318, %cst_161 {dimension_numbers = #tpu.dot_dimension_numbers<[1], [0], [0], [1], [0, 0, 1, 1], [], []>} : vector<24x24xf32>, vector<24x8xf32>, vector<24x8xf32> -> vector<24x8xf32>
    %c0_162 = arith.constant 0 : index
    %c8_163 = arith.constant 8 : index
    %320 = vector.load %arg8[%c0_162, %c8_163] : memref<48x32xf32, #tpu.memory_space<vmem>>, vector<24x8xf32>
    tpu.vector_store %arg8[%c0_162, %c8_163], %319 {strides = array<i32>} : memref<48x32xf32, #tpu.memory_space<vmem>>, vector<24x8xf32>,
    %321 = vector.extract_strided_slice %310 {offsets = [2, 0, 0], sizes = [1, 24, 24], strides = [1, 1, 1]} : vector<8x24x24xf32> to vector<1x24x24xf32>
    %322 = vector.shape_cast %321 : vector<1x24x24xf32> to vector<24x24xf32>
    %323 = vector.extract_strided_slice %248 {offsets = [0, 16], sizes = [24, 8], strides = [1, 1]} : vector<48x32xf32> to vector<24x8xf32>
    %cst_164 = arith.constant dense<0.000000e+00> : vector<24x8xf32>
    %324 = tpu.matmul %322, %323, %cst_164 {dimension_numbers = #tpu.dot_dimension_numbers<[1], [0], [0], [1], [0, 0, 1, 1], [], []>} : vector<24x24xf32>, vector<24x8xf32>, vector<24x8xf32> -> vector<24x8xf32>
    %c0_165 = arith.constant 0 : index
    %c16_166 = arith.constant 16 : index
    %325 = vector.load %arg8[%c0_165, %c16_166] : memref<48x32xf32, #tpu.memory_space<vmem>>, vector<24x8xf32>
    tpu.vector_store %arg8[%c0_165, %c16_166], %324 {strides = array<i32>} : memref<48x32xf32, #tpu.memory_space<vmem>>, vector<24x8xf32>,
    %326 = vector.extract_strided_slice %310 {offsets = [3, 0, 0], sizes = [1, 24, 24], strides = [1, 1, 1]} : vector<8x24x24xf32> to vector<1x24x24xf32>
    %327 = vector.shape_cast %326 : vector<1x24x24xf32> to vector<24x24xf32>
    %328 = vector.extract_strided_slice %248 {offsets = [0, 24], sizes = [24, 8], strides = [1, 1]} : vector<48x32xf32> to vector<24x8xf32>
    %cst_167 = arith.constant dense<0.000000e+00> : vector<24x8xf32>
    %329 = tpu.matmul %327, %328, %cst_167 {dimension_numbers = #tpu.dot_dimension_numbers<[1], [0], [0], [1], [0, 0, 1, 1], [], []>} : vector<24x24xf32>, vector<24x8xf32>, vector<24x8xf32> -> vector<24x8xf32>
    %c0_168 = arith.constant 0 : index
    %c24_169 = arith.constant 24 : index
    %330 = vector.load %arg8[%c0_168, %c24_169] : memref<48x32xf32, #tpu.memory_space<vmem>>, vector<24x8xf32>
    tpu.vector_store %arg8[%c0_168, %c24_169], %329 {strides = array<i32>} : memref<48x32xf32, #tpu.memory_space<vmem>>, vector<24x8xf32>,
    %331 = vector.extract_strided_slice %310 {offsets = [4, 0, 0], sizes = [1, 24, 24], strides = [1, 1, 1]} : vector<8x24x24xf32> to vector<1x24x24xf32>
    %332 = vector.shape_cast %331 : vector<1x24x24xf32> to vector<24x24xf32>
    %333 = vector.extract_strided_slice %248 {offsets = [24, 0], sizes = [24, 8], strides = [1, 1]} : vector<48x32xf32> to vector<24x8xf32>
    %cst_170 = arith.constant dense<0.000000e+00> : vector<24x8xf32>
    %334 = tpu.matmul %332, %333, %cst_170 {dimension_numbers = #tpu.dot_dimension_numbers<[1], [0], [0], [1], [0, 0, 1, 1], [], []>} : vector<24x24xf32>, vector<24x8xf32>, vector<24x8xf32> -> vector<24x8xf32>
    %c24_171 = arith.constant 24 : index
    %c0_172 = arith.constant 0 : index
    %335 = vector.load %arg8[%c24_171, %c0_172] : memref<48x32xf32, #tpu.memory_space<vmem>>, vector<24x8xf32>
    tpu.vector_store %arg8[%c24_171, %c0_172], %334 {strides = array<i32>} : memref<48x32xf32, #tpu.memory_space<vmem>>, vector<24x8xf32>,
    %336 = vector.extract_strided_slice %310 {offsets = [5, 0, 0], sizes = [1, 24, 24], strides = [1, 1, 1]} : vector<8x24x24xf32> to vector<1x24x24xf32>
    %337 = vector.shape_cast %336 : vector<1x24x24xf32> to vector<24x24xf32>
    %338 = vector.extract_strided_slice %248 {offsets = [24, 8], sizes = [24, 8], strides = [1, 1]} : vector<48x32xf32> to vector<24x8xf32>
    %cst_173 = arith.constant dense<0.000000e+00> : vector<24x8xf32>
    %339 = tpu.matmul %337, %338, %cst_173 {dimension_numbers = #tpu.dot_dimension_numbers<[1], [0], [0], [1], [0, 0, 1, 1], [], []>} : vector<24x24xf32>, vector<24x8xf32>, vector<24x8xf32> -> vector<24x8xf32>
    %c24_174 = arith.constant 24 : index
    %c8_175 = arith.constant 8 : index
    %340 = vector.load %arg8[%c24_174, %c8_175] : memref<48x32xf32, #tpu.memory_space<vmem>>, vector<24x8xf32>
    tpu.vector_store %arg8[%c24_174, %c8_175], %339 {strides = array<i32>} : memref<48x32xf32, #tpu.memory_space<vmem>>, vector<24x8xf32>,
    %341 = vector.extract_strided_slice %310 {offsets = [6, 0, 0], sizes = [1, 24, 24], strides = [1, 1, 1]} : vector<8x24x24xf32> to vector<1x24x24xf32>
    %342 = vector.shape_cast %341 : vector<1x24x24xf32> to vector<24x24xf32>
    %343 = vector.extract_strided_slice %248 {offsets = [24, 16], sizes = [24, 8], strides = [1, 1]} : vector<48x32xf32> to vector<24x8xf32>
    %cst_176 = arith.constant dense<0.000000e+00> : vector<24x8xf32>
    %344 = tpu.matmul %342, %343, %cst_176 {dimension_numbers = #tpu.dot_dimension_numbers<[1], [0], [0], [1], [0, 0, 1, 1], [], []>} : vector<24x24xf32>, vector<24x8xf32>, vector<24x8xf32> -> vector<24x8xf32>
    %c24_177 = arith.constant 24 : index
    %c16_178 = arith.constant 16 : index
    %345 = vector.load %arg8[%c24_177, %c16_178] : memref<48x32xf32, #tpu.memory_space<vmem>>, vector<24x8xf32>
    tpu.vector_store %arg8[%c24_177, %c16_178], %344 {strides = array<i32>} : memref<48x32xf32, #tpu.memory_space<vmem>>, vector<24x8xf32>,
    %346 = vector.extract_strided_slice %310 {offsets = [7, 0, 0], sizes = [1, 24, 24], strides = [1, 1, 1]} : vector<8x24x24xf32> to vector<1x24x24xf32>
    %347 = vector.shape_cast %346 : vector<1x24x24xf32> to vector<24x24xf32>
    %348 = vector.extract_strided_slice %248 {offsets = [24, 24], sizes = [24, 8], strides = [1, 1]} : vector<48x32xf32> to vector<24x8xf32>
    %cst_179 = arith.constant dense<0.000000e+00> : vector<24x8xf32>
    %349 = tpu.matmul %347, %348, %cst_179 {dimension_numbers = #tpu.dot_dimension_numbers<[1], [0], [0], [1], [0, 0, 1, 1], [], []>} : vector<24x24xf32>, vector<24x8xf32>, vector<24x8xf32> -> vector<24x8xf32>
    %c24_180 = arith.constant 24 : index
    %c24_181 = arith.constant 24 : index
    %350 = vector.load %arg8[%c24_180, %c24_181] : memref<48x32xf32, #tpu.memory_space<vmem>>, vector<24x8xf32>
    tpu.vector_store %arg8[%c24_180, %c24_181], %349 {strides = array<i32>} : memref<48x32xf32, #tpu.memory_space<vmem>>, vector<24x8xf32>,
    %c0_182 = arith.constant 0 : index
    %c0_183 = arith.constant 0 : index
    %351 = vector.load %arg8[%c0_182, %c0_183] : memref<48x32xf32, #tpu.memory_space<vmem>>, vector<48x32xf32>
    %cst_184 = arith.constant dense<0.000000e+00> : vector<48x32xf32>
    %352 = tpu.matmul %351, %215, %cst_184 {dimension_numbers = #tpu.dot_dimension_numbers<[1], [0], [0], [1], [0, 0, 1, 1], [], []>} : vector<48x32xf32>, vector<32x32xf32>, vector<48x32xf32> -> vector<48x32xf32>
    %353 = arith.addf %201, %352 : vector<48x32xf32>
    %354 = vector.broadcast %207 : vector<1x32xf32> to vector<48x32xf32>
    %355 = arith.addf %353, %354 : vector<48x32xf32>
    %cst_185 = arith.constant dense<0.000000e+00> : vector<48xf32>
    %356 = vector.multi_reduction <add>, %355, %cst_185 [1] : vector<48x32xf32> to vector<48xf32>
    %357 = vector.shape_cast %356 : vector<48xf32> to vector<48x1xf32>
    %cst_186 = arith.constant 3.200000e+01 : f32
    %358 = vector.broadcast %cst_186 : f32 to vector<48x1xf32>
    %359 = arith.divf %357, %358 : vector<48x1xf32>
    %360 = vector.broadcast %359 : vector<48x1xf32> to vector<48x32xf32>
    %361 = arith.subf %355, %360 : vector<48x32xf32>
    %362 = arith.mulf %361, %361 : vector<48x32xf32>
    %cst_187 = arith.constant dense<0.000000e+00> : vector<48xf32>
    %363 = vector.multi_reduction <add>, %362, %cst_187 [1] : vector<48x32xf32> to vector<48xf32>
    %364 = vector.shape_cast %363 : vector<48xf32> to vector<48x1xf32>
    %cst_188 = arith.constant 3.200000e+01 : f32
    %365 = vector.broadcast %cst_188 : f32 to vector<48x1xf32>
    %366 = arith.divf %364, %365 : vector<48x1xf32>
    %367 = vector.broadcast %359 : vector<48x1xf32> to vector<48x32xf32>
    %368 = arith.subf %355, %367 : vector<48x32xf32>
    %cst_189 = arith.constant 9.99999996E-13 : f32
    %369 = vector.broadcast %cst_189 : f32 to vector<48x1xf32>
    %370 = arith.addf %366, %369 : vector<48x1xf32>
    %371 = math.rsqrt %370 : vector<48x1xf32>
    %372 = vector.broadcast %371 : vector<48x1xf32> to vector<48x32xf32>
    %373 = arith.mulf %368, %372 : vector<48x32xf32>
    %374 = vector.broadcast %208 : vector<1x32xf32> to vector<48x32xf32>
    %375 = arith.mulf %373, %374 : vector<48x32xf32>
    %376 = vector.broadcast %209 : vector<1x32xf32> to vector<48x32xf32>
    %377 = arith.addf %375, %376 : vector<48x32xf32>
    %cst_190 = arith.constant dense<0.000000e+00> : vector<48x64xf32>
    %378 = tpu.matmul %377, %216, %cst_190 {dimension_numbers = #tpu.dot_dimension_numbers<[1], [0], [0], [1], [0, 0, 1, 1], [], []>} : vector<48x32xf32>, vector<32x64xf32>, vector<48x64xf32> -> vector<48x64xf32>
    %379 = vector.broadcast %210 : vector<1x64xf32> to vector<48x64xf32>
    %380 = arith.addf %378, %379 : vector<48x64xf32>
    %cst_191 = arith.constant 5.000000e-01 : f32
    %381 = vector.broadcast %cst_191 : f32 to vector<48x64xf32>
    %382 = arith.mulf %381, %380 : vector<48x64xf32>
    %cst_192 = arith.constant 4.471500e-02 : f32
    %383 = vector.broadcast %cst_192 : f32 to vector<48x64xf32>
    %384 = arith.mulf %383, %380 : vector<48x64xf32>
    %385 = arith.mulf %384, %380 : vector<48x64xf32>
    %386 = arith.mulf %385, %380 : vector<48x64xf32>
    %387 = arith.addf %380, %386 : vector<48x64xf32>
    %cst_193 = arith.constant 0.797884583 : f32
    %388 = vector.broadcast %cst_193 : f32 to vector<48x64xf32>
    %389 = arith.mulf %388, %387 : vector<48x64xf32>
    %390 = math.tanh %389 : vector<48x64xf32>
    %cst_194 = arith.constant 1.000000e+00 : f32
    %391 = vector.broadcast %cst_194 : f32 to vector<48x64xf32>
    %392 = arith.addf %391, %390 : vector<48x64xf32>
    %393 = arith.mulf %382, %392 : vector<48x64xf32>
    %cst_195 = arith.constant dense<0.000000e+00> : vector<48x32xf32>
    %394 = tpu.matmul %393, %217, %cst_195 {dimension_numbers = #tpu.dot_dimension_numbers<[1], [0], [0], [1], [0, 0, 1, 1], [], []>} : vector<48x64xf32>, vector<64x32xf32>, vector<48x32xf32> -> vector<48x32xf32>
    %395 = arith.addf %355, %394 : vector<48x32xf32>
    %396 = vector.broadcast %211 : vector<1x32xf32> to vector<48x32xf32>
    %397 = arith.addf %395, %396 : vector<48x32xf32>
    %c69 = arith.constant 69 : index
    %c0_196 = arith.constant 0 : index
    %398 = vector.load %arg1[%c69, %c0_196] : memref<72x128xf32, #tpu.memory_space<vmem>>, vector<1x32xf32>
    %c70 = arith.constant 70 : index
    %c0_197 = arith.constant 0 : index
    %399 = vector.load %arg1[%c70, %c0_197] : memref<72x128xf32, #tpu.memory_space<vmem>>, vector<1x32xf32>
    %c71 = arith.constant 71 : index
    %c0_198 = arith.constant 0 : index
    %400 = vector.load %arg1[%c71, %c0_198] : memref<72x128xf32, #tpu.memory_space<vmem>>, vector<1x4xf32>
    %401 = vector.extract_strided_slice %397 {offsets = [0, 0], sizes = [1, 32], strides = [1, 1]} : vector<48x32xf32> to vector<1x32xf32>
    %402 = vector.extract_strided_slice %397 {offsets = [24, 0], sizes = [1, 32], strides = [1, 1]} : vector<48x32xf32> to vector<1x32xf32>
    %403 = tpu.concatenate %401, %402 in 0 : vector<1x32xf32>, vector<1x32xf32> -> vector<2x32xf32>
    %cst_199 = arith.constant dense<0.000000e+00> : vector<2xf32>
    %404 = vector.multi_reduction <add>, %403, %cst_199 [1] : vector<2x32xf32> to vector<2xf32>
    %405 = vector.shape_cast %404 : vector<2xf32> to vector<2x1xf32>
    %cst_200 = arith.constant 3.200000e+01 : f32
    %406 = vector.broadcast %cst_200 : f32 to vector<2x1xf32>
    %407 = arith.divf %405, %406 : vector<2x1xf32>
    %408 = vector.broadcast %407 : vector<2x1xf32> to vector<2x32xf32>
    %409 = arith.subf %403, %408 : vector<2x32xf32>
    %410 = arith.mulf %409, %409 : vector<2x32xf32>
    %cst_201 = arith.constant dense<0.000000e+00> : vector<2xf32>
    %411 = vector.multi_reduction <add>, %410, %cst_201 [1] : vector<2x32xf32> to vector<2xf32>
    %412 = vector.shape_cast %411 : vector<2xf32> to vector<2x1xf32>
    %cst_202 = arith.constant 3.200000e+01 : f32
    %413 = vector.broadcast %cst_202 : f32 to vector<2x1xf32>
    %414 = arith.divf %412, %413 : vector<2x1xf32>
    %415 = vector.broadcast %407 : vector<2x1xf32> to vector<2x32xf32>
    %416 = arith.subf %403, %415 : vector<2x32xf32>
    %cst_203 = arith.constant 9.99999996E-13 : f32
    %417 = vector.broadcast %cst_203 : f32 to vector<2x1xf32>
    %418 = arith.addf %414, %417 : vector<2x1xf32>
    %419 = math.rsqrt %418 : vector<2x1xf32>
    %420 = vector.broadcast %419 : vector<2x1xf32> to vector<2x32xf32>
    %421 = arith.mulf %416, %420 : vector<2x32xf32>
    %422 = vector.broadcast %398 : vector<1x32xf32> to vector<2x32xf32>
    %423 = arith.mulf %421, %422 : vector<2x32xf32>
    %424 = vector.broadcast %399 : vector<1x32xf32> to vector<2x32xf32>
    %425 = arith.addf %423, %424 : vector<2x32xf32>
    %c0_204 = arith.constant 0 : index
    %c0_205 = arith.constant 0 : index
    %426 = vector.load %arg5[%c0_204, %c0_205] : memref<2x32xf32, #tpu.memory_space<vmem>>, vector<2x32xf32>
    tpu.vector_store %arg5[%c0_204, %c0_205], %425 {strides = array<i32>} : memref<2x32xf32, #tpu.memory_space<vmem>>, vector<2x32xf32>,
    %c0_206 = arith.constant 0 : index
    %c0_207 = arith.constant 0 : index
    %427 = vector.load %arg3[%c0_206, %c0_207] : memref<33x512xf32, #tpu.memory_space<vmem>>, vector<32x512xf32>
    %c32 = arith.constant 32 : index
    %c0_208 = arith.constant 0 : index
    %428 = vector.load %arg3[%c32, %c0_208] : memref<33x512xf32, #tpu.memory_space<vmem>>, vector<1x512xf32>
    %c0_209 = arith.constant 0 : index
    %c0_210 = arith.constant 0 : index
    %429 = vector.load %arg4[%c0_209, %c0_210] : memref<517x256xf32, #tpu.memory_space<vmem>>, vector<512x256xf32>
    %c512 = arith.constant 512 : index
    %c0_211 = arith.constant 0 : index
    %430 = vector.load %arg4[%c512, %c0_211] : memref<517x256xf32, #tpu.memory_space<vmem>>, vector<1x256xf32>
    %c513 = arith.constant 513 : index
    %c0_212 = arith.constant 0 : index
    %431 = vector.load %arg4[%c513, %c0_212] : memref<517x256xf32, #tpu.memory_space<vmem>>, vector<4x256xf32>
    %cst_213 = arith.constant dense<0.000000e+00> : vector<2x512xf32>
    %432 = tpu.matmul %425, %427, %cst_213 {dimension_numbers = #tpu.dot_dimension_numbers<[1], [0], [0], [1], [0, 0, 1, 1], [], []>} : vector<2x32xf32>, vector<32x512xf32>, vector<2x512xf32> -> vector<2x512xf32>
    %433 = vector.broadcast %428 : vector<1x512xf32> to vector<2x512xf32>
    %434 = arith.addf %432, %433 : vector<2x512xf32>
    %cst_214 = arith.constant 5.000000e-01 : f32
    %435 = vector.broadcast %cst_214 : f32 to vector<2x512xf32>
    %436 = arith.mulf %435, %434 : vector<2x512xf32>
    %437 = math.tanh %436 : vector<2x512xf32>
    %cst_215 = arith.constant 1.000000e+00 : f32
    %438 = vector.broadcast %cst_215 : f32 to vector<2x512xf32>
    %439 = arith.addf %438, %437 : vector<2x512xf32>
    %cst_216 = arith.constant 5.000000e-01 : f32
    %440 = vector.broadcast %cst_216 : f32 to vector<2x512xf32>
    %441 = arith.mulf %440, %439 : vector<2x512xf32>
    %442 = arith.mulf %434, %441 : vector<2x512xf32>
    %cst_217 = arith.constant dense<0.000000e+00> : vector<2x256xf32>
    %443 = tpu.matmul %442, %429, %cst_217 {dimension_numbers = #tpu.dot_dimension_numbers<[1], [0], [0], [1], [0, 0, 1, 1], [], []>} : vector<2x512xf32>, vector<512x256xf32>, vector<2x256xf32> -> vector<2x256xf32>
    %444 = vector.broadcast %430 : vector<1x256xf32> to vector<2x256xf32>
    %445 = arith.addf %443, %444 : vector<2x256xf32>
    %cst_218 = arith.constant 5.000000e-01 : f32
    %446 = vector.broadcast %cst_218 : f32 to vector<2x256xf32>
    %447 = arith.mulf %446, %445 : vector<2x256xf32>
    %448 = math.tanh %447 : vector<2x256xf32>
    %cst_219 = arith.constant 1.000000e+00 : f32
    %449 = vector.broadcast %cst_219 : f32 to vector<2x256xf32>
    %450 = arith.addf %449, %448 : vector<2x256xf32>
    %cst_220 = arith.constant 5.000000e-01 : f32
    %451 = vector.broadcast %cst_220 : f32 to vector<2x256xf32>
    %452 = arith.mulf %451, %450 : vector<2x256xf32>
    %453 = arith.mulf %445, %452 : vector<2x256xf32>
    %cst_221 = arith.constant dense<0.000000e+00> : vector<2x4xf32>
    %454 = tpu.matmul %453, %431, %cst_221 {dimension_numbers = #tpu.dot_dimension_numbers<[1], [1], [0], [0], [0, 0, 1, 0], [], []>} : vector<2x256xf32>, vector<4x256xf32>, vector<2x4xf32> -> vector<2x4xf32>
    %455 = vector.broadcast %400 : vector<1x4xf32> to vector<2x4xf32>
    %456 = arith.addf %454, %455 : vector<2x4xf32>
    %c0_222 = arith.constant 0 : index
    %c0_223 = arith.constant 0 : index
    %457 = vector.load %arg6[%c0_222, %c0_223] : memref<2x4xf32, #tpu.memory_space<vmem>>, vector<2x4xf32>
    tpu.vector_store %arg6[%c0_222, %c0_223], %456 {strides = array<i32>} : memref<2x4xf32, #tpu.memory_space<vmem>>, vector<2x4xf32>,
    return
  }
}

</mosaic_0001>

<bundles_post_ra>
// kernel: _lambda_.1
= control target key start
LH: loop header
LB: loop body
LE: loop exit
PB: predicated region body
PF: predicated region fallthrough
CT: control target
= control target key end

     0   :  { %12 = vsyncpa [#allocation5], 0  ;;  %s10634_s0 = inlined_call_operand.vmem [shape: f32[48,16], index: 0, kind: input, shape index: {}]   ;;  %s10635_s1 = inlined_call_operand.vmem [shape: f32[72,128], index: 1, kind: input, shape index: {}]   ;;  %s10636_s2 = inlined_call_operand.vmem [shape: f32[464,64], index: 2, kind: input, shape index: {}]   ;;  %s10637_s3 = inlined_call_operand.vmem [shape: f32[33,512], index: 3, kind: input, shape index: {}]   ;;  %s10638_s4 = inlined_call_operand.hbm [shape: f32[517,256], index: 4, kind: input, shape index: {}]   ;;  %s10639_s5 = inlined_call_operand.hbm [shape: f32[2,32], index: 5, kind: output, shape index: {0}]   ;;  %s10640_s6 = inlined_call_operand.hbm [shape: f32[2,4], index: 6, kind: output, shape index: {1}]  }
   0x1   :  { %13 = vsyncpa [#allocation6], 0 }
   0x2   :  { %14 = vsyncpa [#allocation9], 0  ;;  %s8481_s21 = smov [#allocation4]  }
   0x3   :  { %s28_s22 = sshll.u32 %s8481_s21, 4  ;;  %s29_s22 = int_to_ptr.vmem [resolvable:$true] %s28_s22 }
   0x4   :  { %s8423_s23 = scalar_lea.vmem %s29_s22, 16640  ;;  %p8428_p1 = scmp.lt.s32.totalorder %s29_s22, %s29_s22 }
   0x5   :  { %p8424_p0 = scmp.ne.s32.totalorder %s29_s22, %s8423_s23  ;;  %p8429_p2 = scmp.lt.s32.totalorder %s8423_s23, %s8423_s23 }
   0x7   :  { %p8430_p3 = por %p8429_p2, %p8428_p1 }
   0x9   :  { %p8431_p4 = pnand %p8430_p3, %p8424_p0 }
   0xb   :  { %8434 = shalt.err (!%p8431_p4)
}
   0xc   :  { %s8482_s24 = smov 256   ;;  %s8483_s25 = smov 16  }
   0xd   :  { %34 = dma.hbm_to_vmem [thread:$0]  %s10638_s4, 16640, %s29_s22, [#allocation5], %s8482_s24, %s8482_s24, %s8483_s25  }
   0xe   :  { %8475 = dma.done.wait [#allocation5], 16640  }
   0xf   :  { %8476 = vsyncadd [#allocation5], 4294950656  ;;  %vm53_vm0 = vcmask 130048   ;;  %v39_v0 = vld [vmem:[%s10636_s2 + $0x8] sm:$0xff]  ;;  %v38_v1 = vld [vmem:[%s10636_s2] sm:$0xff]  ;;  %vm205_vm1 = vcmask 261120  }
  0x10   :  { %v47_v2 = vld [vmem:[%s10634_s0] sm:$0xff]  ;;  %7410 = vmatprep.subr.mxu0 %v39_v0  ;;  %v48_v3 = vld [vmem:[%s10634_s0 + $0x8] sm:$0xff]  ;;  %v49_v4 = vld [vmem:[%s10634_s0 + $0x10] sm:$0xff]  ;;  %vm8485_vm2 = vmmov 0   ;;  %s8486_s13 = smov 120   ;;  %vm620_vm3 = vcmask 64512  }
  0x11   :  { %7414 = vmatprep.mubr.msk.f32.mxu0 %vm53_vm0, %v47_v2  ;;  %7411 = vmatpush3.msra.mxu0 %v39_v0  ;;  %v50_v5 = vld [vmem:[%s10634_s0 + $0x18] sm:$0xff]  ;;  %v51_v6 = vld [vmem:[%s10634_s0 + $0x20] sm:$0xff]  ;;  %v52_v7 = vld [vmem:[%s10634_s0 + $0x28] sm:$0xff]  ;;  %s8487_s14 = smov 112   ;;  %s8488_s15 = smov 104   ;;  %vm719_vm4 = vcmask 195584  }
  0x12   :  { %7412 = vmatprep.subr.mxu0 %v38_v1  ;;  %v40_v9 = vld [vmem:[%s10635_s1] sm:$0xff]  ;;  %v41_v10 = vld [vmem:[%s10635_s1 + $0x8] sm:$0xff]  ;;  %v43_v13 = vld [vmem:[%s10635_s1 + $0x18] sm:$0xff]  ;;  %s8489_s20 = smov 8   ;;  %s8490_s29 = smov 24   ;;  %vm1994_vm5 = vcmask 130112  }
  0x13   :  { %7413 = vmatpush3.msra.mxu0 %v38_v1  ;;  %v42_v15 = vld [vmem:[%s10635_s1 + $0x10] sm:$0xff]  ;;  %v45_v21 = vld [vmem:[%s10635_s1 + $0x28] sm:$0xff]  ;;  %v44_v23 = vld [vmem:[%s10635_s1 + $0x20] sm:$0xff]  ;;  %vm2108_vm6 = vcmask 195712   ;;  %vm2222_vm7 = vcmask 261312   ;;  %vm3064_vm8 = vcmask 523264  }
  0x14   :  { %7415 = vmatmul.mubr.msk.f32.vlgmr.msra.gmra.mxu0 %vm53_vm0, %v48_v3  ;;  %v184_v62 = vld [vmem:[%s10636_s2 + $0x48] sm:$0xff]  ;;  %v183_v63 = vld [vmem:[%s10636_s2 + $0x40] sm:$0xff]  ;;  %v182_v2 = vld [vmem:[%s10636_s2 + $0x38] sm:$0xff]  ;;  %vm6196_vm9 = vcmask 1040384   ;;  %vm6198_vm10 = vcmask 254976  }
  0x15   :  { %7417 = vmatprep.mubr.msk.f32.mxu0 %vm53_vm0, %v49_v4  ;;  %v180_v0 = vld [vmem:[%s10636_s2 + $0x28] sm:$0xff]  ;;  %7440 = vmatprep.subr.mxu0 %v184_v62  ;;  %v179_v1 = vld [vmem:[%s10636_s2 + $0x20] sm:$0xff]  ;;  %v178_v3 = vld [vmem:[%s10636_s2 + $0x18] sm:$0xff] }
  0x16   :  { %7423 = vmatprep.subr.mxu1 %v180_v0  ;;  %7441 = vmatpush3.msra.mxu0 %v184_v62  ;;  %v181_v4 = vld [vmem:[%s10636_s2 + $0x30] sm:$0xff] }
  0x17   :  { %7424 = vmatpush3.msra.mxu1 %v180_v0  ;;  %7442 = vmatprep.subr.mxu0 %v183_v63  ;;  %v6848_v62 = vld [vmem:[%s10635_s1 + $0x34] ss:$0 sm:$0xff] }
  0x18   :  { %7418 = vmatmul.mubr.msk.f32.gmra.mxu0 %vm53_vm0, %v50_v5  ;;  %7425 = vmatprep.subr.mxu1 %v179_v1  ;;  %v177_v5 = vld [vmem:[%s10636_s2 + $0x10] sm:$0xff] }
  0x19   :  { %7420 = vmatprep.mubr.msk.f32.mxu0 %vm53_vm0, %v51_v6  ;;  %7443 = vmatpush3.msra.mxu0 %v183_v63  ;;  %v188_v6 = vld [vmem:[%s10636_s2 + $0x68] sm:$0xff] }
  0x1a   :  { %7426 = vmatpush3.msra.mxu1 %v179_v1  ;;  %7444 = vmatprep.subr.mxu0 %v182_v2 }
  0x1b   :  { %7427 = vmatprep.subr.mxu1 %v178_v3  ;;  %7445 = vmatpush3.msra.mxu0 %v182_v2 }
  0x1c   :  { %7421 = vmatmul.mubr.msk.f32.gmra.mxu0 %vm53_vm0, %v52_v7  ;;  %7428 = vmatpush3.msra.mxu1 %v178_v3 }
  0x1d   :  { %7446 = vmatprep.subr.mxu0 %v181_v4  ;;  %7429 = vmatprep.subr.mxu1 %v177_v5 }
  0x1e   :  { %7447 = vmatpush3.msra.mxu0 %v181_v4  ;;  %7430 = vmatpush3.msra.mxu1 %v177_v5 }
  0x1f   :  { %7457 = vmatprep.subr.mxu1 %v188_v6 }
  0xd4   :  { %v7416_v8 = vpop.f32.mrf.mxu0 }
  0xd5   :  { %v8576_v16 = vadd.f32 %v7416_v8, %v41_v10 }
  0xd6   :  { %v138_v11 = vpop.f32.mrf.mxu0 }
  0xd7   :  { %v8568_v12 = vadd.f32 %v138_v11, %v40_v9  ;;  %v209_v25 = vsel %vm205_vm1, %v8576_v16, 0.0 }
  0xd8   :  { %v7419_v14 = vpop.f32.mrf.mxu0 }
  0xd9   :  { %v206_v17 = vsel %vm205_vm1, %v8568_v12, 0.0  ;;  %v8580_v19 = vadd.f32 %v7419_v14, %v43_v13 }
  0xda   :  { %v148_v18 = vpop.f32.mrf.mxu0  ;;  %207 = vadd.xlane.f32.xlu0 %v206_v17 }
  0xdb   :  { %v8582_v20 = vadd.f32 %v148_v18, %v42_v15  ;;  %v215_v29 = vsel %vm205_vm1, %v8580_v19, 0.0 }
  0xdc   :  { %v7422_v22 = vpop.f32.mrf.mxu0 }
  0xdd   :  { %v212_v24 = vsel %vm205_vm1, %v8582_v20, 0.0  ;;  %v8594_v27 = vadd.f32 %v7422_v22, %v45_v21 }
  0xde   :  { %v158_v26 = vpop.f32.mrf.mxu0  ;;  %213 = vadd.xlane.f32.xlu1 %v212_v24  ;;  %210 = vadd.xlane.f32.xlu0 %v209_v25 }
  0xdf   :  { %v8596_v28 = vadd.f32 %v158_v26, %v44_v23  ;;  %v221_v31 = vsel %vm205_vm1, %v8594_v27, 0.0 }
  0xe1   :  { %v218_v30 = vsel %vm205_vm1, %v8596_v28, 0.0 }
  0xe2   :  { %216 = vadd.xlane.f32.xlu1 %v215_v29  ;;  %219 = vadd.xlane.f32.xlu0 %v218_v30 }
  0xe6   :  { %222 = vadd.xlane.f32.xlu1 %v221_v31 }
 0x163   :  { %v208_v32 = vpop.xlane.xlu0 %207 }
 0x164   :  { %v225_v33 = vmul.f32 0.03125, %v208_v32  ;;  %v6839_v32 = vld [vmem:[%s10635_s1 + $0x31] ss:$0 sm:$0xff] }
 0x166   :  { %v8605_v34 = vsub.f32 %v8568_v12, %v225_v33 }
 0x167   :  { %v214_v35 = vpop.xlane.xlu1 %213  ;;  %v211_v36 = vpop.xlane.xlu0 %210 }
 0x168   :  { %v227_v37 = vmul.f32 0.03125, %v214_v35  ;;  %v226_v38 = vmul.f32 0.03125, %v211_v36  ;;  %v237_v39 = vmul.f32 %v8605_v34, %v8605_v34  ;;  %v6840_v35 = vld [vmem:[%s10635_s1 + $0x32] ss:$0 sm:$0xff] }
 0x16a   :  { %v8610_v40 = vsub.f32 %v8582_v20, %v227_v37  ;;  %v8613_v41 = vsub.f32 %v8576_v16, %v226_v38  ;;  %v243_v42 = vsel %vm205_vm1, %v237_v39, 0.0 }
 0x16b   :  { %v217_v43 = vpop.xlane.xlu1 %216  ;;  %244 = vadd.xlane.f32.xlu0 %v243_v42  ;;  %v220_v44 = vpop.xlane.xlu0 %219 }
 0x16c   :  { %v228_v45 = vmul.f32 0.03125, %v217_v43  ;;  %v229_v46 = vmul.f32 0.03125, %v220_v44  ;;  %v239_v47 = vmul.f32 %v8610_v40, %v8610_v40  ;;  %v238_v48 = vmul.f32 %v8613_v41, %v8613_v41 }
 0x16e   :  { %v8621_v49 = vsub.f32 %v8580_v19, %v228_v45  ;;  %v8624_v50 = vsub.f32 %v8596_v28, %v229_v46  ;;  %v249_v51 = vsel %vm205_vm1, %v239_v47, 0.0  ;;  %v246_v52 = vsel %vm205_vm1, %v238_v48, 0.0 }
 0x16f   :  { %v223_v53 = vpop.xlane.xlu1 %222  ;;  %250 = vadd.xlane.f32.xlu0 %v249_v51  ;;  %247 = vadd.xlane.f32.xlu1 %v246_v52 }
 0x170   :  { %v230_v54 = vmul.f32 0.03125, %v223_v53  ;;  %v240_v55 = vmul.f32 %v8621_v49, %v8621_v49  ;;  %v241_v56 = vmul.f32 %v8624_v50, %v8624_v50 }
 0x172   :  { %v8633_v57 = vsub.f32 %v8594_v27, %v230_v54  ;;  %v252_v58 = vsel %vm205_vm1, %v240_v55, 0.0  ;;  %v255_v59 = vsel %vm205_vm1, %v241_v56, 0.0 }
 0x173   :  { %253 = vadd.xlane.f32.xlu1 %v252_v58  ;;  %256 = vadd.xlane.f32.xlu0 %v255_v59  ;;  %v186_v58 = vld [vmem:[%s10636_s2 + $0x58] sm:$0xff] }
 0x174   :  { %v242_v60 = vmul.f32 %v8633_v57, %v8633_v57 }
 0x176   :  { %v258_v61 = vsel %vm205_vm1, %v242_v60, 0.0  ;;  %v8484_v60 = vmov 0.0  }
 0x177   :  { %259 = vadd.xlane.f32.xlu1 %v258_v61  ;;  %7474 = vmatprep.subr.mxu0 %v8484_v60  ;;  %v8715_v61 = vld [vmem:[%s10635_s1 + $0x33] ss:$0 sm:$0xff] }
 0x1f4   :  { %v245_v7 = vpop.xlane.xlu0 %244 }
 0x1f5   :  { %v261_v8 = vmul.f32 0.03125, %v245_v7 }
 0x1f7   :  { %v267_v9 = vadd.f32 1e-12, %v261_v8 }
 0x1f8   :  { %v248_v10 = vpop.xlane.xlu1 %247  ;;  %v251_v11 = vpop.xlane.xlu0 %250 }
 0x1f9   :  { %8135 = vrsqrt.f32 %v267_v9  ;;  %v262_v13 = vmul.f32 0.03125, %v248_v10  ;;  %v263_v14 = vmul.f32 0.03125, %v251_v11 }
 0x1fb   :  { %v268_v15 = vadd.f32 1e-12, %v262_v13  ;;  %v269_v17 = vadd.f32 1e-12, %v263_v14 }
 0x1fc   :  { %v254_v18 = vpop.xlane.xlu1 %253  ;;  %v257_v21 = vpop.xlane.xlu0 %256 }
 0x1fd   :  { %8137 = vrsqrt.f32 %v268_v15  ;;  %v264_v22 = vmul.f32 0.03125, %v254_v18  ;;  %v265_v23 = vmul.f32 0.03125, %v257_v21 }
 0x1fe   :  { %8139 = vrsqrt.f32 %v269_v17 }
 0x1ff   :  { %v270_v24 = vadd.f32 1e-12, %v264_v22  ;;  %v271_v25 = vadd.f32 1e-12, %v265_v23 }
 0x200   :  { %v260_v26 = vpop.xlane.xlu1 %259 }
 0x201   :  { %8141 = vrsqrt.f32 %v270_v24  ;;  %v266_v29 = vmul.f32 0.03125, %v260_v26 }
 0x202   :  { %8143 = vrsqrt.f32 %v271_v25 }
 0x203   :  { %v272_v30 = vadd.f32 1e-12, %v266_v29 }
 0x205   :  { %8145 = vrsqrt.f32 %v272_v30  ;;  %v6855_v30 = vld [vmem:[%s10635_s1 + $0x35] ss:$0 sm:$0xff] }
 0x206   :  { %v8136_v31 = vpop.eup %8135 }
 0x207   :  { %v279_v33 = vmul.f32 %v8136_v31, %v8605_v34 }
 0x209   :  { %v289_v36 = vmul.f32 %v6839_v32, %v279_v33 }
 0x20a   :  { %v8138_v37 = vpop.eup %8137 }
 0x20b   :  { %v8140_v38 = vpop.eup %8139  ;;  %v299_v39 = vadd.f32 %v6840_v35, %v289_v36  ;;  %v280_v42 = vmul.f32 %v8138_v37, %v8613_v41 }
 0x20c   :  { %v281_v43 = vmul.f32 %v8140_v38, %v8610_v40  ;;  %v187_v40 = vld [vmem:[%s10636_s2 + $0x60] sm:$0xff] }
 0x20d   :  { %7431 = vmatprep.mubr.msk.f32.mxu1 %vm205_vm1, %v299_v39  ;;  %7448 = vmatprep.mubr.msk.f32.mxu0 %vm205_vm1, %v299_v39  ;;  %v290_v44 = vmul.f32 %v6839_v32, %v280_v42 }
 0x20e   :  { %v8142_v45 = vpop.eup %8141  ;;  %v291_v46 = vmul.f32 %v6839_v32, %v281_v43 }
 0x20f   :  { %v8144_v34 = vpop.eup %8143  ;;  %v300_v47 = vadd.f32 %v6840_v35, %v290_v44  ;;  %v282_v48 = vmul.f32 %v8142_v45, %v8621_v49 }
 0x210   :  { %v301_v51 = vadd.f32 %v6840_v35, %v291_v46  ;;  %v283_v52 = vmul.f32 %v8144_v34, %v8624_v50 }
 0x211   :  { %7432 = vmatmul.mubr.msk.f32.vlgmr.msra.gmra.mxu1 %vm205_vm1, %v300_v47  ;;  %7449 = vmatmul.mubr.msk.f32.vlgmr.msra.gmra.mxu0 %vm205_vm1, %v300_v47  ;;  %v292_v41 = vmul.f32 %v6839_v32, %v282_v48 }
 0x212   :  { %v8146_v53 = vpop.eup %8145  ;;  %7434 = vmatprep.mubr.msk.f32.mxu1 %vm205_vm1, %v301_v51  ;;  %7451 = vmatprep.mubr.msk.f32.mxu0 %vm205_vm1, %v301_v51  ;;  %v293_v54 = vmul.f32 %v6839_v32, %v283_v52 }
 0x213   :  { %v302_v55 = vadd.f32 %v6840_v35, %v292_v41  ;;  %7458 = vmatpush3.msra.mxu1 %v188_v6  ;;  %v284_v49 = vmul.f32 %v8146_v53, %v8633_v57  ;;  %v185_v57 = vld [vmem:[%s10636_s2 + $0x50] sm:$0xff] }
 0x214   :  { %v303_v50 = vadd.f32 %v6840_v35, %v293_v54  ;;  %7459 = vmatprep.subr.mxu1 %v187_v40 }
 0x215   :  { %7435 = vmatmul.mubr.msk.f32.gmra.mxu1 %vm205_vm1, %v302_v55  ;;  %7452 = vmatmul.mubr.msk.f32.gmra.mxu0 %vm205_vm1, %v302_v55  ;;  %v294_v56 = vmul.f32 %v6839_v32, %v284_v49 }
 0x216   :  { %7437 = vmatprep.mubr.msk.f32.mxu1 %vm205_vm1, %v303_v50  ;;  %7454 = vmatprep.mubr.msk.f32.mxu0 %vm205_vm1, %v303_v50 }
 0x217   :  { %7460 = vmatpush3.msra.mxu1 %v187_v40  ;;  %v304_v59 = vadd.f32 %v6840_v35, %v294_v56 }
 0x218   :  { %7461 = vmatprep.subr.mxu1 %v186_v58 }
 0x219   :  { %7438 = vmatmul.mubr.msk.f32.gmra.mxu1 %vm205_vm1, %v304_v59  ;;  %7455 = vmatmul.mubr.msk.f32.gmra.mxu0 %vm205_vm1, %v304_v59 }
 0x21a   :  { %7462 = vmatpush3.msra.mxu1 %v186_v58  ;;  %7465 = vmatprep.mubr.msk.f32.mxu1 %vm205_vm1, %v299_v39 }
 0x21b   :  { %7463 = vmatprep.subr.mxu1 %v185_v57  ;;  %7480 = vmatprep.mubr.msk.f32.mxu0 %vm8485_vm2, %v8484_v60 }
 0x21c   :  { %7464 = vmatpush3.msra.mxu1 %v185_v57 }
 0x21d   :  { %7466 = vmatmul.mubr.msk.f32.vlgmr.msra.gmra.mxu1 %vm205_vm1, %v300_v47  ;;  %7489 = vmatprep.subr.mxu1 %v8484_v60 }
 0x21e   :  { %7468 = vmatprep.mubr.msk.f32.mxu1 %vm205_vm1, %v301_v51 }
 0x221   :  { %7469 = vmatmul.mubr.msk.f32.gmra.mxu1 %vm205_vm1, %v302_v55 }
 0x222   :  { %7471 = vmatprep.mubr.msk.f32.mxu1 %vm205_vm1, %v303_v50 }
 0x225   :  { %7472 = vmatmul.mubr.msk.f32.gmra.mxu1 %vm205_vm1, %v304_v59 }
 0x226   :  { %7495 = vmatprep.mubr.msk.f32.mxu1 %vm8485_vm2, %v8484_v60 }
 0x2d1   :  { %v7433_v63 = vpop.f32.mrf.mxu1  ;;  %v7450_v0 = vpop.f32.mrf.mxu0 }
 0x2d2   :  { %v399_v1 = vadd.f32 %v7433_v63, %v8715_v61  ;;  %v498_v2 = vadd.f32 %v7450_v0, %v6848_v62 }
 0x2d3   :  { %v492_v3 = vpop.f32.mrf.mxu0  ;;  %v393_v8 = vpop.f32.mrf.mxu1 }
 0x2d4   :  { %731 = vrot.lane.b32.xlu1 %v498_v2, %s8486_s13  ;;  %725 = vrot.lane.b32.xlu0 %v399_v1, %s8486_s13  ;;  %v493_v7 = vadd.f32 %v6848_v62, %v492_v3  ;;  %v394_v9 = vadd.f32 %v8715_v61, %v393_v8 }
 0x2d5   :  { %v7453_v4 = vpop.f32.mrf.mxu0  ;;  %v7436_v10 = vpop.f32.mrf.mxu1 }
 0x2d6   :  { %v8759_v17 = vadd.f32 %v7453_v4, %v6848_v62  ;;  %v8765_v21 = vadd.f32 %v7436_v10, %v8715_v61 }
 0x2d7   :  { %v502_v5 = vpop.f32.mrf.mxu0  ;;  %v403_v11 = vpop.f32.mrf.mxu1 }
 0x2d8   :  { %v503_v6 = vadd.f32 %v6848_v62, %v502_v5  ;;  %839 = vrot.lane.b32.xlu1 %v498_v2, %s8487_s14  ;;  %947 = vrot.lane.b32.xlu0 %v498_v2, %s8488_s15  ;;  %v404_v13 = vadd.f32 %v8715_v61, %v403_v11 }
 0x2d9   :  { %v7456_v14 = vpop.f32.mrf.mxu0  ;;  %v7439_v18 = vpop.f32.mrf.mxu1 }
 0x2da   :  { %7475 = vmatpush3.xpose.msk.msra.mxu0 %vm620_vm3, %v503_v6  ;;  %v8754_v15 = vadd.f32 %v7456_v14, %v6848_v62  ;;  %v8785_v26 = vadd.f32 %v7439_v18, %v8715_v61 }
 0x2db   :  { %7476 = vmatprep.subr.mxu0 %v8484_v60  ;;  %v413_v22 = vpop.f32.mrf.mxu1  ;;  %v512_v23 = vpop.f32.mrf.mxu0 }
 0x2dc   :  { %729 = vrot.lane.b32.xlu1 %v493_v7, %s8486_s13  ;;  %733 = vrot.lane.b32.xlu0 %v503_v6, %s8486_s13  ;;  %v8772_v24 = vadd.f32 %v8715_v61, %v413_v22  ;;  %v8774_v25 = vadd.f32 %v6848_v62, %v512_v23 }
 0x2dd   :  { %v7467_v29 = vpop.f32.mrf.mxu1 }
 0x2de   :  { %7477 = vmatpush3.xpose.msk.msra.mxu0 %vm620_vm3, %v498_v2  ;;  %v8806_v31 = vadd.f32 %v7467_v29, %v6855_v30 }
 0x2df   :  { %7478 = vmatprep.subr.mxu0 %v8484_v60  ;;  %v591_v32 = vpop.f32.mrf.mxu1 }
 0x2e0   :  { %723 = vrot.lane.b32.xlu1 %v394_v9, %s8486_s13  ;;  %837 = vrot.lane.b32.xlu0 %v493_v7, %s8487_s14  ;;  %v8822_v37 = vadd.f32 %v6855_v30, %v591_v32 }
 0x2e1   :  { %v7470_v33 = vpop.f32.mrf.mxu1 }
 0x2e2   :  { %7479 = vmatpush3.xpose.msk.msra.mxu0 %vm620_vm3, %v493_v7  ;;  %v8816_v35 = vadd.f32 %v7470_v33, %v6855_v30 }
 0x2e3   :  { %7504 = vmatprep.subr.mxu0 %v8484_v60  ;;  %v601_v36 = vpop.f32.mrf.mxu1 }
 0x2e4   :  { %945 = vrot.lane.b32.xlu1 %v493_v7, %s8488_s15  ;;  %831 = vrot.lane.b32.xlu0 %v394_v9, %s8487_s14  ;;  %v8824_v38 = vadd.f32 %v6855_v30, %v601_v36 }
 0x2e5   :  { %7481 = vmatmul.mubr.msk.f32.vlgmr.msra.gmra.mxu0 %vm620_vm3, %v394_v9  ;;  %v7473_v39 = vpop.f32.mrf.mxu1 }
 0x2e6   :  { %7483 = vmatprep.mubr.msk.f32.mxu0 %vm8485_vm2, %v8484_v60  ;;  %v8834_v42 = vadd.f32 %v7473_v39, %v6855_v30 }
 0x2e7   :  { %v611_v43 = vpop.f32.mrf.mxu1 }
 0x2e8   :  { %939 = vrot.lane.b32.xlu1 %v394_v9, %s8488_s15  ;;  %841 = vrot.lane.b32.xlu0 %v503_v6, %s8487_s14  ;;  %v8846_v44 = vadd.f32 %v6855_v30, %v611_v43 }
 0x2e9   :  { %7484 = vmatmul.mubr.msk.f32.gmra.mxu0 %vm620_vm3, %v399_v1 }
 0x2ea   :  { %7486 = vmatprep.mubr.msk.f32.mxu0 %vm8485_vm2, %v8484_v60 }
 0x2ec   :  { %833 = vrot.lane.b32.xlu1 %v399_v1, %s8487_s14  ;;  %941 = vrot.lane.b32.xlu0 %v399_v1, %s8488_s15 }
 0x2ed   :  { %7487 = vmatmul.mubr.msk.f32.gmra.mxu0 %vm620_vm3, %v404_v13 }
 0x2ee   :  { %7510 = vmatprep.mubr.msk.f32.mxu0 %vm8485_vm2, %v8484_v60 }
 0x2f0   :  { %949 = vrot.lane.b32.xlu1 %v503_v6, %s8488_s15  ;;  %835 = vrot.lane.b32.xlu0 %v404_v13, %s8487_s14 }
 0x2f4   :  { %727 = vrot.lane.b32.xlu1 %v404_v13, %s8486_s13  ;;  %1159 = vrot.lane.b32.xlu0 %v8754_v15, %s8486_s13 }
 0x2f8   :  { %943 = vrot.lane.b32.xlu1 %v404_v13, %s8488_s15  ;;  %1155 = vrot.lane.b32.xlu0 %v8759_v17, %s8486_s13 }
 0x2fc   :  { %1149 = vrot.lane.b32.xlu1 %v8765_v21, %s8486_s13  ;;  %1267 = vrot.lane.b32.xlu0 %v8754_v15, %s8487_s14 }
 0x300   :  { %1157 = vrot.lane.b32.xlu1 %v8774_v25, %s8486_s13  ;;  %1151 = vrot.lane.b32.xlu0 %v8772_v24, %s8486_s13 }
 0x304   :  { %1375 = vrot.lane.b32.xlu1 %v8754_v15, %s8488_s15  ;;  %1373 = vrot.lane.b32.xlu0 %v8774_v25, %s8488_s15 }
 0x308   :  { %1153 = vrot.lane.b32.xlu1 %v8785_v26, %s8486_s13  ;;  %1263 = vrot.lane.b32.xlu0 %v8759_v17, %s8487_s14 }
 0x30c   :  { %1265 = vrot.lane.b32.xlu1 %v8774_v25, %s8487_s14  ;;  %1257 = vrot.lane.b32.xlu0 %v8765_v21, %s8487_s14 }
 0x310   :  { %1371 = vrot.lane.b32.xlu1 %v8759_v17, %s8488_s15  ;;  %1259 = vrot.lane.b32.xlu0 %v8772_v24, %s8487_s14 }
 0x314   :  { %1365 = vrot.lane.b32.xlu1 %v8765_v21, %s8488_s15  ;;  %1261 = vrot.lane.b32.xlu0 %v8785_v26, %s8487_s14 }
 0x318   :  { %1367 = vrot.lane.b32.xlu1 %v8772_v24, %s8488_s15  ;;  %1886 = vrot.lane.b32.xlu0 %v8806_v31, %s8486_s13 }
 0x31c   :  { %1369 = vrot.lane.b32.xlu1 %v8785_v26, %s8488_s15  ;;  %2000 = vrot.lane.b32.xlu0 %v8806_v31, %s8487_s14 }
 0x320   :  { %2321 = vrot.lane.b32.xlu1 %v8816_v35, %s8486_s13  ;;  %2114 = vrot.lane.b32.xlu0 %v8806_v31, %s8488_s15 }
 0x324   :  { %1888 = vrot.lane.b32.xlu1 %v8824_v38, %s8486_s13  ;;  %1884 = vrot.lane.b32.xlu0 %v8822_v37, %s8486_s13 }
 0x328   :  { %2002 = vrot.lane.b32.xlu1 %v8824_v38, %s8487_s14  ;;  %1998 = vrot.lane.b32.xlu0 %v8822_v37, %s8487_s14 }
 0x32c   :  { %2551 = vrot.lane.b32.xlu1 %v8834_v42, %s8488_s15  ;;  %2112 = vrot.lane.b32.xlu0 %v8822_v37, %s8488_s15 }
 0x330   :  { %2116 = vrot.lane.b32.xlu0 %v8824_v38, %s8488_s15 }
 0x334   :  { %2325 = vrot.lane.b32.xlu0 %v8834_v42, %s8486_s13 }
 0x338   :  { %2438 = vrot.lane.b32.xlu0 %v8834_v42, %s8487_s14 }
 0x33c   :  { %2323 = vrot.lane.b32.xlu0 %v8846_v44, %s8486_s13 }
 0x346   :  { %v732_v45 = vpop.permute.xlu1 %731  ;;  %v726_v46 = vpop.permute.xlu0 %725 }
 0x34a   :  { %v840_v34 = vpop.permute.xlu1 %839  ;;  %v948_v47 = vpop.permute.xlu0 %947 }
 0x34e   :  { %v730_v48 = vpop.permute.xlu1 %729  ;;  %v734_v51 = vpop.permute.xlu0 %733 }
 0x34f   :  { %7490 = vmatpush3.xpose.msk.msra.mxu1 %vm620_vm3, %v734_v51 }
 0x350   :  { %7491 = vmatprep.subr.mxu1 %v8484_v60 }
 0x352   :  { %v724_v52 = vpop.permute.xlu1 %723  ;;  %v838_v41 = vpop.permute.xlu0 %837 }
 0x353   :  { %7492 = vmatpush3.xpose.msk.msra.mxu1 %vm620_vm3, %v732_v45 }
 0x354   :  { %7493 = vmatprep.subr.mxu1 %v8484_v60 }
 0x356   :  { %v946_v40 = vpop.permute.xlu1 %945  ;;  %v832_v53 = vpop.permute.xlu0 %831 }
 0x357   :  { %7494 = vmatpush3.xpose.msk.msra.mxu1 %vm620_vm3, %v730_v48 }
 0x358   :  { %7519 = vmatprep.subr.mxu1 %v8484_v60 }
 0x35a   :  { %v940_v54 = vpop.permute.xlu1 %939  ;;  %7496 = vmatmul.mubr.msk.f32.vlgmr.msra.gmra.mxu1 %vm620_vm3, %v724_v52  ;;  %v842_v55 = vpop.permute.xlu0 %841 }
 0x35b   :  { %7505 = vmatpush3.xpose.msk.msra.mxu0 %vm620_vm3, %v842_v55  ;;  %7498 = vmatprep.mubr.msk.f32.mxu1 %vm8485_vm2, %v8484_v60 }
 0x35c   :  { %7506 = vmatprep.subr.mxu0 %v8484_v60 }
 0x35e   :  { %v834_v49 = vpop.permute.xlu1 %833  ;;  %7499 = vmatmul.mubr.msk.f32.gmra.mxu1 %vm620_vm3, %v726_v46  ;;  %v942_v50 = vpop.permute.xlu0 %941 }
 0x35f   :  { %7507 = vmatpush3.xpose.msk.msra.mxu0 %vm620_vm3, %v840_v34  ;;  %7501 = vmatprep.mubr.msk.f32.mxu1 %vm8485_vm2, %v8484_v60 }
 0x360   :  { %7508 = vmatprep.subr.mxu0 %v8484_v60 }
 0x362   :  { %v950_v56 = vpop.permute.xlu1 %949  ;;  %v836_v58 = vpop.permute.xlu0 %835 }
 0x363   :  { %7509 = vmatpush3.xpose.msk.msra.mxu0 %vm620_vm3, %v838_v41  ;;  %7520 = vmatpush3.xpose.msk.msra.mxu1 %vm620_vm3, %v950_v56 }
 0x364   :  { %7521 = vmatprep.subr.mxu1 %v8484_v60  ;;  %7534 = vmatprep.subr.mxu0 %v8484_v60 }
 0x366   :  { %v728_v59 = vpop.permute.xlu1 %727  ;;  %7511 = vmatmul.mubr.msk.f32.vlgmr.msra.gmra.mxu0 %vm620_vm3, %v832_v53  ;;  %v1160_v57 = vpop.permute.xlu0 %1159 }
 0x367   :  { %7502 = vmatmul.mubr.msk.f32.gmra.mxu1 %vm620_vm3, %v728_v59  ;;  %7535 = vmatpush3.xpose.msk.msra.mxu0 %vm620_vm3, %v8754_v15 }
 0x368   :  { %7522 = vmatpush3.xpose.msk.msra.mxu1 %vm620_vm3, %v948_v47  ;;  %7513 = vmatprep.mubr.msk.f32.mxu0 %vm8485_vm2, %v8484_v60 }
 0x369   :  { %7523 = vmatprep.subr.mxu1 %v8484_v60  ;;  %7536 = vmatprep.subr.mxu0 %v8484_v60 }
 0x36a   :  { %v944_v61 = vpop.permute.xlu1 %943  ;;  %7514 = vmatmul.mubr.msk.f32.gmra.mxu0 %vm620_vm3, %v834_v49  ;;  %v1156_v62 = vpop.permute.xlu0 %1155  ;;  %7525 = vmatprep.mubr.msk.f32.mxu1 %vm8485_vm2, %v8484_v60 }
 0x36b   :  { %7537 = vmatpush3.xpose.msk.msra.mxu0 %vm620_vm3, %v8774_v25  ;;  %7516 = vmatprep.mubr.msk.f32.mxu0 %vm8485_vm2, %v8484_v60 }
 0x36c   :  { %7524 = vmatpush3.xpose.msk.msra.mxu1 %vm620_vm3, %v946_v40  ;;  %7538 = vmatprep.subr.mxu0 %v8484_v60 }
 0x36d   :  { %7549 = vmatprep.subr.mxu1 %v8484_v60 }
 0x36e   :  { %v1150_v63 = vpop.permute.xlu1 %1149  ;;  %7517 = vmatmul.mubr.msk.f32.gmra.mxu0 %vm620_vm3, %v836_v58  ;;  %v1268_v0 = vpop.permute.xlu0 %1267 }
 0x36f   :  { %7526 = vmatmul.mubr.msk.f32.vlgmr.msra.gmra.mxu1 %vm620_vm3, %v940_v54  ;;  %7539 = vmatpush3.xpose.msk.msra.mxu0 %vm620_vm3, %v8759_v17 }
 0x370   :  { %7550 = vmatpush3.xpose.msk.msra.mxu1 %vm620_vm3, %v1160_v57  ;;  %7528 = vmatprep.mubr.msk.f32.mxu1 %vm8485_vm2, %v8484_v60 }
 0x371   :  { %7540 = vmatprep.mubr.msk.f32.mxu0 %vm8485_vm2, %v8484_v60  ;;  %7551 = vmatprep.subr.mxu1 %v8484_v60 }
 0x372   :  { %v1158_v1 = vpop.permute.xlu1 %1157  ;;  %7541 = vmatmul.mubr.msk.f32.vlgmr.msra.gmra.mxu0 %vm620_vm3, %v8765_v21  ;;  %7564 = vmatprep.subr.mxu0 %v8484_v60  ;;  %v1152_v2 = vpop.permute.xlu0 %1151 }
 0x373   :  { %7529 = vmatmul.mubr.msk.f32.gmra.mxu1 %vm620_vm3, %v942_v50  ;;  %7565 = vmatpush3.xpose.msk.msra.mxu0 %vm620_vm3, %v1268_v0 }
 0x374   :  { %7552 = vmatpush3.xpose.msk.msra.mxu1 %vm620_vm3, %v1158_v1  ;;  %7531 = vmatprep.mubr.msk.f32.mxu1 %vm8485_vm2, %v8484_v60 }
 0x375   :  { %7543 = vmatprep.mubr.msk.f32.mxu0 %vm8485_vm2, %v8484_v60  ;;  %7553 = vmatprep.subr.mxu1 %v8484_v60 }
 0x376   :  { %v1376_v3 = vpop.permute.xlu1 %1375  ;;  %7544 = vmatmul.mubr.msk.f32.gmra.mxu0 %vm620_vm3, %v8772_v24  ;;  %v1374_v4 = vpop.permute.xlu0 %1373  ;;  %7566 = vmatprep.subr.mxu0 %v8484_v60 }
 0x377   :  { %7532 = vmatmul.mubr.msk.f32.gmra.mxu1 %vm620_vm3, %v944_v61  ;;  %7546 = vmatprep.mubr.msk.f32.mxu0 %vm8485_vm2, %v8484_v60 }
 0x378   :  { %7554 = vmatpush3.xpose.msk.msra.mxu1 %vm620_vm3, %v1156_v62  ;;  %7555 = vmatprep.mubr.msk.f32.mxu1 %vm8485_vm2, %v8484_v60 }
 0x379   :  { %7579 = vmatprep.subr.mxu1 %v8484_v60 }
 0x37a   :  { %v1154_v5 = vpop.permute.xlu1 %1153  ;;  %7547 = vmatmul.mubr.msk.f32.gmra.mxu0 %vm620_vm3, %v8785_v26  ;;  %v1264_v6 = vpop.permute.xlu0 %1263 }
 0x37b   :  { %7556 = vmatmul.mubr.msk.f32.vlgmr.msra.gmra.mxu1 %vm620_vm3, %v1150_v63  ;;  %7570 = vmatprep.mubr.msk.f32.mxu0 %vm8485_vm2, %v8484_v60 }
 0x37c   :  { %7580 = vmatpush3.xpose.msk.msra.mxu1 %vm620_vm3, %v1376_v3  ;;  %7558 = vmatprep.mubr.msk.f32.mxu1 %vm8485_vm2, %v8484_v60 }
 0x37d   :  { %7581 = vmatprep.subr.mxu1 %v8484_v60 }
 0x37e   :  { %v1266_v7 = vpop.permute.xlu1 %1265  ;;  %v1258_v8 = vpop.permute.xlu0 %1257 }
 0x37f   :  { %7559 = vmatmul.mubr.msk.f32.gmra.mxu1 %vm620_vm3, %v1152_v2  ;;  %7567 = vmatpush3.xpose.msk.msra.mxu0 %vm620_vm3, %v1266_v7 }
 0x380   :  { %7582 = vmatpush3.xpose.msk.msra.mxu1 %vm620_vm3, %v1374_v4  ;;  %7561 = vmatprep.mubr.msk.f32.mxu1 %vm8485_vm2, %v8484_v60 }
 0x381   :  { %7568 = vmatprep.subr.mxu0 %v8484_v60  ;;  %7583 = vmatprep.subr.mxu1 %v8484_v60 }
 0x382   :  { %v1372_v9 = vpop.permute.xlu1 %1371  ;;  %v1260_v10 = vpop.permute.xlu0 %1259 }
 0x383   :  { %7562 = vmatmul.mubr.msk.f32.gmra.mxu1 %vm620_vm3, %v1154_v5  ;;  %7569 = vmatpush3.xpose.msk.msra.mxu0 %vm620_vm3, %v1264_v6 }
 0x384   :  { %7584 = vmatpush3.xpose.msk.msra.mxu1 %vm620_vm3, %v1372_v9  ;;  %7585 = vmatprep.mubr.msk.f32.mxu1 %vm8485_vm2, %v8484_v60 }
 0x385   :  { %7594 = vmatprep.subr.mxu0 %v8484_v60  ;;  %7609 = vmatprep.subr.mxu1 %v8484_v60 }
 0x386   :  { %v1366_v11 = vpop.permute.xlu1 %1365  ;;  %7571 = vmatmul.mubr.msk.f32.vlgmr.msra.gmra.mxu0 %vm620_vm3, %v1258_v8  ;;  %v1262_v13 = vpop.permute.xlu0 %1261 }
 0x387   :  { %7586 = vmatmul.mubr.msk.f32.vlgmr.msra.gmra.mxu1 %vm620_vm3, %v1366_v11  ;;  %7595 = vmatpush3.msra.mxu0 %v8824_v38 }
 0x388   :  { %7596 = vmatprep.subr.mxu0 %v8484_v60  ;;  %7573 = vmatprep.mubr.msk.f32.mxu0 %vm8485_vm2, %v8484_v60 }
 0x389   :  { %7597 = vmatpush3.msra.mxu0 %v8806_v31  ;;  %7588 = vmatprep.mubr.msk.f32.mxu1 %vm8485_vm2, %v8484_v60  ;;  %v8981_v31 = vld [vmem:[%s10635_s1 + $0x30] ss:$0 sm:$0xff] }
 0x38a   :  { %v1368_v14 = vpop.permute.xlu1 %1367  ;;  %7574 = vmatmul.mubr.msk.f32.gmra.mxu0 %vm620_vm3, %v1260_v10  ;;  %7598 = vmatprep.subr.mxu0 %v8484_v60  ;;  %v1887_v15 = vpop.permute.xlu0 %1886 }
 0x38b   :  { %7589 = vmatmul.mubr.msk.f32.gmra.mxu1 %vm620_vm3, %v1368_v14  ;;  %7599 = vmatpush3.msra.mxu0 %v8822_v37 }
 0x38c   :  { %7576 = vmatprep.mubr.msk.f32.mxu0 %vm8485_vm2, %v8484_v60  ;;  %7591 = vmatprep.mubr.msk.f32.mxu1 %vm8485_vm2, %v8484_v60 }
 0x38d   :  { %7624 = vmatprep.subr.mxu0 %v8484_v60 }
 0x38e   :  { %v1370_v17 = vpop.permute.xlu1 %1369  ;;  %7577 = vmatmul.mubr.msk.f32.gmra.mxu0 %vm620_vm3, %v1262_v13  ;;  %v8962_v18 = vpop.permute.xlu0 %2000 }
 0x38f   :  { %7592 = vmatmul.mubr.msk.f32.gmra.mxu1 %vm620_vm3, %v1370_v17  ;;  %7600 = vmatprep.mubr.msk.f32.mxu0 %vm8485_vm2, %v8484_v60 }
 0x390   :  { %7615 = vmatprep.mubr.msk.f32.mxu1 %vm8485_vm2, %v8484_v60 }
 0x392   :  { %v8969_v21 = vpop.permute.xlu1 %2321  ;;  %v8971_v22 = vpop.permute.xlu0 %2114 }
 0x396   :  { %v1889_v23 = vpop.permute.xlu1 %1888  ;;  %v1885_v24 = vpop.permute.xlu0 %1884 }
 0x397   :  { %7610 = vmatpush3.msra.mxu1 %v1889_v23 }
 0x398   :  { %7611 = vmatprep.subr.mxu1 %v8484_v60 }
 0x399   :  { %7612 = vmatpush3.msra.mxu1 %v1887_v15 }
 0x39a   :  { %7613 = vmatprep.subr.mxu1 %v8484_v60 }
 0x39b   :  { %7614 = vmatpush3.msra.mxu1 %v1885_v24 }
 0x39c   :  { %7639 = vmatprep.subr.mxu1 %v8484_v60 }
 0x3a5   :  { %v705_v25 = vpop.f32.mrf.mxu0 }
 0x3a6   :  { %720 = vst.msk [vmem:[#allocation2] sm:$0xff] %vm719_vm4, %v705_v25 }
 0x3a7   :  { %v7482_v26 = vpop.f32.mrf.mxu0 }
 0x3a9   :  { %v710_v29 = vpop.f32.mrf.mxu0 }
 0x3aa   :  { %721 = vst.msk [vmem:[#allocation2 + $0x8] sm:$0xff] %vm719_vm4, %v710_v29 }
 0x3ab   :  { %v7485_v30 = vpop.f32.mrf.mxu0 }
 0x3ad   :  { %v715_v32 = vpop.f32.mrf.mxu0  ;;  %v1473_v33 = vld [vmem:[#allocation2] sm:$0xff] }
 0x3ae   :  { %722 = vst.msk [vmem:[#allocation2 + $0x10] sm:$0xff] %vm719_vm4, %v715_v32  ;;  %v8985_v36 = vadd.f32 %v8981_v31, %v1473_v33 }
 0x3af   :  { %v7488_v37 = vpop.f32.mrf.mxu0 }
 0x3b0   :  { %v1525_v38 = vsel %vm719_vm4, %v8985_v36, -inf }
 0x3b1   :  { %1526 = vmax.xlane.f32.xlu0 %v1525_v38  ;;  %v1474_v39 = vld [vmem:[#allocation2 + $0x8] sm:$0xff] }
 0x3b2   :  { %v8990_v43 = vadd.f32 %v8981_v31, %v1474_v39 }
 0x3b4   :  { %v1528_v45 = vsel %vm719_vm4, %v8990_v43, -inf }
 0x3b5   :  { %1529 = vmax.xlane.f32.xlu0 %v1528_v45  ;;  %v1475_v46 = vld [vmem:[#allocation2 + $0x10] sm:$0xff] }
 0x3b6   :  { %v8995_v34 = vadd.f32 %v8981_v31, %v1475_v46 }
 0x3b8   :  { %v1531_v47 = vsel %vm719_vm4, %v8995_v34, -inf }
 0x3b9   :  { %1532 = vmax.xlane.f32.xlu0 %v1531_v47 }
 0x41a   :  { %v813_v48 = vpop.f32.mrf.mxu1 }
 0x41b   :  { %828 = vst.msk [vmem:[#allocation2 + $0x18] sm:$0xff] %vm719_vm4, %v813_v48 }
 0x41c   :  { %v7497_v51 = vpop.f32.mrf.mxu1 }
 0x41e   :  { %v818_v52 = vpop.f32.mrf.mxu1 }
 0x41f   :  { %829 = vst.msk [vmem:[#allocation2 + $0x20] sm:$0xff] %vm719_vm4, %v818_v52 }
 0x420   :  { %v7500_v41 = vpop.f32.mrf.mxu1 }
 0x422   :  { %v1476_v40 = vld [vmem:[#allocation2 + $0x18] sm:$0xff] }
 0x423   :  { %v9002_v53 = vadd.f32 %v8981_v31, %v1476_v40 }
 0x425   :  { %v1534_v54 = vsel %vm719_vm4, %v9002_v53, -inf }
 0x426   :  { %1535 = vmax.xlane.f32.xlu1 %v1534_v54  ;;  %v921_v55 = vpop.f32.mrf.mxu0  ;;  %v1477_v62 = vld [vmem:[#allocation2 + $0x20] sm:$0xff] }
 0x427   :  { %936 = vst.msk [vmem:[#allocation2 + $0x30] sm:$0xff] %vm719_vm4, %v921_v55  ;;  %v823_v49 = vpop.f32.mrf.mxu1  ;;  %v9020_v6 = vadd.f32 %v8981_v31, %v1477_v62 }
 0x428   :  { %830 = vst.msk [vmem:[#allocation2 + $0x28] sm:$0xff] %vm719_vm4, %v823_v49  ;;  %v7512_v50 = vpop.f32.mrf.mxu0 }
 0x429   :  { %v7503_v56 = vpop.f32.mrf.mxu1  ;;  %v1537_v14 = vsel %vm719_vm4, %v9020_v6, -inf }
 0x42a   :  { %v926_v58 = vpop.f32.mrf.mxu0 }
 0x42b   :  { %937 = vst.msk [vmem:[#allocation2 + $0x38] sm:$0xff] %vm719_vm4, %v926_v58 }
 0x42c   :  { %v7515_v59 = vpop.f32.mrf.mxu0 }
 0x42e   :  { %v931_v57 = vpop.f32.mrf.mxu0  ;;  %v1479_v61 = vld [vmem:[#allocation2 + $0x30] sm:$0xff] }
 0x42f   :  { %938 = vst.msk [vmem:[#allocation2 + $0x40] sm:$0xff] %vm719_vm4, %v931_v57  ;;  %v1029_v63 = vpop.f32.mrf.mxu1  ;;  %v9011_v0 = vadd.f32 %v8981_v31, %v1479_v61  ;;  %v1478_v1 = vld [vmem:[#allocation2 + $0x28] sm:$0xff] }
 0x430   :  { %1044 = vst.msk [vmem:[#allocation2 + $0x48] sm:$0xff] %vm719_vm4, %v1029_v63  ;;  %v7518_v2 = vpop.f32.mrf.mxu0  ;;  %v9015_v3 = vadd.f32 %v8981_v31, %v1478_v1 }
 0x431   :  { %v7527_v4 = vpop.f32.mrf.mxu1  ;;  %v1543_v5 = vsel %vm719_vm4, %v9011_v0, -inf }
 0x432   :  { %1544 = vmax.xlane.f32.xlu0 %v1543_v5  ;;  %v1131_v7 = vpop.f32.mrf.mxu0  ;;  %v1540_v8 = vsel %vm719_vm4, %v9015_v3, -inf  ;;  %v1480_v9 = vld [vmem:[#allocation2 + $0x38] sm:$0xff] }
 0x433   :  { %v1034_v10 = vpop.f32.mrf.mxu1  ;;  %1146 = vst.msk [vmem:[#allocation2 + $0x60] sm:$0xff] %vm719_vm4, %v1131_v7  ;;  %1541 = vmax.xlane.f32.xlu1 %v1540_v8  ;;  %v9029_v15 = vadd.f32 %v8981_v31, %v1480_v9 }
 0x434   :  { %1045 = vst.msk [vmem:[#allocation2 + $0x50] sm:$0xff] %vm719_vm4, %v1034_v10  ;;  %v7542_v11 = vpop.f32.mrf.mxu0 }
 0x435   :  { %v7530_v13 = vpop.f32.mrf.mxu1  ;;  %v1546_v32 = vsel %vm719_vm4, %v9029_v15, -inf }
 0x436   :  { %1538 = vmax.xlane.f32.xlu0 %v1537_v14  ;;  %v1136_v17 = vpop.f32.mrf.mxu0  ;;  %v1481_v23 = vld [vmem:[#allocation2 + $0x40] sm:$0xff] }
 0x437   :  { %v1039_v24 = vpop.f32.mrf.mxu1  ;;  %1147 = vst.msk [vmem:[#allocation2 + $0x68] sm:$0xff] %vm719_vm4, %v1136_v17  ;;  %v1482_v25 = vld [vmem:[#allocation2 + $0x48] sm:$0xff]  ;;  %v9039_v33 = vadd.f32 %v8981_v31, %v1481_v23 }
 0x438   :  { %1046 = vst.msk [vmem:[#allocation2 + $0x58] sm:$0xff] %vm719_vm4, %v1039_v24  ;;  %v7545_v26 = vpop.f32.mrf.mxu0  ;;  %v9034_v29 = vadd.f32 %v8981_v31, %v1482_v25 }
 0x439   :  { %v7533_v30 = vpop.f32.mrf.mxu1  ;;  %v1549_v52 = vsel %vm719_vm4, %v9039_v33, -inf }
 0x43a   :  { %v1552_v37 = vsel %vm719_vm4, %v9034_v29, -inf  ;;  %1547 = vmax.xlane.f32.xlu0 %v1546_v32  ;;  %v1141_v38 = vpop.f32.mrf.mxu0  ;;  %v1485_v39 = vld [vmem:[#allocation2 + $0x60] sm:$0xff] }
 0x43b   :  { %1553 = vmax.xlane.f32.xlu1 %v1552_v37  ;;  %1148 = vst.msk [vmem:[#allocation2 + $0x70] sm:$0xff] %vm719_vm4, %v1141_v38  ;;  %v1239_v45 = vpop.f32.mrf.mxu1  ;;  %v1483_v46 = vld [vmem:[#allocation2 + $0x50] sm:$0xff]  ;;  %v9051_v41 = vadd.f32 %v8981_v31, %v1485_v39  ;;  %v9091_v37 = vpop.permute.xlu0 %1998 }
 0x43c   :  { %1254 = vst.msk [vmem:[#allocation2 + $0x78] sm:$0xff] %vm719_vm4, %v1239_v45  ;;  %v7548_v47 = vpop.f32.mrf.mxu0  ;;  %v9046_v48 = vadd.f32 %v8981_v31, %v1483_v46 }
 0x43d   :  { %v7557_v51 = vpop.f32.mrf.mxu1  ;;  %v1561_v58 = vsel %vm719_vm4, %v9051_v41, -inf }
 0x43e   :  { %v1555_v40 = vsel %vm719_vm4, %v9046_v48, -inf  ;;  %1550 = vmax.xlane.f32.xlu0 %v1549_v52  ;;  %v1486_v54 = vld [vmem:[#allocation2 + $0x68] sm:$0xff] }
 0x43f   :  { %1556 = vmax.xlane.f32.xlu1 %v1555_v40  ;;  %v1244_v55 = vpop.f32.mrf.mxu1  ;;  %v1484_v49 = vld [vmem:[#allocation2 + $0x58] sm:$0xff]  ;;  %v9062_v59 = vadd.f32 %v8981_v31, %v1486_v54 }
 0x440   :  { %1255 = vst.msk [vmem:[#allocation2 + $0x80] sm:$0xff] %vm719_vm4, %v1244_v55  ;;  %v9057_v50 = vadd.f32 %v8981_v31, %v1484_v49 }
 0x441   :  { %v7560_v56 = vpop.f32.mrf.mxu1  ;;  %v1564_v4 = vsel %vm719_vm4, %v9062_v59, -inf }
 0x442   :  { %v1558_v57 = vsel %vm719_vm4, %v9057_v50, -inf  ;;  %1562 = vmax.xlane.f32.xlu0 %v1561_v58  ;;  %v1487_v61 = vld [vmem:[#allocation2 + $0x70] sm:$0xff] }
 0x443   :  { %1559 = vmax.xlane.f32.xlu1 %v1558_v57  ;;  %v1249_v62 = vpop.f32.mrf.mxu1  ;;  %v1488_v63 = vld [vmem:[#allocation2 + $0x78] sm:$0xff]  ;;  %v9073_v5 = vadd.f32 %v8981_v31, %v1487_v61  ;;  %v9107_v57 = vpop.permute.xlu0 %2112 }
 0x444   :  { %1256 = vst.msk [vmem:[#allocation2 + $0x88] sm:$0xff] %vm719_vm4, %v1249_v62  ;;  %v9068_v1 = vadd.f32 %v8981_v31, %v1488_v63 }
 0x445   :  { %v7563_v2 = vpop.f32.mrf.mxu1  ;;  %v1567_v17 = vsel %vm719_vm4, %v9073_v5, -inf }
 0x446   :  { %1565 = vmax.xlane.f32.xlu0 %v1564_v4  ;;  %v1570_v7 = vsel %vm719_vm4, %v9068_v1, -inf  ;;  %v1347_v8 = vpop.f32.mrf.mxu0 }
 0x447   :  { %1571 = vmax.xlane.f32.xlu1 %v1570_v7  ;;  %1362 = vst.msk [vmem:[#allocation2 + $0x90] sm:$0xff] %vm719_vm4, %v1347_v8  ;;  %v1455_v9 = vpop.f32.mrf.mxu1  ;;  %v1489_v10 = vld [vmem:[#allocation2 + $0x80] sm:$0xff] }
 0x448   :  { %1470 = vst.msk [vmem:[#allocation2 + $0xa8] sm:$0xff] %vm719_vm4, %v1455_v9  ;;  %v7572_v11 = vpop.f32.mrf.mxu0  ;;  %v9080_v13 = vadd.f32 %v8981_v31, %v1489_v10 }
 0x449   :  { %v7587_v14 = vpop.f32.mrf.mxu1  ;;  %v9125_v11 = vpop.permute.xlu0 %2116 }
 0x44a   :  { %1568 = vmax.xlane.f32.xlu0 %v1567_v17  ;;  %v1573_v23 = vsel %vm719_vm4, %v9080_v13, -inf  ;;  %v1352_v24 = vpop.f32.mrf.mxu0 }
 0x44b   :  { %1574 = vmax.xlane.f32.xlu1 %v1573_v23  ;;  %1363 = vst.msk [vmem:[#allocation2 + $0x98] sm:$0xff] %vm719_vm4, %v1352_v24  ;;  %v1460_v25 = vpop.f32.mrf.mxu1  ;;  %v1490_v26 = vld [vmem:[#allocation2 + $0x88] sm:$0xff] }
 0x44c   :  { %1471 = vst.msk [vmem:[#allocation2 + $0xb0] sm:$0xff] %vm719_vm4, %v1460_v25  ;;  %v7575_v30 = vpop.f32.mrf.mxu0  ;;  %v9089_v32 = vadd.f32 %v8981_v31, %v1490_v26 }
 0x44d   :  { %v7590_v38 = vpop.f32.mrf.mxu1  ;;  %v9131_v23 = vpop.permute.xlu0 %2325 }
 0x44e   :  { %v1576_v39 = vsel %vm719_vm4, %v9089_v32, -inf  ;;  %v1357_v45 = vpop.f32.mrf.mxu0  ;;  %v1491_v46 = vld [vmem:[#allocation2 + $0x90] sm:$0xff] }
 0x44f   :  { %1577 = vmax.xlane.f32.xlu1 %v1576_v39  ;;  %1364 = vst.msk [vmem:[#allocation2 + $0xa0] sm:$0xff] %vm719_vm4, %v1357_v45  ;;  %v1465_v47 = vpop.f32.mrf.mxu1  ;;  %v9097_v51 = vadd.f32 %v8981_v31, %v1491_v46  ;;  %v1494_v52 = vld [vmem:[#allocation2 + $0xa8] sm:$0xff] }
 0x450   :  { %1472 = vst.msk [vmem:[#allocation2 + $0xb8] sm:$0xff] %vm719_vm4, %v1465_v47  ;;  %v7578_v40 = vpop.f32.mrf.mxu0  ;;  %v9101_v54 = vadd.f32 %v8981_v31, %v1494_v52 }
 0x451   :  { %v7593_v55 = vpop.f32.mrf.mxu1  ;;  %v1579_v49 = vsel %vm719_vm4, %v9097_v51, -inf  ;;  %v9133_v24 = vpop.permute.xlu0 %2438 }
 0x452   :  { %1580 = vmax.xlane.f32.xlu0 %v1579_v49  ;;  %v1588_v56 = vsel %vm719_vm4, %v9101_v54, -inf  ;;  %v1492_v58 = vld [vmem:[#allocation2 + $0x98] sm:$0xff] }
 0x453   :  { %1589 = vmax.xlane.f32.xlu1 %v1588_v56  ;;  %v9110_v61 = vadd.f32 %v8981_v31, %v1492_v58  ;;  %v1495_v62 = vld [vmem:[#allocation2 + $0xb0] sm:$0xff]  ;;  %v9156_v56 = vpop.permute.xlu1 %2002 }
 0x454   :  { %v9113_v63 = vadd.f32 %v8981_v31, %v1495_v62 }
 0x455   :  { %v1582_v2 = vsel %vm719_vm4, %v9110_v61, -inf  ;;  %v9135_v25 = vpop.permute.xlu0 %2323 }
 0x456   :  { %1583 = vmax.xlane.f32.xlu0 %v1582_v2  ;;  %v1591_v4 = vsel %vm719_vm4, %v9113_v63, -inf  ;;  %v1493_v7 = vld [vmem:[#allocation2 + $0xa0] sm:$0xff] }
 0x457   :  { %1592 = vmax.xlane.f32.xlu1 %v1591_v4  ;;  %v9120_v8 = vadd.f32 %v8981_v31, %v1493_v7  ;;  %v1496_v9 = vld [vmem:[#allocation2 + $0xb8] sm:$0xff]  ;;  %v9158_v58 = vpop.permute.xlu1 %2551 }
 0x458   :  { %v9123_v10 = vadd.f32 %v8981_v31, %v1496_v9 }
 0x459   :  { %v1585_v14 = vsel %vm719_vm4, %v9120_v8, -inf  ;;  %v1527_v31 = vpop.xlane.xlu0 %1526 }
 0x45a   :  { %1586 = vmax.xlane.f32.xlu0 %v1585_v14  ;;  %v1594_v17 = vsel %vm719_vm4, %v9123_v10, -inf  ;;  %v1597_v30 = vsub.f32 %v8985_v36, %v1527_v31 }
 0x45b   :  { %1595 = vmax.xlane.f32.xlu1 %v1594_v17 }
 0x45c   :  { %v1621_v38 = vmul.f32 1.442695, %v1597_v30 }
 0x45d   :  { %v1530_v26 = vpop.xlane.xlu0 %1529 }
 0x45e   :  { %v1598_v39 = vsub.f32 %v8990_v43, %v1530_v26  ;;  %8147 = vpow2.f32 %v1621_v38 }
 0x460   :  { %v1623_v46 = vmul.f32 1.442695, %v1598_v39 }
 0x461   :  { %v1533_v45 = vpop.xlane.xlu0 %1532 }
 0x462   :  { %v1599_v47 = vsub.f32 %v8995_v34, %v1533_v45  ;;  %8149 = vpow2.f32 %v1623_v46 }
 0x464   :  { %v1625_v52 = vmul.f32 1.442695, %v1599_v47 }
 0x466   :  { %8151 = vpow2.f32 %v1625_v52 }
 0x46b   :  { %v9144_v40 = vpop.eup %8147 }
 0x46c   :  { %2549 = vrot.lane.b32.xlu1 %v8846_v44, %s8488_s15  ;;  %v1669_v55 = vsel %vm719_vm4, %v9144_v40, 0.0 }
 0x46f   :  { %v9148_v49 = vpop.eup %8149 }
 0x470   :  { %2436 = vrot.lane.b32.xlu0 %v8846_v44, %s8487_s14  ;;  %v1672_v36 = vsel %vm719_vm4, %v9148_v49, 0.0 }
 0x473   :  { %v9152_v43 = vpop.eup %8151 }
 0x474   :  { %v1675_v34 = vsel %vm719_vm4, %v9152_v43, 0.0 }
 0x48f   :  { %1670 = vadd.xlane.f32.xlu0 %v1669_v55 }
 0x493   :  { %1673 = vadd.xlane.f32.xlu0 %v1672_v36 }
 0x497   :  { %1676 = vadd.xlane.f32.xlu0 %v1675_v34 }
 0x4af   :  { %v1536_v62 = vpop.xlane.xlu1 %1535 }
 0x4b0   :  { %v1600_v2 = vsub.f32 %v9002_v53, %v1536_v62 }
 0x4b2   :  { %v1627_v4 = vmul.f32 1.442695, %v1600_v2 }
 0x4b4   :  { %8153 = vpow2.f32 %v1627_v4 }
 0x4bb   :  { %v1545_v7 = vpop.xlane.xlu0 %1544 }
 0x4bc   :  { %v1603_v9 = vsub.f32 %v9011_v0, %v1545_v7  ;;  %v1542_v14 = vpop.xlane.xlu1 %1541 }
 0x4bd   :  { %v1602_v31 = vsub.f32 %v9015_v3, %v1542_v14 }
 0x4be   :  { %v1633_v17 = vmul.f32 1.442695, %v1603_v9 }
 0x4bf   :  { %v1539_v26 = vpop.xlane.xlu0 %1538  ;;  %v1631_v39 = vmul.f32 1.442695, %v1602_v31 }
 0x4c0   :  { %8155 = vpow2.f32 %v1633_v17  ;;  %v1601_v30 = vsub.f32 %v9020_v6, %v1539_v26 }
 0x4c1   :  { %v9164_v38 = vpop.eup %8153 }
 0x4c2   :  { %v1629_v45 = vmul.f32 1.442695, %v1601_v30  ;;  %v1678_v53 = vsel %vm719_vm4, %v9164_v38, 0.0 }
 0x4c3   :  { %1679 = vadd.xlane.f32.xlu1 %v1678_v53  ;;  %v1548_v46 = vpop.xlane.xlu0 %1547 }
 0x4c4   :  { %8157 = vpow2.f32 %v1629_v45  ;;  %v1554_v47 = vpop.xlane.xlu1 %1553  ;;  %v1604_v0 = vsub.f32 %v9029_v15, %v1548_v46 }
 0x4c5   :  { %v1606_v52 = vsub.f32 %v9034_v29, %v1554_v47  ;;  %8159 = vpow2.f32 %v1631_v39 }
 0x4c6   :  { %v1635_v3 = vmul.f32 1.442695, %v1604_v0 }
 0x4c7   :  { %v1639_v55 = vmul.f32 1.442695, %v1606_v52  ;;  %v1551_v36 = vpop.xlane.xlu0 %1550 }
 0x4c8   :  { %8161 = vpow2.f32 %v1635_v3  ;;  %v1557_v6 = vpop.xlane.xlu1 %1556  ;;  %v1605_v34 = vsub.f32 %v9039_v33, %v1551_v36 }
 0x4c9   :  { %v1607_v62 = vsub.f32 %v9046_v48, %v1557_v6  ;;  %8163 = vpow2.f32 %v1639_v55 }
 0x4ca   :  { %v1637_v2 = vmul.f32 1.442695, %v1605_v34 }
 0x4cb   :  { %v1641_v4 = vmul.f32 1.442695, %v1607_v62  ;;  %v1563_v7 = vpop.xlane.xlu0 %1562 }
 0x4cc   :  { %8165 = vpow2.f32 %v1637_v2  ;;  %v1560_v9 = vpop.xlane.xlu1 %1559  ;;  %v1609_v15 = vsub.f32 %v9051_v41, %v1563_v7 }
 0x4cd   :  { %v9173_v14 = vpop.eup %8155  ;;  %8167 = vpow2.f32 %v1641_v4  ;;  %v1608_v29 = vsub.f32 %v9057_v50, %v1560_v9 }
 0x4ce   :  { %v1645_v17 = vmul.f32 1.442695, %v1609_v15  ;;  %v1687_v31 = vsel %vm719_vm4, %v9173_v14, 0.0 }
 0x4cf   :  { %1688 = vadd.xlane.f32.xlu0 %v1687_v31  ;;  %v1566_v33 = vpop.xlane.xlu0 %1565  ;;  %v1643_v41 = vmul.f32 1.442695, %v1608_v29 }
 0x4d0   :  { %8169 = vpow2.f32 %v1645_v17  ;;  %v1572_v48 = vpop.xlane.xlu1 %1571  ;;  %v1610_v26 = vsub.f32 %v9062_v59, %v1566_v33 }
 0x4d1   :  { %v9179_v30 = vpop.eup %8157  ;;  %v1612_v39 = vsub.f32 %v9068_v1, %v1572_v48 }
 0x4d2   :  { %v1647_v45 = vmul.f32 1.442695, %v1610_v26  ;;  %v1681_v53 = vsel %vm719_vm4, %v9179_v30, 0.0  ;;  %v9184_v50 = vpop.eup %8159 }
 0x4d3   :  { %v1651_v46 = vmul.f32 1.442695, %v1612_v39  ;;  %1682 = vadd.xlane.f32.xlu1 %v1681_v53  ;;  %v1569_v47 = vpop.xlane.xlu0 %1568  ;;  %v1684_v1 = vsel %vm719_vm4, %v9184_v50, 0.0 }
 0x4d4   :  { %8171 = vpow2.f32 %v1647_v45  ;;  %v1575_v0 = vpop.xlane.xlu1 %1574  ;;  %v1611_v52 = vsub.f32 %v9073_v5, %v1569_v47 }
 0x4d5   :  { %v9187_v3 = vpop.eup %8161  ;;  %8173 = vpow2.f32 %v1651_v46  ;;  %v1613_v5 = vsub.f32 %v9080_v13, %v1575_v0 }
 0x4d6   :  { %8175 = vpow2.f32 %v1643_v41  ;;  %v1649_v59 = vmul.f32 1.442695, %v1611_v52  ;;  %v1690_v55 = vsel %vm719_vm4, %v9187_v3, 0.0  ;;  %v9193_v36 = vpop.eup %8163 }
 0x4d7   :  { %1685 = vadd.xlane.f32.xlu1 %v1684_v1  ;;  %1691 = vadd.xlane.f32.xlu0 %v1690_v55  ;;  %v1696_v2 = vsel %vm719_vm4, %v9193_v36, 0.0  ;;  %v1653_v13 = vmul.f32 1.442695, %v1613_v5 }
 0x4d8   :  { %v1578_v6 = vpop.xlane.xlu1 %1577  ;;  %8177 = vpow2.f32 %v1649_v59 }
 0x4d9   :  { %v9195_v34 = vpop.eup %8165  ;;  %v1614_v62 = vsub.f32 %v9089_v32, %v1578_v6 }
 0x4da   :  { %v1693_v4 = vsel %vm719_vm4, %v9195_v34, 0.0  ;;  %v9203_v7 = vpop.eup %8167 }
 0x4db   :  { %v1655_v9 = vmul.f32 1.442695, %v1614_v62  ;;  %1697 = vadd.xlane.f32.xlu1 %v1696_v2  ;;  %1694 = vadd.xlane.f32.xlu0 %v1693_v4  ;;  %v1581_v15 = vpop.xlane.xlu0 %1580  ;;  %v1699_v48 = vsel %vm719_vm4, %v9203_v7, 0.0 }
 0x4dc   :  { %v1615_v29 = vsub.f32 %v9097_v51, %v1581_v15  ;;  %v1590_v17 = vpop.xlane.xlu1 %1589 }
 0x4dd   :  { %v9206_v31 = vpop.eup %8169  ;;  %v1618_v32 = vsub.f32 %v9101_v54, %v1590_v17  ;;  %8179 = vpow2.f32 %v1655_v9 }
 0x4de   :  { %v1657_v33 = vmul.f32 1.442695, %v1615_v29  ;;  %v1705_v26 = vsel %vm719_vm4, %v9206_v31, 0.0 }
 0x4df   :  { %v1663_v39 = vmul.f32 1.442695, %v1618_v32  ;;  %1700 = vadd.xlane.f32.xlu1 %v1699_v48  ;;  %1706 = vadd.xlane.f32.xlu0 %v1705_v26  ;;  %v1584_v41 = vpop.xlane.xlu0 %1583 }
 0x4e0   :  { %8181 = vpow2.f32 %v1657_v33  ;;  %v1616_v51 = vsub.f32 %v9110_v61, %v1584_v41  ;;  %v1593_v45 = vpop.xlane.xlu1 %1592 }
 0x4e1   :  { %v9214_v53 = vpop.eup %8171  ;;  %8183 = vpow2.f32 %v1653_v13  ;;  %v1619_v54 = vsub.f32 %v9113_v63, %v1593_v45 }
 0x4e2   :  { %v9217_v46 = vpop.eup %8173  ;;  %8185 = vpow2.f32 %v1663_v39  ;;  %v1659_v47 = vmul.f32 1.442695, %v1616_v51  ;;  %v1708_v0 = vsel %vm719_vm4, %v9214_v53, 0.0 }
 0x4e3   :  { %v9221_v52 = vpop.eup %8175  ;;  %v1665_v59 = vmul.f32 1.442695, %v1619_v54  ;;  %v1714_v1 = vsel %vm719_vm4, %v9217_v46, 0.0  ;;  %1709 = vadd.xlane.f32.xlu1 %v1708_v0  ;;  %v1587_v61 = vpop.xlane.xlu0 %1586 }
 0x4e4   :  { %1715 = vadd.xlane.f32.xlu0 %v1714_v1  ;;  %v1617_v55 = vsub.f32 %v9120_v8, %v1587_v61  ;;  %v1596_v6 = vpop.xlane.xlu1 %1595  ;;  %8187 = vpow2.f32 %v1659_v47  ;;  %v1702_v62 = vsel %vm719_vm4, %v9221_v52, 0.0 }
 0x4e5   :  { %v1620_v63 = vsub.f32 %v9123_v10, %v1596_v6  ;;  %8189 = vpow2.f32 %v1665_v59  ;;  %v9229_v2 = vpop.eup %8177 }
 0x4e6   :  { %v1661_v5 = vmul.f32 1.442695, %v1617_v55  ;;  %v1711_v9 = vsel %vm719_vm4, %v9229_v2, 0.0 }
 0x4e7   :  { %v1667_v4 = vmul.f32 1.442695, %v1620_v63  ;;  %1703 = vadd.xlane.f32.xlu1 %v1702_v62  ;;  %v9269_v0 = vpop.permute.xlu0 %2436 }
 0x4e8   :  { %8191 = vpow2.f32 %v1661_v5 }
 0x4e9   :  { %8193 = vpow2.f32 %v1667_v4 }
 0x4ea   :  { %v9233_v15 = vpop.eup %8179 }
 0x4eb   :  { %1712 = vadd.xlane.f32.xlu1 %v1711_v9  ;;  %v1720_v29 = vsel %vm719_vm4, %v9233_v15, 0.0 }
 0x4ed   :  { %v9235_v8 = vpop.eup %8181 }
 0x4ee   :  { %v9237_v10 = vpop.eup %8183  ;;  %v1723_v17 = vsel %vm719_vm4, %v9235_v8, 0.0 }
 0x4ef   :  { %v9243_v13 = vpop.eup %8185  ;;  %1721 = vadd.xlane.f32.xlu1 %v1720_v29  ;;  %1724 = vadd.xlane.f32.xlu0 %v1723_v17  ;;  %v1717_v48 = vsel %vm719_vm4, %v9237_v10, 0.0 }
 0x4f0   :  { %v1732_v33 = vsel %vm719_vm4, %v9243_v13, 0.0 }
 0x4f1   :  { %v9245_v32 = vpop.eup %8187 }
 0x4f2   :  { %v9251_v26 = vpop.eup %8189  ;;  %v1726_v51 = vsel %vm719_vm4, %v9245_v32, 0.0 }
 0x4f3   :  { %1733 = vadd.xlane.f32.xlu1 %v1732_v33  ;;  %1718 = vadd.xlane.f32.xlu0 %v1717_v48  ;;  %v1735_v41 = vsel %vm719_vm4, %v9251_v26, 0.0 }
 0x4f5   :  { %v9253_v39 = vpop.eup %8191 }
 0x4f6   :  { %v9259_v45 = vpop.eup %8193  ;;  %v1729_v47 = vsel %vm719_vm4, %v9253_v39, 0.0 }
 0x4f7   :  { %1736 = vadd.xlane.f32.xlu1 %v1735_v41  ;;  %1727 = vadd.xlane.f32.xlu0 %v1726_v51  ;;  %v1738_v54 = vsel %vm719_vm4, %v9259_v45, 0.0 }
 0x4fb   :  { %1739 = vadd.xlane.f32.xlu1 %v1738_v54  ;;  %1730 = vadd.xlane.f32.xlu0 %v1729_v47 }
 0x50c   :  { %2547 = vrot.lane.b32.xlu1 %v8816_v35, %s8488_s15 }
 0x511   :  { %2434 = vrot.lane.b32.xlu0 %v8816_v35, %s8487_s14 }
 0x518   :  { %v1671_v59 = vpop.xlane.xlu0 %1670 }
 0x519   :  { %8195 = vrcp.f32 %v1671_v59 }
 0x51c   :  { %v1674_v1 = vpop.xlane.xlu0 %1673 }
 0x51d   :  { %8197 = vrcp.f32 %v1674_v1 }
 0x520   :  { %v1677_v61 = vpop.xlane.xlu0 %1676 }
 0x521   :  { %8199 = vrcp.f32 %v1677_v61 }
 0x526   :  { %v8196_v55 = vpop.eup %8195 }
 0x527   :  { %v1765_v6 = vmul.f32 %v8196_v55, %v9144_v40 }
 0x529   :  { %7601 = vmatmul.mubr.msk.f32.vlgmr.msra.gmra.mxu0 %vm719_vm4, %v1765_v6 }
 0x52a   :  { %v8198_v63 = vpop.eup %8197  ;;  %7625 = vmatpush3.msra.mxu0 %v9156_v56  ;;  %7603 = vmatprep.mubr.msk.f32.mxu0 %vm8485_vm2, %v8484_v60 }
 0x52b   :  { %7626 = vmatprep.subr.mxu0 %v8484_v60  ;;  %v1766_v5 = vmul.f32 %v8198_v63, %v9148_v49 }
 0x52c   :  { %7627 = vmatpush3.msra.mxu0 %v8962_v18  ;;  %v9289_v18 = vpop.permute.xlu1 %2549 }
 0x52d   :  { %7628 = vmatprep.subr.mxu0 %v8484_v60  ;;  %7604 = vmatmul.mubr.msk.f32.gmra.mxu0 %vm719_vm4, %v1766_v5 }
 0x52e   :  { %v8200_v62 = vpop.eup %8199  ;;  %7629 = vmatpush3.msra.mxu0 %v9091_v37  ;;  %7606 = vmatprep.mubr.msk.f32.mxu0 %vm8485_vm2, %v8484_v60 }
 0x52f   :  { %v1767_v40 = vmul.f32 %v8200_v62, %v9152_v43  ;;  %7654 = vmatprep.subr.mxu0 %v8484_v60 }
 0x531   :  { %7607 = vmatmul.mubr.msk.f32.gmra.mxu0 %vm719_vm4, %v1767_v40 }
 0x532   :  { %7630 = vmatprep.mubr.msk.f32.mxu0 %vm8485_vm2, %v8484_v60 }
 0x54c   :  { %v1680_v49 = vpop.xlane.xlu1 %1679 }
 0x54d   :  { %8201 = vrcp.f32 %v1680_v49 }
 0x558   :  { %v1689_v56 = vpop.xlane.xlu0 %1688 }
 0x559   :  { %8203 = vrcp.f32 %v1689_v56 }
 0x55a   :  { %v8202_v4 = vpop.eup %8201 }
 0x55b   :  { %v1768_v37 = vmul.f32 %v8202_v4, %v9164_v38 }
 0x55c   :  { %v1683_v9 = vpop.xlane.xlu1 %1682 }
 0x55d   :  { %8205 = vrcp.f32 %v1683_v9  ;;  %7616 = vmatmul.mubr.msk.f32.vlgmr.msra.gmra.mxu1 %vm719_vm4, %v1768_v37 }
 0x55e   :  { %7640 = vmatpush3.msra.mxu1 %v9125_v11  ;;  %7618 = vmatprep.mubr.msk.f32.mxu1 %vm8485_vm2, %v8484_v60 }
 0x55f   :  { %7641 = vmatprep.subr.mxu1 %v8484_v60 }
 0x560   :  { %7642 = vmatpush3.msra.mxu1 %v8971_v22  ;;  %v1686_v43 = vpop.xlane.xlu1 %1685  ;;  %v1692_v29 = vpop.xlane.xlu0 %1691 }
 0x561   :  { %7643 = vmatprep.subr.mxu1 %v8484_v60  ;;  %8207 = vrcp.f32 %v1686_v43 }
 0x562   :  { %8209 = vrcp.f32 %v1692_v29  ;;  %7644 = vmatpush3.msra.mxu1 %v9107_v57 }
 0x563   :  { %7669 = vmatprep.subr.mxu1 %v8484_v60 }
 0x564   :  { %v1698_v38 = vpop.xlane.xlu1 %1697  ;;  %v1695_v17 = vpop.xlane.xlu0 %1694 }
 0x565   :  { %8211 = vrcp.f32 %v1698_v38 }
 0x566   :  { %v8204_v11 = vpop.eup %8203  ;;  %8213 = vrcp.f32 %v1695_v17 }
 0x567   :  { %v1771_v33 = vmul.f32 %v8204_v11, %v9173_v14 }
 0x568   :  { %v1701_v48 = vpop.xlane.xlu1 %1700  ;;  %v1707_v41 = vpop.xlane.xlu0 %1706 }
 0x569   :  { %8215 = vrcp.f32 %v1701_v48  ;;  %7631 = vmatmul.mubr.msk.f32.vlgmr.msra.gmra.mxu0 %vm719_vm4, %v1771_v33 }
 0x56a   :  { %v8206_v22 = vpop.eup %8205  ;;  %8217 = vrcp.f32 %v1707_v41  ;;  %7655 = vmatpush3.msra.mxu0 %v8834_v42  ;;  %7633 = vmatprep.mubr.msk.f32.mxu0 %vm8485_vm2, %v8484_v60 }
 0x56b   :  { %7656 = vmatprep.subr.mxu0 %v8484_v60  ;;  %v1769_v57 = vmul.f32 %v8206_v22, %v9179_v30 }
 0x56c   :  { %7657 = vmatpush3.msra.mxu0 %v8846_v44  ;;  %v1710_v51 = vpop.xlane.xlu1 %1709 }
 0x56d   :  { %8219 = vrcp.f32 %v1710_v51  ;;  %7658 = vmatprep.subr.mxu0 %v8484_v60  ;;  %7619 = vmatmul.mubr.msk.f32.gmra.mxu1 %vm719_vm4, %v1769_v57  ;;  %v1716_v30 = vpop.xlane.xlu0 %1715 }
 0x56e   :  { %v8208_v14 = vpop.eup %8207  ;;  %7659 = vmatpush3.msra.mxu0 %v8816_v35  ;;  %7621 = vmatprep.mubr.msk.f32.mxu1 %vm8485_vm2, %v8484_v60 }
 0x56f   :  { %v8210_v42 = vpop.eup %8209  ;;  %v1770_v54 = vmul.f32 %v8208_v14, %v9184_v50  ;;  %7684 = vmatprep.subr.mxu0 %v8484_v60 }
 0x570   :  { %v1704_v47 = vpop.xlane.xlu1 %1703  ;;  %v1772_v44 = vmul.f32 %v8210_v42, %v9187_v3 }
 0x571   :  { %8221 = vrcp.f32 %v1704_v47  ;;  %7622 = vmatmul.mubr.msk.f32.gmra.mxu1 %vm719_vm4, %v1770_v54  ;;  %v191_v47 = vld [vmem:[%s10636_s2 + $0x80] sm:$0xff] }
 0x572   :  { %v8212_v59 = vpop.eup %8211  ;;  %7634 = vmatmul.mubr.msk.f32.gmra.mxu0 %vm719_vm4, %v1772_v44  ;;  %7645 = vmatprep.mubr.msk.f32.mxu1 %vm8485_vm2, %v8484_v60  ;;  %8223 = vrcp.f32 %v1716_v30  ;;  %v192_v30 = vld [vmem:[%s10636_s2 + $0x88] sm:$0xff] }
 0x573   :  { %v8214_v35 = vpop.eup %8213  ;;  %v1774_v1 = vmul.f32 %v8212_v59, %v9193_v36  ;;  %7636 = vmatprep.mubr.msk.f32.mxu0 %vm8485_vm2, %v8484_v60  ;;  %v190_v59 = vld [vmem:[%s10636_s2 + $0x78] sm:$0xff] }
 0x574   :  { %v1713_v50 = vpop.xlane.xlu1 %1712  ;;  %v1773_v61 = vmul.f32 %v8214_v35, %v9195_v34 }
 0x575   :  { %8225 = vrcp.f32 %v1713_v50  ;;  %7646 = vmatmul.mubr.msk.f32.vlgmr.msra.gmra.mxu1 %vm719_vm4, %v1774_v1 }
 0x576   :  { %v8216_v3 = vpop.eup %8215  ;;  %7637 = vmatmul.mubr.msk.f32.gmra.mxu0 %vm719_vm4, %v1773_v61  ;;  %7670 = vmatpush3.msra.mxu1 %v9131_v23 }
 0x577   :  { %v8218_v55 = vpop.eup %8217  ;;  %7671 = vmatprep.subr.mxu1 %v8484_v60  ;;  %7648 = vmatprep.mubr.msk.f32.mxu1 %vm8485_vm2, %v8484_v60  ;;  %v1775_v36 = vmul.f32 %v8216_v3, %v9203_v7 }
 0x578   :  { %v1777_v6 = vmul.f32 %v8218_v55, %v9206_v31  ;;  %7672 = vmatpush3.msra.mxu1 %v9135_v25  ;;  %v1722_v34 = vpop.xlane.xlu1 %1721  ;;  %7660 = vmatprep.mubr.msk.f32.mxu0 %vm8485_vm2, %v8484_v60  ;;  %v1725_v63 = vpop.xlane.xlu0 %1724  ;;  %v189_v55 = vld [vmem:[%s10636_s2 + $0x70] sm:$0xff] }
 0x579   :  { %7673 = vmatprep.subr.mxu1 %v8484_v60  ;;  %7649 = vmatmul.mubr.msk.f32.gmra.mxu1 %vm719_vm4, %v1775_v36  ;;  %8227 = vrcp.f32 %v1725_v63 }
 0x57a   :  { %v8220_v23 = vpop.eup %8219  ;;  %7661 = vmatmul.mubr.msk.f32.vlgmr.msra.gmra.mxu0 %vm719_vm4, %v1777_v6  ;;  %7674 = vmatpush3.msra.mxu1 %v8969_v21 }
 0x57b   :  { %7685 = vmatpush3.msra.mxu0 %v9133_v24  ;;  %7663 = vmatprep.mubr.msk.f32.mxu0 %vm8485_vm2, %v8484_v60  ;;  %v1778_v25 = vmul.f32 %v8220_v23, %v9214_v53 }
 0x57c   :  { %7686 = vmatprep.subr.mxu0 %v8484_v60  ;;  %v1734_v7 = vpop.xlane.xlu1 %1733  ;;  %v1719_v31 = vpop.xlane.xlu0 %1718  ;;  %7651 = vmatprep.mubr.msk.f32.mxu1 %vm8485_vm2, %v8484_v60 }
 0x57d   :  { %7687 = vmatpush3.msra.mxu0 %v9269_v0  ;;  %7699 = vmatprep.subr.mxu1 %v8484_v60  ;;  %8229 = vrcp.f32 %v1719_v31 }
 0x57e   :  { %v8222_v5 = vpop.eup %8221  ;;  %7664 = vmatmul.mubr.msk.f32.gmra.mxu0 %vm719_vm4, %v1778_v25  ;;  %7688 = vmatprep.subr.mxu0 %v8484_v60  ;;  %8231 = vrcp.f32 %v1722_v34 }
 0x57f   :  { %v1776_v21 = vmul.f32 %v8222_v5, %v9221_v52  ;;  %7666 = vmatprep.mubr.msk.f32.mxu0 %vm8485_vm2, %v8484_v60  ;;  %v8224_v24 = vpop.eup %8223 }
 0x580   :  { %v1737_v53 = vpop.xlane.xlu1 %1736  ;;  %v1728_v62 = vpop.xlane.xlu0 %1727  ;;  %v1780_v40 = vmul.f32 %v8224_v24, %v9217_v46 }
 0x581   :  { %7652 = vmatmul.mubr.msk.f32.gmra.mxu1 %vm719_vm4, %v1776_v21  ;;  %8233 = vrcp.f32 %v1728_v62 }
 0x582   :  { %v8226_v0 = vpop.eup %8225  ;;  %7675 = vmatprep.mubr.msk.f32.mxu1 %vm8485_vm2, %v8484_v60  ;;  %8235 = vrcp.f32 %v1734_v7 }
 0x583   :  { %v1779_v49 = vmul.f32 %v8226_v0, %v9229_v2 }
 0x584   :  { %v1740_v52 = vpop.xlane.xlu1 %1739  ;;  %v1731_v56 = vpop.xlane.xlu0 %1730 }
 0x585   :  { %7667 = vmatmul.mubr.msk.f32.gmra.mxu0 %vm719_vm4, %v1779_v49  ;;  %7676 = vmatmul.mubr.msk.f32.vlgmr.msra.gmra.mxu1 %vm719_vm4, %v1780_v40  ;;  %8237 = vrcp.f32 %v1731_v56 }
 0x586   :  { %7700 = vmatpush3.msra.mxu1 %v9158_v58  ;;  %7690 = vmatprep.mubr.msk.f32.mxu0 %vm8485_vm2, %v8484_v60  ;;  %v8228_v4 = vpop.eup %8227  ;;  %8239 = vrcp.f32 %v1737_v53 }
 0x587   :  { %7701 = vmatprep.subr.mxu1 %v8484_v60  ;;  %7678 = vmatprep.mubr.msk.f32.mxu1 %vm8485_vm2, %v8484_v60  ;;  %v1783_v46 = vmul.f32 %v8228_v4, %v9235_v8  ;;  %8241 = vrcp.f32 %v1740_v52 }
 0x588   :  { %7702 = vmatpush3.msra.mxu1 %v9289_v18  ;;  %v2548_v2 = vpop.permute.xlu1 %2547  ;;  %v2435_v37 = vpop.permute.xlu0 %2434 }
 0x589   :  { %7703 = vmatprep.subr.mxu1 %v8484_v60  ;;  %7689 = vmatpush3.msra.mxu0 %v2435_v37 }
 0x58a   :  { %7704 = vmatpush3.msra.mxu1 %v2548_v2  ;;  %7691 = vmatmul.mubr.msk.f32.vlgmr.msra.gmra.mxu0 %vm719_vm4, %v1783_v46  ;;  %v8230_v58 = vpop.eup %8229 }
 0x58b   :  { %7693 = vmatprep.mubr.msk.f32.mxu0 %vm8485_vm2, %v8484_v60  ;;  %v1781_v9 = vmul.f32 %v8230_v58, %v9237_v10  ;;  %v8232_v43 = vpop.eup %8231  ;;  %7714 = vmatprep.subr.mxu0 %v192_v30 }
 0x58c   :  { %v1782_v18 = vmul.f32 %v8232_v43, %v9233_v15  ;;  %7715 = vmatpush3.msra.mxu0 %v192_v30 }
 0x58d   :  { %7679 = vmatmul.mubr.msk.f32.gmra.mxu1 %vm719_vm4, %v1781_v9  ;;  %7716 = vmatprep.subr.mxu0 %v191_v47 }
 0x58e   :  { %v8234_v8 = vpop.eup %8233  ;;  %7681 = vmatprep.mubr.msk.f32.mxu1 %vm8485_vm2, %v8484_v60  ;;  %7717 = vmatpush3.msra.mxu0 %v191_v47 }
 0x58f   :  { %v1784_v29 = vmul.f32 %v8234_v8, %v9245_v32  ;;  %v8236_v38 = vpop.eup %8235  ;;  %7718 = vmatprep.subr.mxu0 %v190_v59 }
 0x590   :  { %v1786_v10 = vmul.f32 %v8236_v38, %v9243_v13  ;;  %7719 = vmatpush3.msra.mxu0 %v190_v59 }
 0x591   :  { %7682 = vmatmul.mubr.msk.f32.gmra.mxu1 %vm719_vm4, %v1782_v18  ;;  %7694 = vmatmul.mubr.msk.f32.gmra.mxu0 %vm719_vm4, %v1784_v29 }
 0x592   :  { %v8238_v17 = vpop.eup %8237  ;;  %7696 = vmatprep.mubr.msk.f32.mxu0 %vm8485_vm2, %v8484_v60  ;;  %7705 = vmatprep.mubr.msk.f32.mxu1 %vm8485_vm2, %v8484_v60 }
 0x593   :  { %v1785_v11 = vmul.f32 %v8238_v17, %v9253_v39  ;;  %v8240_v33 = vpop.eup %8239  ;;  %7720 = vmatprep.subr.mxu0 %v189_v55 }
 0x594   :  { %v1787_v15 = vmul.f32 %v8240_v33, %v9251_v26  ;;  %v8242_v32 = vpop.eup %8241  ;;  %7721 = vmatpush3.msra.mxu0 %v189_v55 }
 0x595   :  { %7697 = vmatmul.mubr.msk.f32.gmra.mxu0 %vm719_vm4, %v1785_v11  ;;  %7706 = vmatmul.mubr.msk.f32.vlgmr.msra.gmra.mxu1 %vm719_vm4, %v1786_v10  ;;  %v1788_v13 = vmul.f32 %v8242_v32, %v9259_v45 }
 0x596   :  { %7708 = vmatprep.mubr.msk.f32.mxu1 %vm8485_vm2, %v8484_v60 }
 0x599   :  { %7709 = vmatmul.mubr.msk.f32.gmra.mxu1 %vm719_vm4, %v1787_v15 }
 0x59a   :  { %7711 = vmatprep.mubr.msk.f32.mxu1 %vm8485_vm2, %v8484_v60 }
 0x59d   :  { %7712 = vmatmul.mubr.msk.f32.gmra.mxu1 %vm719_vm4, %v1788_v13 }
 0x5e9   :  { %v1864_v39 = vpop.f32.mrf.mxu0 }
 0x5ea   :  { %1878 = vst.msk [vmem:[#allocation3] sm:$0xff] %vm620_vm3, %v1864_v39 }
 0x5eb   :  { %v7602_v48 = vpop.f32.mrf.mxu0 }
 0x5ed   :  { %v1869_v41 = vpop.f32.mrf.mxu0 }
 0x5ee   :  { %1879 = vst.msk [vmem:[#allocation3 + $0x8] sm:$0xff] %vm620_vm3, %v1869_v41 }
 0x5ef   :  { %v7605_v22 = vpop.f32.mrf.mxu0 }
 0x5f1   :  { %v1874_v57 = vpop.f32.mrf.mxu0 }
 0x5f2   :  { %1880 = vst.msk [vmem:[#allocation3 + $0x10] sm:$0xff] %vm620_vm3, %v1874_v57 }
 0x5f3   :  { %v7608_v26 = vpop.f32.mrf.mxu0 }
 0x61d   :  { %v1968_v51 = vpop.f32.mrf.mxu1 }
 0x61e   :  { %1985 = vrot.lane.b32.xlu0 %v1968_v51, %s8489_s20 }
 0x61f   :  { %v7617_v14 = vpop.f32.mrf.mxu1 }
 0x629   :  { %v2082_v45 = vpop.f32.mrf.mxu0 }
 0x62a   :  { %2099 = vrot.lane.b32.xlu0 %v2082_v45, %s8483_s25 }
 0x62b   :  { %v7632_v42 = vpop.f32.mrf.mxu0 }
 0x62d   :  { %v1973_v54 = vpop.f32.mrf.mxu1 }
 0x62e   :  { %1987 = vrot.lane.b32.xlu0 %v1973_v54, %s8489_s20 }
 0x62f   :  { %v7620_v44 = vpop.f32.mrf.mxu1 }
 0x631   :  { %v1978_v35 = vpop.f32.mrf.mxu1 }
 0x632   :  { %v2087_v1 = vpop.f32.mrf.mxu0 }
 0x633   :  { %2101 = vrot.lane.b32.xlu0 %v2087_v1, %s8483_s25  ;;  %v7623_v50 = vpop.f32.mrf.mxu1 }
 0x634   :  { %v7635_v61 = vpop.f32.mrf.mxu0 }
 0x635   :  { %v2196_v3 = vpop.f32.mrf.mxu1 }
 0x636   :  { %v2092_v36 = vpop.f32.mrf.mxu0 }
 0x637   :  { %1989 = vrot.lane.b32.xlu0 %v1978_v35, %s8489_s20  ;;  %2103 = vrot.lane.b32.xlu1 %v2092_v36, %s8483_s25  ;;  %v7647_v6 = vpop.f32.mrf.mxu1 }
 0x638   :  { %v7638_v34 = vpop.f32.mrf.mxu0 }
 0x639   :  { %v2201_v63 = vpop.f32.mrf.mxu1 }
 0x63a   :  { %v2301_v23 = vpop.f32.mrf.mxu0 }
 0x63b   :  { %2315 = vst.msk [vmem:[#allocation3 + $0x18] sm:$0xff] %vm620_vm3, %v2301_v23  ;;  %2213 = vrot.lane.b32.xlu0 %v2196_v3, %s8490_s29  ;;  %2215 = vrot.lane.b32.xlu1 %v2201_v63, %s8490_s29  ;;  %v7650_v25 = vpop.f32.mrf.mxu1  ;;  %v6941_v3 = vld [vmem:[%s10635_s1 + $0x36] ss:$0 sm:$0xff] }
 0x63c   :  { %v7662_v7 = vpop.f32.mrf.mxu0 }
 0x63e   :  { %v2306_v31 = vpop.f32.mrf.mxu0 }
 0x63f   :  { %2316 = vst.msk [vmem:[#allocation3 + $0x20] sm:$0xff] %vm620_vm3, %v2306_v31 }
 0x640   :  { %v7665_v5 = vpop.f32.mrf.mxu0 }
 0x641   :  { %v2206_v21 = vpop.f32.mrf.mxu1 }
 0x642   :  { %2217 = vrot.lane.b32.xlu1 %v2206_v21, %s8490_s29 }
 0x643   :  { %v7653_v24 = vpop.f32.mrf.mxu1 }
 0x645   :  { %v2311_v53 = vpop.f32.mrf.mxu0  ;;  %v2405_v62 = vpop.f32.mrf.mxu1 }
 0x646   :  { %2317 = vst.msk [vmem:[#allocation3 + $0x28] sm:$0xff] %vm620_vm3, %v2311_v53  ;;  %2422 = vrot.lane.b32.xlu0 %v2405_v62, %s8489_s20 }
 0x647   :  { %v7668_v0 = vpop.f32.mrf.mxu0  ;;  %v7677_v40 = vpop.f32.mrf.mxu1 }
 0x64a   :  { %v2518_v49 = vpop.f32.mrf.mxu0 }
 0x64b   :  { %2535 = vrot.lane.b32.xlu0 %v2518_v49, %s8483_s25 }
 0x64c   :  { %v7692_v52 = vpop.f32.mrf.mxu0 }
 0x64d   :  { %v2410_v56 = vpop.f32.mrf.mxu1 }
 0x64f   :  { %2424 = vrot.lane.b32.xlu0 %v2410_v56, %s8489_s20  ;;  %v7680_v4 = vpop.f32.mrf.mxu1 }
 0x651   :  { %v2415_v46 = vpop.f32.mrf.mxu1  ;;  %v2523_v2 = vpop.f32.mrf.mxu0 }
 0x653   :  { %2537 = vrot.lane.b32.xlu0 %v2523_v2, %s8483_s25  ;;  %v7683_v37 = vpop.f32.mrf.mxu1  ;;  %v7695_v58 = vpop.f32.mrf.mxu0 }
 0x655   :  { %v2528_v9 = vpop.f32.mrf.mxu0  ;;  %v2631_v43 = vpop.f32.mrf.mxu1 }
 0x656   :  { %2648 = vrot.lane.b32.xlu1 %v2631_v43, %s8490_s29 }
 0x657   :  { %v7698_v8 = vpop.f32.mrf.mxu0  ;;  %v7707_v18 = vpop.f32.mrf.mxu1 }
 0x659   :  { %v2636_v29 = vpop.f32.mrf.mxu1 }
 0x65a   :  { %2426 = vrot.lane.b32.xlu1 %v2415_v46, %s8489_s20  ;;  %2650 = vrot.lane.b32.xlu0 %v2636_v29, %s8490_s29 }
 0x65b   :  { %v7710_v38 = vpop.f32.mrf.mxu1 }
 0x65d   :  { %v2641_v17 = vpop.f32.mrf.mxu1 }
 0x65e   :  { %2539 = vrot.lane.b32.xlu1 %v2528_v9, %s8483_s25 }
 0x65f   :  { %v7713_v10 = vpop.f32.mrf.mxu1 }
 0x662   :  { %2652 = vrot.lane.b32.xlu1 %v2641_v17, %s8490_s29 }
 0x690   :  { %v1986_v11 = vpop.permute.xlu0 %1985 }
 0x691   :  { %1995 = vst.msk [vmem:[#allocation3] sm:$0xff] %vm1994_vm5, %v1986_v11 }
 0x69c   :  { %v2100_v33 = vpop.permute.xlu0 %2099 }
 0x69d   :  { %2109 = vst.msk [vmem:[#allocation3] sm:$0xff] %vm2108_vm6, %v2100_v33 }
 0x6a0   :  { %v1988_v15 = vpop.permute.xlu0 %1987 }
 0x6a1   :  { %1996 = vst.msk [vmem:[#allocation3 + $0x8] sm:$0xff] %vm1994_vm5, %v1988_v15 }
 0x6a5   :  { %v2102_v32 = vpop.permute.xlu0 %2101 }
 0x6a6   :  { %2110 = vst.msk [vmem:[#allocation3 + $0x8] sm:$0xff] %vm2108_vm6, %v2102_v32 }
 0x6a9   :  { %v2104_v13 = vpop.permute.xlu1 %2103  ;;  %v1990_v39 = vpop.permute.xlu0 %1989 }
 0x6aa   :  { %1997 = vst.msk [vmem:[#allocation3 + $0x10] sm:$0xff] %vm1994_vm5, %v1990_v39  ;;  %v195_v39 = vld [vmem:[%s10636_s2 + $0xa0] sm:$0xff] }
 0x6ab   :  { %2111 = vst.msk [vmem:[#allocation3 + $0x10] sm:$0xff] %vm2108_vm6, %v2104_v13  ;;  %v196_v13 = vld [vmem:[%s10636_s2 + $0xa8] sm:$0xff] }
 0x6ac   :  { %7731 = vmatprep.subr.mxu1 %v196_v13 }
 0x6ad   :  { %v2216_v48 = vpop.permute.xlu1 %2215  ;;  %v2214_v41 = vpop.permute.xlu0 %2213  ;;  %7732 = vmatpush3.msra.mxu1 %v196_v13 }
 0x6ae   :  { %2224 = vst.msk [vmem:[#allocation3 + $0x8] sm:$0xff] %vm2222_vm7, %v2216_v48  ;;  %2223 = vst.msk [vmem:[#allocation3] sm:$0xff] %vm2222_vm7, %v2214_v41  ;;  %v194_v41 = vld [vmem:[%s10636_s2 + $0x98] sm:$0xff]  ;;  %7733 = vmatprep.subr.mxu1 %v195_v39 }
 0x6af   :  { %7734 = vmatpush3.msra.mxu1 %v195_v39 }
 0x6b0   :  { %7735 = vmatprep.subr.mxu1 %v194_v41 }
 0x6b1   :  { %7736 = vmatpush3.msra.mxu1 %v194_v41 }
 0x6b4   :  { %v2218_v22 = vpop.permute.xlu1 %2217 }
 0x6b5   :  { %2225 = vst.msk [vmem:[#allocation3 + $0x10] sm:$0xff] %vm2222_vm7, %v2218_v22  ;;  %v2660_v57 = vld [vmem:[#allocation3] sm:$0xff]  ;;  %v2661_v26 = vld [vmem:[#allocation3 + $0x8] sm:$0xff] }
 0x6b6   :  { %7722 = vmatprep.mubr.msk.f32.mxu0 %vm205_vm1, %v2660_v57 }
 0x6b7   :  { %7723 = vmatmul.mubr.msk.f32.vlgmr.msra.gmra.mxu0 %vm205_vm1, %v2661_v26 }
 0x6b8   :  { %v2423_v51 = vpop.permute.xlu0 %2422 }
 0x6b9   :  { %2431 = vst.msk [vmem:[#allocation3 + $0x18] sm:$0xff] %vm1994_vm5, %v2423_v51  ;;  %v193_v51 = vld [vmem:[%s10636_s2 + $0x90] sm:$0xff] }
 0x6ba   :  { %7737 = vmatprep.subr.mxu1 %v193_v51 }
 0x6bb   :  { %7738 = vmatpush3.msra.mxu1 %v193_v51  ;;  %v200_v51 = vld [vmem:[%s10636_s2 + $0xc8] sm:$0xff] }
 0x6bc   :  { %v2662_v14 = vld [vmem:[#allocation3 + $0x10] sm:$0xff] }
 0x6bd   :  { %7725 = vmatprep.mubr.msk.f32.mxu0 %vm205_vm1, %v2662_v14  ;;  %v2536_v45 = vpop.permute.xlu0 %2535 }
 0x6be   :  { %2544 = vst.msk [vmem:[#allocation3 + $0x18] sm:$0xff] %vm2108_vm6, %v2536_v45 }
 0x6c1   :  { %v2425_v42 = vpop.permute.xlu0 %2424 }
 0x6c2   :  { %2432 = vst.msk [vmem:[#allocation3 + $0x20] sm:$0xff] %vm1994_vm5, %v2425_v42 }
 0x6c5   :  { %v2538_v54 = vpop.permute.xlu0 %2537 }
 0x6c6   :  { %2545 = vst.msk [vmem:[#allocation3 + $0x20] sm:$0xff] %vm2108_vm6, %v2538_v54 }
 0x6c8   :  { %v2649_v30 = vpop.permute.xlu1 %2648 }
 0x6c9   :  { %2657 = vst.msk [vmem:[#allocation3 + $0x18] sm:$0xff] %vm2222_vm7, %v2649_v30 }
 0x6cc   :  { %v2427_v47 = vpop.permute.xlu1 %2426  ;;  %v2651_v44 = vpop.permute.xlu0 %2650 }
 0x6cd   :  { %2433 = vst.msk [vmem:[#allocation3 + $0x28] sm:$0xff] %vm1994_vm5, %v2427_v47 }
 0x6ce   :  { %2658 = vst.msk [vmem:[#allocation3 + $0x20] sm:$0xff] %vm2222_vm7, %v2651_v44 }
 0x6d0   :  { %v2540_v59 = vpop.permute.xlu1 %2539  ;;  %v2663_v35 = vld [vmem:[#allocation3 + $0x18] sm:$0xff] }
 0x6d1   :  { %2546 = vst.msk [vmem:[#allocation3 + $0x28] sm:$0xff] %vm2108_vm6, %v2540_v59  ;;  %7726 = vmatmul.mubr.msk.f32.gmra.mxu0 %vm205_vm1, %v2663_v35 }
 0x6d4   :  { %v2653_v1 = vpop.permute.xlu1 %2652 }
 0x6d5   :  { %v2664_v50 = vld [vmem:[#allocation3 + $0x20] sm:$0xff]  ;;  %2659 = vst.msk [vmem:[#allocation3 + $0x28] sm:$0xff] %vm2222_vm7, %v2653_v1 }
 0x6d6   :  { %7728 = vmatprep.mubr.msk.f32.mxu0 %vm205_vm1, %v2664_v50 }
 0x6dc   :  { %v2665_v61 = vld [vmem:[#allocation3 + $0x28] sm:$0xff] }
 0x6dd   :  { %7729 = vmatmul.mubr.msk.f32.gmra.mxu0 %vm205_vm1, %v2665_v61 }
 0x777   :  { %v7724_v55 = vpop.f32.mrf.mxu0 }
 0x778   :  { %v2780_v36 = vadd.f32 %v7724_v55, %v8576_v16 }
 0x779   :  { %v2750_v6 = vpop.f32.mrf.mxu0 }
 0x77a   :  { %v9461_v34 = vadd.f32 %v6941_v3, %v2780_v36  ;;  %v2779_v63 = vadd.f32 %v2750_v6, %v8568_v12 }
 0x77c   :  { %v9464_v23 = vadd.f32 %v6941_v3, %v2779_v63  ;;  %v2798_v25 = vsel %vm205_vm1, %v9461_v34, 0.0  ;;  %v6942_v63 = vld [vmem:[%s10635_s1 + $0x37] ss:$0 sm:$0xff] }
 0x77d   :  { %2799 = vadd.xlane.f32.xlu1 %v2798_v25 }
 0x77e   :  { %v2795_v7 = vsel %vm205_vm1, %v9464_v23, 0.0 }
 0x77f   :  { %2796 = vadd.xlane.f32.xlu0 %v2795_v7 }
 0x791   :  { %v7727_v31 = vpop.f32.mrf.mxu0 }
 0x792   :  { %v2782_v21 = vadd.f32 %v7727_v31, %v8580_v19 }
 0x793   :  { %v2760_v5 = vpop.f32.mrf.mxu0 }
 0x794   :  { %v2781_v16 = vadd.f32 %v2760_v5, %v8582_v20  ;;  %v9474_v53 = vadd.f32 %v6941_v3, %v2782_v21  ;;  %v6943_v5 = vld [vmem:[%s10635_s1 + $0x38] ss:$0 sm:$0xff] }
 0x796   :  { %v9472_v24 = vadd.f32 %v6941_v3, %v2781_v16  ;;  %v2804_v62 = vsel %vm205_vm1, %v9474_v53, 0.0 }
 0x798   :  { %v2801_v12 = vsel %vm205_vm1, %v9472_v24, 0.0 }
 0x799   :  { %2802 = vadd.xlane.f32.xlu0 %v2801_v12 }
 0x79d   :  { %2805 = vadd.xlane.f32.xlu0 %v2804_v62  ;;  %v7730_v0 = vpop.f32.mrf.mxu0 }
 0x79e   :  { %v2784_v40 = vadd.f32 %v7730_v0, %v8594_v27 }
 0x79f   :  { %v2770_v49 = vpop.f32.mrf.mxu0 }
 0x7a0   :  { %v9481_v52 = vadd.f32 %v6941_v3, %v2784_v40  ;;  %v2783_v19 = vadd.f32 %v2770_v49, %v8596_v28 }
 0x7a2   :  { %v9484_v20 = vadd.f32 %v6941_v3, %v2783_v19  ;;  %v2810_v56 = vsel %vm205_vm1, %v9481_v52, 0.0 }
 0x7a3   :  { %2811 = vadd.xlane.f32.xlu0 %v2810_v56 }
 0x7a4   :  { %v2807_v4 = vsel %vm205_vm1, %v9484_v20, 0.0 }
 0x7a5   :  { %2808 = vadd.xlane.f32.xlu1 %v2807_v4 }
 0x806   :  { %v2800_v46 = vpop.xlane.xlu1 %2799 }
 0x807   :  { %v2814_v2 = vmul.f32 0.03125, %v2800_v46 }
 0x808   :  { %v2797_v37 = vpop.xlane.xlu0 %2796 }
 0x809   :  { %v2820_v27 = vsub.f32 %v9461_v34, %v2814_v2  ;;  %v2813_v58 = vmul.f32 0.03125, %v2797_v37 }
 0x80b   :  { %v2819_v9 = vsub.f32 %v9464_v23, %v2813_v58  ;;  %v2826_v43 = vmul.f32 %v2820_v27, %v2820_v27 }
 0x80d   :  { %v2834_v28 = vsel %vm205_vm1, %v2826_v43, 0.0  ;;  %v2825_v8 = vmul.f32 %v2819_v9, %v2819_v9 }
 0x80e   :  { %2835 = vadd.xlane.f32.xlu0 %v2834_v28 }
 0x80f   :  { %v2831_v18 = vsel %vm205_vm1, %v2825_v8, 0.0 }
 0x810   :  { %2832 = vadd.xlane.f32.xlu1 %v2831_v18 }
 0x822   :  { %v2803_v29 = vpop.xlane.xlu0 %2802 }
 0x823   :  { %v2815_v38 = vmul.f32 0.03125, %v2803_v29 }
 0x825   :  { %v9495_v17 = vsub.f32 %v9472_v24, %v2815_v38 }
 0x826   :  { %v2806_v10 = vpop.xlane.xlu0 %2805 }
 0x827   :  { %v2816_v11 = vmul.f32 0.03125, %v2806_v10  ;;  %v2827_v33 = vmul.f32 %v9495_v17, %v9495_v17 }
 0x829   :  { %v9500_v15 = vsub.f32 %v9474_v53, %v2816_v11  ;;  %v2837_v32 = vsel %vm205_vm1, %v2827_v33, 0.0 }
 0x82a   :  { %2838 = vadd.xlane.f32.xlu1 %v2837_v32 }
 0x82b   :  { %v2828_v48 = vmul.f32 %v9500_v15, %v9500_v15 }
 0x82c   :  { %v2812_v22 = vpop.xlane.xlu0 %2811 }
 0x82d   :  { %v2818_v57 = vmul.f32 0.03125, %v2812_v22  ;;  %v2840_v26 = vsel %vm205_vm1, %v2828_v48, 0.0 }
 0x82e   :  { %v2809_v14 = vpop.xlane.xlu1 %2808  ;;  %2841 = vadd.xlane.f32.xlu0 %v2840_v26  ;;  %v201_v26 = vld [vmem:[%s10636_s2 + $0xd0] sm:$0xff] }
 0x82f   :  { %v2824_v45 = vsub.f32 %v9481_v52, %v2818_v57  ;;  %v2817_v42 = vmul.f32 0.03125, %v2809_v14  ;;  %v202_v57 = vld [vmem:[%s10636_s2 + $0xd8] sm:$0xff]  ;;  %v199_v14 = vld [vmem:[%s10636_s2 + $0xc0] sm:$0xff] }
 0x831   :  { %v2823_v54 = vsub.f32 %v9484_v20, %v2817_v42  ;;  %v2830_v30 = vmul.f32 %v2824_v45, %v2824_v45  ;;  %v197_v42 = vld [vmem:[%s10636_s2 + $0xb0] sm:$0xff] }
 0x833   :  { %v2846_v47 = vsel %vm205_vm1, %v2830_v30, 0.0  ;;  %v2829_v44 = vmul.f32 %v2823_v54, %v2823_v54 }
 0x834   :  { %2847 = vadd.xlane.f32.xlu0 %v2846_v47 }
 0x835   :  { %v2843_v59 = vsel %vm205_vm1, %v2829_v44, 0.0 }
 0x836   :  { %2844 = vadd.xlane.f32.xlu1 %v2843_v59 }
 0x897   :  { %v2836_v35 = vpop.xlane.xlu0 %2835 }
 0x898   :  { %v2850_v1 = vmul.f32 0.03125, %v2836_v35 }
 0x899   :  { %v2833_v50 = vpop.xlane.xlu1 %2832 }
 0x89a   :  { %v2856_v61 = vadd.f32 1e-12, %v2850_v1  ;;  %v2849_v3 = vmul.f32 0.03125, %v2833_v50 }
 0x89c   :  { %8243 = vrsqrt.f32 %v2856_v61  ;;  %v2855_v55 = vadd.f32 1e-12, %v2849_v3 }
 0x89e   :  { %8245 = vrsqrt.f32 %v2855_v55 }
 0x8a9   :  { %v8244_v36 = vpop.eup %8243 }
 0x8aa   :  { %v2868_v6 = vmul.f32 %v8244_v36, %v2820_v27 }
 0x8ab   :  { %v8246_v25 = vpop.eup %8245 }
 0x8ac   :  { %v2867_v7 = vmul.f32 %v8246_v25, %v2819_v9  ;;  %v2878_v31 = vmul.f32 %v6942_v63, %v2868_v6 }
 0x8ae   :  { %v2877_v21 = vmul.f32 %v6942_v63, %v2867_v7  ;;  %v2888_v12 = vadd.f32 %v6943_v5, %v2878_v31 }
 0x8b0   :  { %v2887_v16 = vadd.f32 %v6943_v5, %v2877_v21 }
 0x8b2   :  { %7739 = vmatprep.mubr.msk.f32.mxu1 %vm205_vm1, %v2887_v16 }
 0x8b3   :  { %7740 = vmatmul.mubr.msk.f32.vlgmr.msra.gmra.mxu1 %vm205_vm1, %v2888_v12  ;;  %v2839_v62 = vpop.xlane.xlu1 %2838 }
 0x8b4   :  { %v2851_v0 = vmul.f32 0.03125, %v2839_v62 }
 0x8b6   :  { %v2857_v40 = vadd.f32 1e-12, %v2851_v0 }
 0x8b7   :  { %v2842_v49 = vpop.xlane.xlu0 %2841 }
 0x8b8   :  { %8247 = vrsqrt.f32 %v2857_v40  ;;  %v2852_v19 = vmul.f32 0.03125, %v2842_v49 }
 0x8ba   :  { %v2858_v56 = vadd.f32 1e-12, %v2852_v19 }
 0x8bc   :  { %8249 = vrsqrt.f32 %v2858_v56 }
 0x8bd   :  { %v2848_v4 = vpop.xlane.xlu0 %2847 }
 0x8be   :  { %v2854_v46 = vmul.f32 0.03125, %v2848_v4 }
 0x8bf   :  { %v2845_v2 = vpop.xlane.xlu1 %2844 }
 0x8c0   :  { %v2860_v37 = vadd.f32 1e-12, %v2854_v46  ;;  %v2853_v27 = vmul.f32 0.03125, %v2845_v2 }
 0x8c2   :  { %8251 = vrsqrt.f32 %v2860_v37  ;;  %v2859_v58 = vadd.f32 1e-12, %v2853_v27 }
 0x8c4   :  { %8253 = vrsqrt.f32 %v2859_v58 }
 0x8c5   :  { %v8248_v9 = vpop.eup %8247 }
 0x8c6   :  { %v2869_v43 = vmul.f32 %v8248_v9, %v9495_v17  ;;  %v204_v17 = vld [vmem:[%s10636_s2 + $0xe8] sm:$0xff] }
 0x8c7   :  { %7748 = vmatprep.subr.mxu0 %v204_v17 }
 0x8c8   :  { %v2879_v28 = vmul.f32 %v6942_v63, %v2869_v43  ;;  %7749 = vmatpush3.msra.mxu0 %v204_v17 }
 0x8c9   :  { %v8250_v8 = vpop.eup %8249 }
 0x8ca   :  { %v2889_v18 = vadd.f32 %v6943_v5, %v2879_v28  ;;  %v2870_v29 = vmul.f32 %v8250_v8, %v9500_v15  ;;  %v203_v15 = vld [vmem:[%s10636_s2 + $0xe0] sm:$0xff] }
 0x8cb   :  { %7750 = vmatprep.subr.mxu0 %v203_v15 }
 0x8cc   :  { %7742 = vmatprep.mubr.msk.f32.mxu1 %vm205_vm1, %v2889_v18  ;;  %v2880_v38 = vmul.f32 %v6942_v63, %v2870_v29  ;;  %7751 = vmatpush3.msra.mxu0 %v203_v15 }
 0x8cd   :  { %7752 = vmatprep.subr.mxu0 %v202_v57 }
 0x8ce   :  { %v2890_v10 = vadd.f32 %v6943_v5, %v2880_v38  ;;  %7753 = vmatpush3.msra.mxu0 %v202_v57 }
 0x8cf   :  { %v8252_v11 = vpop.eup %8251  ;;  %7754 = vmatprep.subr.mxu0 %v201_v26 }
 0x8d0   :  { %7743 = vmatmul.mubr.msk.f32.gmra.mxu1 %vm205_vm1, %v2890_v10  ;;  %v2872_v33 = vmul.f32 %v8252_v11, %v2824_v45  ;;  %7755 = vmatpush3.msra.mxu0 %v201_v26  ;;  %v198_v45 = vld [vmem:[%s10636_s2 + $0xb8] sm:$0xff] }
 0x8d1   :  { %v8254_v32 = vpop.eup %8253  ;;  %7756 = vmatprep.subr.mxu0 %v200_v51 }
 0x8d2   :  { %v2871_v13 = vmul.f32 %v8254_v32, %v2823_v54  ;;  %v2882_v39 = vmul.f32 %v6942_v63, %v2872_v33  ;;  %7757 = vmatpush3.msra.mxu0 %v200_v51  ;;  %v6944_v54 = vld [vmem:[%s10635_s1 + $0x39] ss:$0 sm:$0xff] }
 0x8d3   :  { %7758 = vmatprep.subr.mxu0 %v199_v14 }
 0x8d4   :  { %v2881_v48 = vmul.f32 %v6942_v63, %v2871_v13  ;;  %v2892_v22 = vadd.f32 %v6943_v5, %v2882_v39  ;;  %7759 = vmatpush3.msra.mxu0 %v199_v14 }
 0x8d5   :  { %7760 = vmatprep.subr.mxu0 %v198_v45 }
 0x8d6   :  { %v2891_v41 = vadd.f32 %v6943_v5, %v2881_v48  ;;  %7761 = vmatpush3.msra.mxu0 %v198_v45 }
 0x8d7   :  { %7762 = vmatprep.subr.mxu0 %v197_v42 }
 0x8d8   :  { %7745 = vmatprep.mubr.msk.f32.mxu1 %vm205_vm1, %v2891_v41  ;;  %7763 = vmatpush3.msra.mxu0 %v197_v42 }
 0x8d9   :  { %7746 = vmatmul.mubr.msk.f32.gmra.mxu1 %vm205_vm1, %v2892_v22 }
 0x973   :  { %v7741_v30 = vpop.f32.mrf.mxu1 }
 0x974   :  { %v2987_v47 = vadd.f32 %v7741_v30, %v6944_v54 }
 0x975   :  { %v2981_v44 = vpop.f32.mrf.mxu1 }
 0x976   :  { %v3017_v59 = vmul.f32 0.044715, %v2987_v47  ;;  %v2982_v35 = vadd.f32 %v6944_v54, %v2981_v44  ;;  %v3011_v12 = vmul.f32 0.5, %v2987_v47 }
 0x978   :  { %v3023_v1 = vmul.f32 %v3017_v59, %v2987_v47  ;;  %v3016_v50 = vmul.f32 0.044715, %v2982_v35  ;;  %v3010_v21 = vmul.f32 0.5, %v2982_v35 }
 0x97a   :  { %v3029_v61 = vmul.f32 %v3023_v1, %v2987_v47  ;;  %v3022_v3 = vmul.f32 %v3016_v50, %v2982_v35 }
 0x97c   :  { %v3035_v55 = vadd.f32 %v3029_v61, %v2987_v47  ;;  %v3028_v36 = vmul.f32 %v3022_v3, %v2982_v35 }
 0x97e   :  { %v3041_v6 = vmul.f32 0.7978846, %v3035_v55  ;;  %v3034_v63 = vadd.f32 %v3028_v36, %v2982_v35  ;;  %v6957_v55 = vld [vmem:[%s10635_s1 + $0x3a] ss:$0 sm:$0xff] }
 0x980   :  { %8255 = vtanh.f32 %v3041_v6  ;;  %v3040_v25 = vmul.f32 0.7978846, %v3034_v63 }
 0x982   :  { %8257 = vtanh.f32 %v3040_v25 }
 0x98d   :  { %v8256_v7 = vpop.eup %8255 }
 0x98e   :  { %v3053_v5 = vadd.f32 1.0, %v8256_v7 }
 0x98f   :  { %v8258_v31 = vpop.eup %8257 }
 0x990   :  { %v3052_v16 = vadd.f32 1.0, %v8258_v31  ;;  %v7744_v62 = vpop.f32.mrf.mxu1  ;;  %v3059_v49 = vmul.f32 %v3053_v5, %v3011_v12 }
 0x991   :  { %v2997_v0 = vadd.f32 %v7744_v62, %v6944_v54 }
 0x992   :  { %v3058_v40 = vmul.f32 %v3052_v16, %v3010_v21  ;;  %v2991_v19 = vpop.f32.mrf.mxu1 }
 0x993   :  { %v3019_v56 = vmul.f32 0.044715, %v2997_v0  ;;  %v2992_v4 = vadd.f32 %v6944_v54, %v2991_v19  ;;  %v3013_v42 = vmul.f32 0.5, %v2997_v0 }
 0x994   :  { %7764 = vmatprep.mubr.msk.f32.mxu0 %vm3064_vm8, %v3058_v40 }
 0x995   :  { %7765 = vmatmul.mubr.msk.f32.vlgmr.msra.gmra.mxu0 %vm3064_vm8, %v3059_v49  ;;  %v3025_v46 = vmul.f32 %v3019_v56, %v2997_v0  ;;  %v3018_v2 = vmul.f32 0.044715, %v2992_v4  ;;  %v3012_v14 = vmul.f32 0.5, %v2992_v4 }
 0x997   :  { %v3031_v37 = vmul.f32 %v3025_v46, %v2997_v0  ;;  %v3024_v27 = vmul.f32 %v3018_v2, %v2992_v4 }
 0x999   :  { %v3037_v58 = vadd.f32 %v3031_v37, %v2997_v0  ;;  %v3030_v9 = vmul.f32 %v3024_v27, %v2992_v4  ;;  %v7747_v43 = vpop.f32.mrf.mxu1 }
 0x99a   :  { %v3007_v28 = vadd.f32 %v7747_v43, %v6944_v54 }
 0x99b   :  { %v3036_v8 = vadd.f32 %v3030_v9, %v2992_v4  ;;  %v3001_v18 = vpop.f32.mrf.mxu1  ;;  %v3043_v29 = vmul.f32 0.7978846, %v3037_v58 }
 0x99c   :  { %v3021_v38 = vmul.f32 0.044715, %v3007_v28  ;;  %v3002_v10 = vadd.f32 %v6944_v54, %v3001_v18  ;;  %v3015_v50 = vmul.f32 0.5, %v3007_v28 }
 0x99d   :  { %v3042_v11 = vmul.f32 0.7978846, %v3036_v8  ;;  %8259 = vtanh.f32 %v3043_v29 }
 0x99e   :  { %v3027_v33 = vmul.f32 %v3021_v38, %v3007_v28  ;;  %v3020_v32 = vmul.f32 0.044715, %v3002_v10  ;;  %v3014_v35 = vmul.f32 0.5, %v3002_v10 }
 0x99f   :  { %8261 = vtanh.f32 %v3042_v11 }
 0x9a0   :  { %v3033_v13 = vmul.f32 %v3027_v33, %v3007_v28  ;;  %v3026_v39 = vmul.f32 %v3020_v32, %v3002_v10 }
 0x9a2   :  { %v3039_v48 = vadd.f32 %v3033_v13, %v3007_v28  ;;  %v3032_v41 = vmul.f32 %v3026_v39, %v3002_v10 }
 0x9a4   :  { %v3038_v22 = vadd.f32 %v3032_v41, %v3002_v10  ;;  %v3045_v17 = vmul.f32 0.7978846, %v3039_v48  ;;  %v3207_v48 = vld [vmem:[%s10636_s2 + $0x108] sm:$0xff] }
 0x9a5   :  { %v3211_v41 = vld [vmem:[%s10636_s2 + $0x128] sm:$0xff]  ;;  %7773 = vmatprep.subr.mxu1 %v3207_v48 }
 0x9a6   :  { %v3044_v15 = vmul.f32 0.7978846, %v3038_v22  ;;  %8263 = vtanh.f32 %v3045_v17  ;;  %v3206_v22 = vld [vmem:[%s10636_s2 + $0x100] sm:$0xff]  ;;  %7790 = vmatprep.subr.mxu0 %v3211_v41  ;;  %7774 = vmatpush3.msra.mxu1 %v3207_v48 }
 0x9a7   :  { %7791 = vmatpush3.msra.mxu0 %v3211_v41  ;;  %7775 = vmatprep.subr.mxu1 %v3206_v22 }
 0x9a8   :  { %8265 = vtanh.f32 %v3044_v15  ;;  %7776 = vmatpush3.msra.mxu1 %v3206_v22 }
 0x9aa   :  { %v8260_v57 = vpop.eup %8259 }
 0x9ab   :  { %v3055_v51 = vadd.f32 1.0, %v8260_v57  ;;  %v3210_v57 = vld [vmem:[%s10636_s2 + $0x120] sm:$0xff] }
 0x9ac   :  { %v8262_v26 = vpop.eup %8261  ;;  %7792 = vmatprep.subr.mxu0 %v3210_v57 }
 0x9ad   :  { %v3054_v45 = vadd.f32 1.0, %v8262_v26  ;;  %v3061_v30 = vmul.f32 %v3055_v51, %v3013_v42  ;;  %7793 = vmatpush3.msra.mxu0 %v3210_v57 }
 0x9af   :  { %v3060_v54 = vmul.f32 %v3054_v45, %v3012_v14  ;;  %v3205_v14 = vld [vmem:[%s10636_s2 + $0xf8] sm:$0xff] }
 0x9b0   :  { %v3209_v45 = vld [vmem:[%s10636_s2 + $0x118] sm:$0xff]  ;;  %7777 = vmatprep.subr.mxu1 %v3205_v14 }
 0x9b1   :  { %7767 = vmatprep.mubr.msk.f32.mxu0 %vm3064_vm8, %v3060_v54  ;;  %7794 = vmatprep.subr.mxu0 %v3209_v45 }
 0x9b2   :  { %7768 = vmatmul.mubr.msk.f32.gmra.mxu0 %vm3064_vm8, %v3061_v30  ;;  %v3204_v30 = vld [vmem:[%s10636_s2 + $0xf0] sm:$0xff]  ;;  %7778 = vmatpush3.msra.mxu1 %v3205_v14 }
 0x9b3   :  { %v8264_v47 = vpop.eup %8263  ;;  %7795 = vmatpush3.msra.mxu0 %v3209_v45  ;;  %7779 = vmatprep.subr.mxu1 %v3204_v30 }
 0x9b4   :  { %v3057_v59 = vadd.f32 1.0, %v8264_v47  ;;  %v3208_v47 = vld [vmem:[%s10636_s2 + $0x110] sm:$0xff]  ;;  %7780 = vmatpush3.msra.mxu1 %v3204_v30  ;;  %v6967_v30 = vld [vmem:[%s10635_s1 + $0x3e] ss:$0 sm:$0xff] }
 0x9b5   :  { %v8266_v44 = vpop.eup %8265  ;;  %7796 = vmatprep.subr.mxu0 %v3208_v47 }
 0x9b6   :  { %v3056_v1 = vadd.f32 1.0, %v8266_v44  ;;  %v3063_v3 = vmul.f32 %v3057_v59, %v3015_v50  ;;  %7797 = vmatpush3.msra.mxu0 %v3208_v47 }
 0x9b7   :  { %7824 = vmatprep.subr.mxu0 %v8484_v60 }
 0x9b8   :  { %v3062_v61 = vmul.f32 %v3056_v1, %v3014_v35 }
 0x9ba   :  { %7770 = vmatprep.mubr.msk.f32.mxu0 %vm3064_vm8, %v3062_v61 }
 0x9bb   :  { %7771 = vmatmul.mubr.msk.f32.gmra.mxu0 %vm3064_vm8, %v3063_v3 }
 0xa55   :  { %v7766_v36 = vpop.f32.mrf.mxu0 }
 0xa56   :  { %v3179_v6 = vadd.f32 %v7766_v36, %v9461_v34 }
 0xa57   :  { %v3149_v63 = vpop.f32.mrf.mxu0 }
 0xa58   :  { %v9573_v25 = vadd.f32 %v6957_v55, %v3179_v6  ;;  %v3178_v7 = vadd.f32 %v3149_v63, %v9464_v23 }
 0xa5a   :  { %v9576_v31 = vadd.f32 %v6957_v55, %v3178_v7  ;;  %v3235_v5 = vsel %vm205_vm1, %v9573_v25, 0.0 }
 0xa5b   :  { %3236 = vadd.xlane.f32.xlu0 %v3235_v5 }
 0xa5c   :  { %v3232_v21 = vsel %vm205_vm1, %v9576_v31, 0.0 }
 0xa5d   :  { %3233 = vadd.xlane.f32.xlu1 %v3232_v21 }
 0xa72   :  { %v7769_v16 = vpop.f32.mrf.mxu0 }
 0xa73   :  { %v3181_v12 = vadd.f32 %v7769_v16, %v9474_v53 }
 0xa74   :  { %v3159_v62 = vpop.f32.mrf.mxu0 }
 0xa75   :  { %v9583_v34 = vadd.f32 %v6957_v55, %v3181_v12  ;;  %v3180_v0 = vadd.f32 %v3159_v62, %v9472_v24  ;;  %v6958_v62 = vld [vmem:[%s10635_s1 + $0x3b] ss:$0 sm:$0xff] }
 0xa77   :  { %v9586_v40 = vadd.f32 %v6957_v55, %v3180_v0  ;;  %v3241_v23 = vsel %vm205_vm1, %v9583_v34, 0.0 }
 0xa78   :  { %3242 = vadd.xlane.f32.xlu0 %v3241_v23 }
 0xa79   :  { %v3238_v49 = vsel %vm205_vm1, %v9586_v40, 0.0 }
 0xa7a   :  { %3239 = vadd.xlane.f32.xlu1 %v3238_v49 }
 0xa7b   :  { %v7772_v19 = vpop.f32.mrf.mxu0 }
 0xa7c   :  { %v3183_v56 = vadd.f32 %v7772_v19, %v9481_v52  ;;  %v6959_v19 = vld [vmem:[%s10635_s1 + $0x3c] ss:$0 sm:$0xff] }
 0xa7d   :  { %v3169_v4 = vpop.f32.mrf.mxu0 }
 0xa7e   :  { %v9593_v53 = vadd.f32 %v6957_v55, %v3183_v56  ;;  %v3182_v46 = vadd.f32 %v3169_v4, %v9484_v20 }
 0xa80   :  { %v9596_v2 = vadd.f32 %v6957_v55, %v3182_v46  ;;  %v3247_v24 = vsel %vm205_vm1, %v9593_v53, 0.0  ;;  %v3215_v55 = vld [vmem:[%s10636_s2 + $0x148] sm:$0xff] }
 0xa81   :  { %3248 = vadd.xlane.f32.xlu0 %v3247_v24  ;;  %7807 = vmatprep.subr.mxu1 %v3215_v55  ;;  %v3214_v24 = vld [vmem:[%s10636_s2 + $0x140] sm:$0xff] }
 0xa82   :  { %v3244_v37 = vsel %vm205_vm1, %v9596_v2, 0.0 }
 0xa83   :  { %3245 = vadd.xlane.f32.xlu1 %v3244_v37  ;;  %v3213_v37 = vld [vmem:[%s10636_s2 + $0x138] sm:$0xff] }
 0xae4   :  { %v3237_v27 = vpop.xlane.xlu0 %3236 }
 0xae5   :  { %v3251_v58 = vmul.f32 0.03125, %v3237_v27 }
 0xae6   :  { %v3234_v9 = vpop.xlane.xlu1 %3233 }
 0xae7   :  { %v9603_v52 = vsub.f32 %v9573_v25, %v3251_v58  ;;  %v3250_v43 = vmul.f32 0.03125, %v3234_v9  ;;  %v3212_v9 = vld [vmem:[%s10636_s2 + $0x130] sm:$0xff] }
 0xae9   :  { %v9606_v28 = vsub.f32 %v9576_v31, %v3250_v43  ;;  %v3263_v20 = vmul.f32 %v9603_v52, %v9603_v52 }
 0xaeb   :  { %v3271_v8 = vsel %vm205_vm1, %v3263_v20, 0.0  ;;  %v3262_v18 = vmul.f32 %v9606_v28, %v9606_v28 }
 0xaec   :  { %3272 = vadd.xlane.f32.xlu0 %v3271_v8 }
 0xaed   :  { %v3268_v29 = vsel %vm205_vm1, %v3262_v18, 0.0 }
 0xaee   :  { %3269 = vadd.xlane.f32.xlu1 %v3268_v29 }
 0xb01   :  { %v3243_v38 = vpop.xlane.xlu0 %3242 }
 0xb02   :  { %v3253_v10 = vmul.f32 0.03125, %v3243_v38 }
 0xb03   :  { %v3240_v11 = vpop.xlane.xlu1 %3239 }
 0xb04   :  { %v9615_v33 = vsub.f32 %v9583_v34, %v3253_v10  ;;  %v3252_v32 = vmul.f32 0.03125, %v3240_v11 }
 0xb06   :  { %v9618_v13 = vsub.f32 %v9586_v40, %v3252_v32  ;;  %v3265_v39 = vmul.f32 %v9615_v33, %v9615_v33 }
 0xb08   :  { %v3277_v17 = vsel %vm205_vm1, %v3265_v39, 0.0  ;;  %v3264_v15 = vmul.f32 %v9618_v13, %v9618_v13 }
 0xb09   :  { %3278 = vadd.xlane.f32.xlu0 %v3277_v17 }
 0xb0a   :  { %v3249_v26 = vpop.xlane.xlu0 %3248  ;;  %v3274_v51 = vsel %vm205_vm1, %v3264_v15, 0.0 }
 0xb0b   :  { %v3255_v42 = vmul.f32 0.03125, %v3249_v26  ;;  %3275 = vadd.xlane.f32.xlu1 %v3274_v51 }
 0xb0c   :  { %v3246_v54 = vpop.xlane.xlu1 %3245 }
 0xb0d   :  { %v9651_v44 = vsub.f32 %v9593_v53, %v3255_v42  ;;  %v3254_v59 = vmul.f32 0.03125, %v3246_v54 }
 0xb0f   :  { %v9654_v35 = vsub.f32 %v9596_v2, %v3254_v59  ;;  %v3267_v1 = vmul.f32 %v9651_v44, %v9651_v44 }
 0xb11   :  { %v3283_v50 = vsel %vm205_vm1, %v3267_v1, 0.0  ;;  %v3266_v61 = vmul.f32 %v9654_v35, %v9654_v35 }
 0xb12   :  { %3284 = vadd.xlane.f32.xlu0 %v3283_v50 }
 0xb13   :  { %v3280_v3 = vsel %vm205_vm1, %v3266_v61, 0.0 }
 0xb14   :  { %3281 = vadd.xlane.f32.xlu1 %v3280_v3 }
 0xb75   :  { %v3273_v36 = vpop.xlane.xlu0 %3272 }
 0xb76   :  { %v3287_v6 = vmul.f32 0.03125, %v3273_v36 }
 0xb77   :  { %v3270_v63 = vpop.xlane.xlu1 %3269 }
 0xb78   :  { %v3293_v7 = vadd.f32 1e-12, %v3287_v6  ;;  %v3286_v5 = vmul.f32 0.03125, %v3270_v63 }
 0xb7a   :  { %8267 = vrsqrt.f32 %v3293_v7  ;;  %v3292_v21 = vadd.f32 1e-12, %v3286_v5 }
 0xb7c   :  { %8269 = vrsqrt.f32 %v3292_v21 }
 0xb87   :  { %v8268_v16 = vpop.eup %8267 }
 0xb88   :  { %v3305_v12 = vmul.f32 %v8268_v16, %v9603_v52 }
 0xb89   :  { %v8270_v0 = vpop.eup %8269 }
 0xb8a   :  { %v3304_v23 = vmul.f32 %v8270_v0, %v9606_v28  ;;  %v3315_v49 = vmul.f32 %v6958_v62, %v3305_v12 }
 0xb8c   :  { %v3314_v56 = vmul.f32 %v6958_v62, %v3304_v23  ;;  %v3325_v46 = vadd.f32 %v6959_v19, %v3315_v49 }
 0xb8e   :  { %v3324_v4 = vadd.f32 %v6959_v19, %v3314_v56 }
 0xb90   :  { %7781 = vmatprep.mubr.msk.f32.mxu1 %vm205_vm1, %v3324_v4  ;;  %7798 = vmatprep.mubr.msk.f32.mxu0 %vm205_vm1, %v3324_v4 }
 0xb91   :  { %7782 = vmatmul.mubr.msk.f32.vlgmr.msra.gmra.mxu1 %vm205_vm1, %v3325_v46  ;;  %7799 = vmatmul.mubr.msk.f32.vlgmr.msra.gmra.mxu0 %vm205_vm1, %v3325_v46 }
 0xb92   :  { %7808 = vmatpush3.msra.mxu1 %v3215_v55  ;;  %v3279_v27 = vpop.xlane.xlu0 %3278 }
 0xb93   :  { %7809 = vmatprep.subr.mxu1 %v3214_v24  ;;  %v3289_v58 = vmul.f32 0.03125, %v3279_v27 }
 0xb94   :  { %7810 = vmatpush3.msra.mxu1 %v3214_v24  ;;  %v3276_v52 = vpop.xlane.xlu1 %3275 }
 0xb95   :  { %7811 = vmatprep.subr.mxu1 %v3213_v37  ;;  %v3295_v43 = vadd.f32 1e-12, %v3289_v58  ;;  %v3288_v28 = vmul.f32 0.03125, %v3276_v52 }
 0xb96   :  { %7812 = vmatpush3.msra.mxu1 %v3213_v37  ;;  %v6974_v37 = vld [vmem:[%s10635_s1 + $0x3f] ss:$0 sm:$0xff] }
 0xb97   :  { %7813 = vmatprep.subr.mxu1 %v3212_v9  ;;  %8271 = vrsqrt.f32 %v3295_v43  ;;  %v3294_v20 = vadd.f32 1e-12, %v3288_v28 }
 0xb98   :  { %7814 = vmatpush3.msra.mxu1 %v3212_v9 }
 0xb99   :  { %7839 = vmatprep.subr.mxu1 %v8484_v60  ;;  %8273 = vrsqrt.f32 %v3294_v20 }
 0xb9b   :  { %v3285_v8 = vpop.xlane.xlu0 %3284 }
 0xb9c   :  { %v3291_v18 = vmul.f32 0.03125, %v3285_v8 }
 0xb9d   :  { %v3282_v29 = vpop.xlane.xlu1 %3281 }
 0xb9e   :  { %v3297_v38 = vadd.f32 1e-12, %v3291_v18  ;;  %v3290_v10 = vmul.f32 0.03125, %v3282_v29 }
 0xba0   :  { %8275 = vrsqrt.f32 %v3297_v38  ;;  %v3296_v11 = vadd.f32 1e-12, %v3290_v10 }
 0xba2   :  { %8277 = vrsqrt.f32 %v3296_v11 }
 0xba4   :  { %v8272_v32 = vpop.eup %8271 }
 0xba5   :  { %v3307_v39 = vmul.f32 %v8272_v32, %v9615_v33 }
 0xba6   :  { %v8274_v48 = vpop.eup %8273 }
 0xba7   :  { %v3306_v41 = vmul.f32 %v8274_v48, %v9618_v13  ;;  %v3317_v22 = vmul.f32 %v6958_v62, %v3307_v39 }
 0xba9   :  { %v3316_v17 = vmul.f32 %v6958_v62, %v3306_v41  ;;  %v3327_v57 = vadd.f32 %v6959_v19, %v3317_v22 }
 0xbab   :  { %v3326_v15 = vadd.f32 %v6959_v19, %v3316_v17 }
 0xbad   :  { %v8276_v26 = vpop.eup %8275  ;;  %7784 = vmatprep.mubr.msk.f32.mxu1 %vm205_vm1, %v3326_v15  ;;  %7801 = vmatprep.mubr.msk.f32.mxu0 %vm205_vm1, %v3326_v15 }
 0xbae   :  { %7785 = vmatmul.mubr.msk.f32.gmra.mxu1 %vm205_vm1, %v3327_v57  ;;  %7802 = vmatmul.mubr.msk.f32.gmra.mxu0 %vm205_vm1, %v3327_v57  ;;  %v3309_v51 = vmul.f32 %v8276_v26, %v9651_v44 }
 0xbaf   :  { %v8278_v14 = vpop.eup %8277 }
 0xbb0   :  { %v3308_v33 = vmul.f32 %v8278_v14, %v9654_v35  ;;  %v3319_v45 = vmul.f32 %v6958_v62, %v3309_v51  ;;  %v6960_v35 = vld [vmem:[%s10635_s1 + $0x3d] ss:$0 sm:$0xff] }
 0xbb2   :  { %v3318_v13 = vmul.f32 %v6958_v62, %v3308_v33  ;;  %v3329_v54 = vadd.f32 %v6959_v19, %v3319_v45 }
 0xbb4   :  { %v3328_v42 = vadd.f32 %v6959_v19, %v3318_v13 }
 0xbb6   :  { %7787 = vmatprep.mubr.msk.f32.mxu1 %vm205_vm1, %v3328_v42  ;;  %7804 = vmatprep.mubr.msk.f32.mxu0 %vm205_vm1, %v3328_v42 }
 0xbb7   :  { %7788 = vmatmul.mubr.msk.f32.gmra.mxu1 %vm205_vm1, %v3329_v54  ;;  %7805 = vmatmul.mubr.msk.f32.gmra.mxu0 %vm205_vm1, %v3329_v54 }
 0xbb8   :  { %7815 = vmatprep.mubr.msk.f32.mxu1 %vm205_vm1, %v3324_v4  ;;  %7830 = vmatprep.mubr.msk.f32.mxu0 %vm8485_vm2, %v8484_v60 }
 0xbbb   :  { %7816 = vmatmul.mubr.msk.f32.vlgmr.msra.gmra.mxu1 %vm205_vm1, %v3325_v46 }
 0xbbc   :  { %7818 = vmatprep.mubr.msk.f32.mxu1 %vm205_vm1, %v3326_v15 }
 0xbbf   :  { %7819 = vmatmul.mubr.msk.f32.gmra.mxu1 %vm205_vm1, %v3327_v57 }
 0xbc0   :  { %7821 = vmatprep.mubr.msk.f32.mxu1 %vm205_vm1, %v3328_v42 }
 0xbc3   :  { %7822 = vmatmul.mubr.msk.f32.gmra.mxu1 %vm205_vm1, %v3329_v54 }
 0xbc4   :  { %7845 = vmatprep.mubr.msk.f32.mxu1 %vm8485_vm2, %v8484_v60 }
 0xc51   :  { %v7800_v47 = vpop.f32.mrf.mxu0  ;;  %v7783_v59 = vpop.f32.mrf.mxu1 }
 0xc52   :  { %v3523_v44 = vadd.f32 %v7800_v47, %v6967_v30  ;;  %v3424_v50 = vadd.f32 %v7783_v59, %v6960_v35 }
 0xc53   :  { %v3517_v1 = vpop.f32.mrf.mxu0  ;;  %v3418_v3 = vpop.f32.mrf.mxu1 }
 0xc54   :  { %3861 = vrot.lane.b32.xlu1 %v3523_v44, %s8487_s14  ;;  %3754 = vrot.lane.b32.xlu0 %v3523_v44, %s8486_s13  ;;  %v3518_v61 = vadd.f32 %v6967_v30, %v3517_v1  ;;  %v3419_v55 = vadd.f32 %v6960_v35, %v3418_v3 }
 0xc58   :  { %3752 = vrot.lane.b32.xlu1 %v3518_v61, %s8486_s13  ;;  %3748 = vrot.lane.b32.xlu0 %v3424_v50, %s8486_s13 }
 0xc5c   :  { %3968 = vrot.lane.b32.xlu0 %v3523_v44, %s8488_s15  ;;  %3746 = vrot.lane.b32.xlu1 %v3419_v55, %s8486_s13 }
 0xc60   :  { %3859 = vrot.lane.b32.xlu0 %v3518_v61, %s8487_s14  ;;  %3966 = vrot.lane.b32.xlu1 %v3518_v61, %s8488_s15 }
 0xc64   :  { %3853 = vrot.lane.b32.xlu0 %v3419_v55, %s8487_s14 }
 0xc6e   :  { %v7803_v36 = vpop.f32.mrf.mxu0  ;;  %v7786_v7 = vpop.f32.mrf.mxu1 }
 0xc6f   :  { %v9745_v62 = vadd.f32 %v7803_v36, %v6967_v30  ;;  %v9759_v49 = vadd.f32 %v7786_v7, %v6960_v35 }
 0xc70   :  { %v3527_v6 = vpop.f32.mrf.mxu0  ;;  %v3428_v5 = vpop.f32.mrf.mxu1 }
 0xc71   :  { %v3528_v63 = vadd.f32 %v6967_v30, %v3527_v6  ;;  %v3429_v21 = vadd.f32 %v6960_v35, %v3428_v5 }
 0xc73   :  { %3863 = vrot.lane.b32.xlu0 %v3528_v63, %s8487_s14  ;;  %3756 = vrot.lane.b32.xlu1 %v3528_v63, %s8486_s13 }
 0xc74   :  { %7825 = vmatpush3.xpose.msk.msra.mxu0 %vm620_vm3, %v3528_v63 }
 0xc75   :  { %7826 = vmatprep.subr.mxu0 %v8484_v60 }
 0xc77   :  { %3962 = vrot.lane.b32.xlu0 %v3424_v50, %s8488_s15  ;;  %3960 = vrot.lane.b32.xlu1 %v3419_v55, %s8488_s15  ;;  %v7806_v16 = vpop.f32.mrf.mxu0  ;;  %v7789_v0 = vpop.f32.mrf.mxu1 }
 0xc78   :  { %7827 = vmatpush3.xpose.msk.msra.mxu0 %vm620_vm3, %v3523_v44  ;;  %v9737_v12 = vadd.f32 %v7806_v16, %v6967_v30  ;;  %v9777_v46 = vadd.f32 %v7789_v0, %v6960_v35 }
 0xc79   :  { %7828 = vmatprep.subr.mxu0 %v8484_v60  ;;  %v3438_v23 = vpop.f32.mrf.mxu1  ;;  %v3537_v56 = vpop.f32.mrf.mxu0 }
 0xc7a   :  { %v9761_v19 = vadd.f32 %v6960_v35, %v3438_v23  ;;  %v9767_v4 = vadd.f32 %v6967_v30, %v3537_v56 }
 0xc7b   :  { %3855 = vrot.lane.b32.xlu1 %v3424_v50, %s8487_s14  ;;  %3857 = vrot.lane.b32.xlu0 %v3429_v21, %s8487_s14  ;;  %v7817_v24 = vpop.f32.mrf.mxu1 }
 0xc7c   :  { %7829 = vmatpush3.xpose.msk.msra.mxu0 %vm620_vm3, %v3518_v61  ;;  %v9798_v27 = vadd.f32 %v7817_v24, %v6974_v37 }
 0xc7d   :  { %7854 = vmatprep.subr.mxu0 %v8484_v60  ;;  %v3616_v58 = vpop.f32.mrf.mxu1 }
 0xc7e   :  { %v9808_v52 = vadd.f32 %v6974_v37, %v3616_v58 }
 0xc7f   :  { %7831 = vmatmul.mubr.msk.f32.vlgmr.msra.gmra.mxu0 %vm620_vm3, %v3419_v55  ;;  %3970 = vrot.lane.b32.xlu1 %v3528_v63, %s8488_s15  ;;  %v7820_v9 = vpop.f32.mrf.mxu1 }
 0xc80   :  { %4178 = vrot.lane.b32.xlu0 %v9737_v12, %s8486_s13  ;;  %7833 = vmatprep.mubr.msk.f32.mxu0 %vm8485_vm2, %v8484_v60  ;;  %v9820_v20 = vadd.f32 %v7820_v9, %v6974_v37  ;;  %v9968_v9 = vld [vmem:[%s10635_s1 + $0x30] ss:$0 sm:$0xff] }
 0xc81   :  { %v3626_v43 = vpop.f32.mrf.mxu1 }
 0xc82   :  { %v9814_v28 = vadd.f32 %v6974_v37, %v3626_v43 }
 0xc83   :  { %7834 = vmatmul.mubr.msk.f32.gmra.mxu0 %vm620_vm3, %v3424_v50  ;;  %3750 = vrot.lane.b32.xlu1 %v3429_v21, %s8486_s13  ;;  %v7823_v8 = vpop.f32.mrf.mxu1 }
 0xc84   :  { %4174 = vrot.lane.b32.xlu0 %v9745_v62, %s8486_s13  ;;  %7836 = vmatprep.mubr.msk.f32.mxu0 %vm8485_vm2, %v8484_v60  ;;  %v9826_v18 = vadd.f32 %v7823_v8, %v6974_v37 }
 0xc85   :  { %v3636_v29 = vpop.f32.mrf.mxu1 }
 0xc86   :  { %v9832_v38 = vadd.f32 %v6974_v37, %v3636_v29 }
 0xc87   :  { %7837 = vmatmul.mubr.msk.f32.gmra.mxu0 %vm620_vm3, %v3429_v21  ;;  %3964 = vrot.lane.b32.xlu1 %v3429_v21, %s8488_s15 }
 0xc88   :  { %4285 = vrot.lane.b32.xlu0 %v9737_v12, %s8487_s14  ;;  %7860 = vmatprep.mubr.msk.f32.mxu0 %vm8485_vm2, %v8484_v60 }
 0xc8b   :  { %4168 = vrot.lane.b32.xlu1 %v9759_v49, %s8486_s13 }
 0xc8c   :  { %4170 = vrot.lane.b32.xlu0 %v9761_v19, %s8486_s13 }
 0xc8f   :  { %4176 = vrot.lane.b32.xlu1 %v9767_v4, %s8486_s13 }
 0xc90   :  { %4390 = vrot.lane.b32.xlu0 %v9767_v4, %s8488_s15 }
 0xc93   :  { %4392 = vrot.lane.b32.xlu1 %v9737_v12, %s8488_s15 }
 0xc94   :  { %4281 = vrot.lane.b32.xlu0 %v9745_v62, %s8487_s14 }
 0xc97   :  { %4172 = vrot.lane.b32.xlu1 %v9777_v46, %s8486_s13 }
 0xc98   :  { %4275 = vrot.lane.b32.xlu0 %v9759_v49, %s8487_s14 }
 0xc9b   :  { %4283 = vrot.lane.b32.xlu1 %v9767_v4, %s8487_s14 }
 0xc9c   :  { %4279 = vrot.lane.b32.xlu0 %v9777_v46, %s8487_s14 }
 0xc9f   :  { %4388 = vrot.lane.b32.xlu1 %v9745_v62, %s8488_s15 }
 0xca0   :  { %4386 = vrot.lane.b32.xlu0 %v9777_v46, %s8488_s15 }
 0xca3   :  { %4382 = vrot.lane.b32.xlu1 %v9759_v49, %s8488_s15 }
 0xca4   :  { %4384 = vrot.lane.b32.xlu0 %v9761_v19, %s8488_s15 }
 0xca7   :  { %4277 = vrot.lane.b32.xlu1 %v9761_v19, %s8487_s14 }
 0xca8   :  { %5011 = vrot.lane.b32.xlu0 %v9798_v27, %s8487_s14 }
 0xcab   :  { %4898 = vrot.lane.b32.xlu1 %v9798_v27, %s8486_s13 }
 0xcac   :  { %5124 = vrot.lane.b32.xlu0 %v9798_v27, %s8488_s15 }
 0xcaf   :  { %5009 = vrot.lane.b32.xlu1 %v9808_v52, %s8487_s14 }
 0xcb0   :  { %4896 = vrot.lane.b32.xlu0 %v9808_v52, %s8486_s13 }
 0xcb3   :  { %4900 = vrot.lane.b32.xlu1 %v9814_v28, %s8486_s13 }
 0xcb4   :  { %5122 = vrot.lane.b32.xlu0 %v9808_v52, %s8488_s15 }
 0xcb7   :  { %5013 = vrot.lane.b32.xlu1 %v9814_v28, %s8487_s14 }
 0xcb8   :  { %5330 = vrot.lane.b32.xlu0 %v9820_v20, %s8486_s13 }
 0xcbb   :  { %5126 = vrot.lane.b32.xlu1 %v9814_v28, %s8488_s15 }
 0xcbc   :  { %5334 = vrot.lane.b32.xlu0 %v9826_v18, %s8486_s13 }
 0xcc0   :  { %5332 = vrot.lane.b32.xlu0 %v9832_v38, %s8486_s13 }
 0xcc6   :  { %v3755_v10 = vpop.permute.xlu0 %3754  ;;  %v3862_v11 = vpop.permute.xlu1 %3861 }
 0xcca   :  { %v3749_v32 = vpop.permute.xlu0 %3748  ;;  %v3753_v39 = vpop.permute.xlu1 %3752 }
 0xcce   :  { %v3969_v48 = vpop.permute.xlu0 %3968  ;;  %v3747_v41 = vpop.permute.xlu1 %3746 }
 0xcd2   :  { %v3860_v22 = vpop.permute.xlu0 %3859  ;;  %v3967_v17 = vpop.permute.xlu1 %3966 }
 0xcd6   :  { %v3854_v15 = vpop.permute.xlu0 %3853 }
 0xce5   :  { %v3757_v57 = vpop.permute.xlu1 %3756  ;;  %v3864_v26 = vpop.permute.xlu0 %3863 }
 0xce6   :  { %7840 = vmatpush3.xpose.msk.msra.mxu1 %vm620_vm3, %v3757_v57  ;;  %7855 = vmatpush3.xpose.msk.msra.mxu0 %vm620_vm3, %v3864_v26 }
 0xce7   :  { %7841 = vmatprep.subr.mxu1 %v8484_v60  ;;  %7856 = vmatprep.subr.mxu0 %v8484_v60 }
 0xce9   :  { %v3961_v51 = vpop.permute.xlu1 %3960  ;;  %v3963_v14 = vpop.permute.xlu0 %3962 }
 0xcea   :  { %7842 = vmatpush3.xpose.msk.msra.mxu1 %vm620_vm3, %v3755_v10  ;;  %7857 = vmatpush3.xpose.msk.msra.mxu0 %vm620_vm3, %v3862_v11 }
 0xceb   :  { %7843 = vmatprep.subr.mxu1 %v8484_v60  ;;  %7858 = vmatprep.subr.mxu0 %v8484_v60 }
 0xced   :  { %v3856_v33 = vpop.permute.xlu1 %3855  ;;  %v3858_v45 = vpop.permute.xlu0 %3857 }
 0xcee   :  { %7844 = vmatpush3.xpose.msk.msra.mxu1 %vm620_vm3, %v3753_v39  ;;  %7859 = vmatpush3.xpose.msk.msra.mxu0 %vm620_vm3, %v3860_v22 }
 0xcef   :  { %7869 = vmatprep.subr.mxu1 %v8484_v60  ;;  %7884 = vmatprep.subr.mxu0 %v8484_v60 }
 0xcf1   :  { %v3971_v13 = vpop.permute.xlu1 %3970  ;;  %7846 = vmatmul.mubr.msk.f32.vlgmr.msra.gmra.mxu1 %vm620_vm3, %v3747_v41  ;;  %7861 = vmatmul.mubr.msk.f32.vlgmr.msra.gmra.mxu0 %vm620_vm3, %v3854_v15 }
 0xcf2   :  { %v4179_v42 = vpop.permute.xlu0 %4178  ;;  %7870 = vmatpush3.xpose.msk.msra.mxu1 %vm620_vm3, %v3971_v13  ;;  %7885 = vmatpush3.xpose.msk.msra.mxu0 %vm620_vm3, %v9737_v12 }
 0xcf3   :  { %7848 = vmatprep.mubr.msk.f32.mxu1 %vm8485_vm2, %v8484_v60  ;;  %7863 = vmatprep.mubr.msk.f32.mxu0 %vm8485_vm2, %v8484_v60 }
 0xcf4   :  { %7871 = vmatprep.subr.mxu1 %v8484_v60  ;;  %7886 = vmatprep.subr.mxu0 %v8484_v60 }
 0xcf5   :  { %v3751_v54 = vpop.permute.xlu1 %3750  ;;  %7849 = vmatmul.mubr.msk.f32.gmra.mxu1 %vm620_vm3, %v3749_v32  ;;  %7864 = vmatmul.mubr.msk.f32.gmra.mxu0 %vm620_vm3, %v3856_v33 }
 0xcf6   :  { %v4175_v30 = vpop.permute.xlu0 %4174  ;;  %7872 = vmatpush3.xpose.msk.msra.mxu1 %vm620_vm3, %v3969_v48  ;;  %7887 = vmatpush3.xpose.msk.msra.mxu0 %vm620_vm3, %v9767_v4 }
 0xcf7   :  { %7851 = vmatprep.mubr.msk.f32.mxu1 %vm8485_vm2, %v8484_v60  ;;  %7866 = vmatprep.mubr.msk.f32.mxu0 %vm8485_vm2, %v8484_v60 }
 0xcf8   :  { %7873 = vmatprep.subr.mxu1 %v8484_v60  ;;  %7888 = vmatprep.subr.mxu0 %v8484_v60 }
 0xcf9   :  { %v3965_v47 = vpop.permute.xlu1 %3964  ;;  %7852 = vmatmul.mubr.msk.f32.gmra.mxu1 %vm620_vm3, %v3751_v54  ;;  %7867 = vmatmul.mubr.msk.f32.gmra.mxu0 %vm620_vm3, %v3858_v45 }
 0xcfa   :  { %v4286_v44 = vpop.permute.xlu0 %4285  ;;  %7874 = vmatpush3.xpose.msk.msra.mxu1 %vm620_vm3, %v3967_v17  ;;  %7889 = vmatpush3.xpose.msk.msra.mxu0 %vm620_vm3, %v9745_v62 }
 0xcfb   :  { %7875 = vmatprep.mubr.msk.f32.mxu1 %vm8485_vm2, %v8484_v60  ;;  %7890 = vmatprep.mubr.msk.f32.mxu0 %vm8485_vm2, %v8484_v60 }
 0xcfc   :  { %7899 = vmatprep.subr.mxu1 %v8484_v60  ;;  %7914 = vmatprep.subr.mxu0 %v8484_v60 }
 0xcfd   :  { %v4169_v59 = vpop.permute.xlu1 %4168  ;;  %7876 = vmatmul.mubr.msk.f32.vlgmr.msra.gmra.mxu1 %vm620_vm3, %v3961_v51  ;;  %7891 = vmatmul.mubr.msk.f32.vlgmr.msra.gmra.mxu0 %vm620_vm3, %v9759_v49 }
 0xcfe   :  { %v4171_v35 = vpop.permute.xlu0 %4170  ;;  %7900 = vmatpush3.xpose.msk.msra.mxu1 %vm620_vm3, %v4179_v42  ;;  %7915 = vmatpush3.xpose.msk.msra.mxu0 %vm620_vm3, %v4286_v44 }
 0xcff   :  { %7878 = vmatprep.mubr.msk.f32.mxu1 %vm8485_vm2, %v8484_v60  ;;  %7893 = vmatprep.mubr.msk.f32.mxu0 %vm8485_vm2, %v8484_v60 }
 0xd00   :  { %7901 = vmatprep.subr.mxu1 %v8484_v60  ;;  %7916 = vmatprep.subr.mxu0 %v8484_v60 }
 0xd01   :  { %v4177_v1 = vpop.permute.xlu1 %4176  ;;  %7879 = vmatmul.mubr.msk.f32.gmra.mxu1 %vm620_vm3, %v3963_v14  ;;  %7894 = vmatmul.mubr.msk.f32.gmra.mxu0 %vm620_vm3, %v9761_v19 }
 0xd02   :  { %v4391_v50 = vpop.permute.xlu0 %4390  ;;  %7902 = vmatpush3.xpose.msk.msra.mxu1 %vm620_vm3, %v4177_v1  ;;  %7881 = vmatprep.mubr.msk.f32.mxu1 %vm8485_vm2, %v8484_v60 }
 0xd03   :  { %7896 = vmatprep.mubr.msk.f32.mxu0 %vm8485_vm2, %v8484_v60  ;;  %7903 = vmatprep.subr.mxu1 %v8484_v60 }
 0xd05   :  { %v4393_v61 = vpop.permute.xlu1 %4392  ;;  %7882 = vmatmul.mubr.msk.f32.gmra.mxu1 %vm620_vm3, %v3965_v47  ;;  %7897 = vmatmul.mubr.msk.f32.gmra.mxu0 %vm620_vm3, %v9777_v46 }
 0xd06   :  { %v4282_v3 = vpop.permute.xlu0 %4281  ;;  %7904 = vmatpush3.xpose.msk.msra.mxu1 %vm620_vm3, %v4175_v30  ;;  %7905 = vmatprep.mubr.msk.f32.mxu1 %vm8485_vm2, %v8484_v60 }
 0xd07   :  { %7929 = vmatprep.subr.mxu1 %v8484_v60  ;;  %7920 = vmatprep.mubr.msk.f32.mxu0 %vm8485_vm2, %v8484_v60 }
 0xd09   :  { %v4173_v55 = vpop.permute.xlu1 %4172  ;;  %7906 = vmatmul.mubr.msk.f32.vlgmr.msra.gmra.mxu1 %vm620_vm3, %v4169_v59 }
 0xd0a   :  { %v4276_v36 = vpop.permute.xlu0 %4275  ;;  %7930 = vmatpush3.xpose.msk.msra.mxu1 %vm620_vm3, %v4393_v61  ;;  %7908 = vmatprep.mubr.msk.f32.mxu1 %vm8485_vm2, %v8484_v60 }
 0xd0b   :  { %7931 = vmatprep.subr.mxu1 %v8484_v60 }
 0xd0d   :  { %v4284_v6 = vpop.permute.xlu1 %4283  ;;  %7909 = vmatmul.mubr.msk.f32.gmra.mxu1 %vm620_vm3, %v4171_v35 }
 0xd0e   :  { %v4280_v63 = vpop.permute.xlu0 %4279  ;;  %7917 = vmatpush3.xpose.msk.msra.mxu0 %vm620_vm3, %v4284_v6  ;;  %7932 = vmatpush3.xpose.msk.msra.mxu1 %vm620_vm3, %v4391_v50 }
 0xd0f   :  { %7911 = vmatprep.mubr.msk.f32.mxu1 %vm8485_vm2, %v8484_v60  ;;  %7918 = vmatprep.subr.mxu0 %v8484_v60 }
 0xd10   :  { %7933 = vmatprep.subr.mxu1 %v8484_v60 }
 0xd11   :  { %v4389_v7 = vpop.permute.xlu1 %4388  ;;  %7912 = vmatmul.mubr.msk.f32.gmra.mxu1 %vm620_vm3, %v4173_v55 }
 0xd12   :  { %v4387_v5 = vpop.permute.xlu0 %4386  ;;  %7919 = vmatpush3.xpose.msk.msra.mxu0 %vm620_vm3, %v4282_v3  ;;  %7934 = vmatpush3.xpose.msk.msra.mxu1 %vm620_vm3, %v4389_v7 }
 0xd13   :  { %7935 = vmatprep.mubr.msk.f32.mxu1 %vm8485_vm2, %v8484_v60  ;;  %7944 = vmatprep.subr.mxu0 %v8484_v60 }
 0xd14   :  { %7959 = vmatprep.subr.mxu1 %v8484_v60 }
 0xd15   :  { %v4383_v21 = vpop.permute.xlu1 %4382  ;;  %7921 = vmatmul.mubr.msk.f32.vlgmr.msra.gmra.mxu0 %vm620_vm3, %v4276_v36 }
 0xd16   :  { %7936 = vmatmul.mubr.msk.f32.vlgmr.msra.gmra.mxu1 %vm620_vm3, %v4383_v21  ;;  %7945 = vmatpush3.msra.mxu0 %v9814_v28  ;;  %v4385_v16 = vpop.permute.xlu0 %4384 }
 0xd17   :  { %7946 = vmatprep.subr.mxu0 %v8484_v60  ;;  %7923 = vmatprep.mubr.msk.f32.mxu0 %vm8485_vm2, %v8484_v60 }
 0xd18   :  { %7947 = vmatpush3.msra.mxu0 %v9798_v27  ;;  %7938 = vmatprep.mubr.msk.f32.mxu1 %vm8485_vm2, %v8484_v60 }
 0xd19   :  { %v4278_v12 = vpop.permute.xlu1 %4277  ;;  %7948 = vmatprep.subr.mxu0 %v8484_v60 }
 0xd1a   :  { %7924 = vmatmul.mubr.msk.f32.gmra.mxu0 %vm620_vm3, %v4278_v12  ;;  %7939 = vmatmul.mubr.msk.f32.gmra.mxu1 %vm620_vm3, %v4385_v16  ;;  %v9947_v62 = vpop.permute.xlu0 %5011 }
 0xd1b   :  { %7949 = vmatpush3.msra.mxu0 %v9808_v52  ;;  %7926 = vmatprep.mubr.msk.f32.mxu0 %vm8485_vm2, %v8484_v60 }
 0xd1c   :  { %7941 = vmatprep.mubr.msk.f32.mxu1 %vm8485_vm2, %v8484_v60  ;;  %7974 = vmatprep.subr.mxu0 %v8484_v60 }
 0xd1d   :  { %v4899_v0 = vpop.permute.xlu1 %4898 }
 0xd1e   :  { %7927 = vmatmul.mubr.msk.f32.gmra.mxu0 %vm620_vm3, %v4280_v63  ;;  %7942 = vmatmul.mubr.msk.f32.gmra.mxu1 %vm620_vm3, %v4387_v5  ;;  %v9957_v49 = vpop.permute.xlu0 %5124 }
 0xd1f   :  { %7950 = vmatprep.mubr.msk.f32.mxu0 %vm8485_vm2, %v8484_v60  ;;  %7965 = vmatprep.mubr.msk.f32.mxu1 %vm8485_vm2, %v8484_v60 }
 0xd21   :  { %v9955_v23 = vpop.permute.xlu1 %5009 }
 0xd22   :  { %v4897_v56 = vpop.permute.xlu0 %4896 }
 0xd25   :  { %v4901_v19 = vpop.permute.xlu1 %4900 }
 0xd26   :  { %7960 = vmatpush3.msra.mxu1 %v4901_v19 }
 0xd27   :  { %7961 = vmatprep.subr.mxu1 %v8484_v60 }
 0xd28   :  { %7962 = vmatpush3.msra.mxu1 %v4899_v0 }
 0xd29   :  { %7963 = vmatprep.subr.mxu1 %v8484_v60 }
 0xd2a   :  { %7964 = vmatpush3.msra.mxu1 %v4897_v56 }
 0xd2b   :  { %7989 = vmatprep.subr.mxu1 %v8484_v60 }
 0xd3f   :  { %v3729_v4 = vpop.f32.mrf.mxu0 }
 0xd40   :  { %3743 = vst.msk [vmem:[#allocation2] sm:$0xff] %vm719_vm4, %v3729_v4 }
 0xd41   :  { %v7832_v46 = vpop.f32.mrf.mxu0 }
 0xd43   :  { %v3734_v24 = vpop.f32.mrf.mxu0 }
 0xd44   :  { %3744 = vst.msk [vmem:[#allocation2 + $0x8] sm:$0xff] %vm719_vm4, %v3734_v24 }
 0xd45   :  { %v7835_v37 = vpop.f32.mrf.mxu0 }
 0xd47   :  { %v3739_v27 = vpop.f32.mrf.mxu0  ;;  %v4489_v58 = vld [vmem:[#allocation2] sm:$0xff] }
 0xd48   :  { %3745 = vst.msk [vmem:[#allocation2 + $0x10] sm:$0xff] %vm719_vm4, %v3739_v27  ;;  %v9971_v52 = vadd.f32 %v9968_v9, %v4489_v58 }
 0xd49   :  { %v7838_v43 = vpop.f32.mrf.mxu0 }
 0xd4a   :  { %v4537_v28 = vsel %vm719_vm4, %v9971_v52, -inf }
 0xd4b   :  { %4538 = vmax.xlane.f32.xlu0 %v4537_v28  ;;  %v4490_v8 = vld [vmem:[#allocation2 + $0x8] sm:$0xff] }
 0xd4c   :  { %v9976_v29 = vadd.f32 %v9968_v9, %v4490_v8 }
 0xd4e   :  { %v4540_v10 = vsel %vm719_vm4, %v9976_v29, -inf }
 0xd4f   :  { %4541 = vmax.xlane.f32.xlu0 %v4540_v10  ;;  %v4491_v11 = vld [vmem:[#allocation2 + $0x10] sm:$0xff] }
 0xd50   :  { %v9981_v32 = vadd.f32 %v9968_v9, %v4491_v11 }
 0xd52   :  { %v4543_v39 = vsel %vm719_vm4, %v9981_v32, -inf }
 0xd53   :  { %4544 = vmax.xlane.f32.xlu1 %v4543_v39 }
 0xdb1   :  { %v3836_v48 = vpop.f32.mrf.mxu1  ;;  %v3943_v41 = vpop.f32.mrf.mxu0 }
 0xdb2   :  { %3850 = vst.msk [vmem:[#allocation2 + $0x18] sm:$0xff] %vm719_vm4, %v3836_v48  ;;  %3957 = vst.msk [vmem:[#allocation2 + $0x30] sm:$0xff] %vm719_vm4, %v3943_v41 }
 0xdb3   :  { %v7847_v22 = vpop.f32.mrf.mxu1  ;;  %v7862_v17 = vpop.f32.mrf.mxu0 }
 0xdb5   :  { %v3841_v15 = vpop.f32.mrf.mxu1  ;;  %v3948_v57 = vpop.f32.mrf.mxu0 }
 0xdb6   :  { %3851 = vst.msk [vmem:[#allocation2 + $0x20] sm:$0xff] %vm719_vm4, %v3841_v15  ;;  %3958 = vst.msk [vmem:[#allocation2 + $0x38] sm:$0xff] %vm719_vm4, %v3948_v57 }
 0xdb7   :  { %v7850_v26 = vpop.f32.mrf.mxu1  ;;  %v7865_v51 = vpop.f32.mrf.mxu0 }
 0xdb9   :  { %v3846_v14 = vpop.f32.mrf.mxu1  ;;  %v3953_v33 = vpop.f32.mrf.mxu0  ;;  %v4492_v45 = vld [vmem:[#allocation2 + $0x18] sm:$0xff]  ;;  %v4495_v13 = vld [vmem:[#allocation2 + $0x30] sm:$0xff] }
 0xdba   :  { %3852 = vst.msk [vmem:[#allocation2 + $0x28] sm:$0xff] %vm719_vm4, %v3846_v14  ;;  %3959 = vst.msk [vmem:[#allocation2 + $0x40] sm:$0xff] %vm719_vm4, %v3953_v33  ;;  %v9992_v42 = vadd.f32 %v9968_v9, %v4492_v45  ;;  %v9997_v44 = vadd.f32 %v9968_v9, %v4495_v13 }
 0xdbb   :  { %v7853_v54 = vpop.f32.mrf.mxu1  ;;  %v7868_v30 = vpop.f32.mrf.mxu0 }
 0xdbc   :  { %v4546_v47 = vsel %vm719_vm4, %v9992_v42, -inf  ;;  %v4555_v6 = vsel %vm719_vm4, %v9997_v44, -inf }
 0xdbd   :  { %4547 = vmax.xlane.f32.xlu1 %v4546_v47  ;;  %v4050_v59 = vpop.f32.mrf.mxu1  ;;  %v4151_v35 = vpop.f32.mrf.mxu0  ;;  %v4493_v1 = vld [vmem:[#allocation2 + $0x20] sm:$0xff]  ;;  %v4496_v50 = vld [vmem:[#allocation2 + $0x38] sm:$0xff] }
 0xdbe   :  { %4064 = vst.msk [vmem:[#allocation2 + $0x48] sm:$0xff] %vm719_vm4, %v4050_v59  ;;  %4165 = vst.msk [vmem:[#allocation2 + $0x60] sm:$0xff] %vm719_vm4, %v4151_v35  ;;  %v10002_v61 = vadd.f32 %v9968_v9, %v4493_v1  ;;  %v10009_v63 = vadd.f32 %v9968_v9, %v4496_v50 }
 0xdbf   :  { %v7877_v3 = vpop.f32.mrf.mxu1  ;;  %v7892_v55 = vpop.f32.mrf.mxu0 }
 0xdc0   :  { %v4549_v36 = vsel %vm719_vm4, %v10002_v61, -inf  ;;  %v4558_v4 = vsel %vm719_vm4, %v10009_v63, -inf }
 0xdc1   :  { %4550 = vmax.xlane.f32.xlu0 %v4549_v36  ;;  %4556 = vmax.xlane.f32.xlu1 %v4555_v6  ;;  %v4055_v7 = vpop.f32.mrf.mxu1  ;;  %v4156_v5 = vpop.f32.mrf.mxu0  ;;  %v4494_v21 = vld [vmem:[#allocation2 + $0x28] sm:$0xff]  ;;  %v4497_v16 = vld [vmem:[#allocation2 + $0x40] sm:$0xff] }
 0xdc2   :  { %4065 = vst.msk [vmem:[#allocation2 + $0x50] sm:$0xff] %vm719_vm4, %v4055_v7  ;;  %4166 = vst.msk [vmem:[#allocation2 + $0x68] sm:$0xff] %vm719_vm4, %v4156_v5  ;;  %v10014_v12 = vadd.f32 %v9968_v9, %v4494_v21  ;;  %v10021_v46 = vadd.f32 %v9968_v9, %v4497_v16 }
 0xdc3   :  { %v7880_v0 = vpop.f32.mrf.mxu1  ;;  %v7895_v19 = vpop.f32.mrf.mxu0 }
 0xdc4   :  { %v4552_v56 = vsel %vm719_vm4, %v10014_v12, -inf  ;;  %v4561_v11 = vsel %vm719_vm4, %v10021_v46, -inf }
 0xdc5   :  { %4553 = vmax.xlane.f32.xlu0 %v4552_v56  ;;  %4559 = vmax.xlane.f32.xlu1 %v4558_v4  ;;  %v4060_v24 = vpop.f32.mrf.mxu1  ;;  %v4161_v37 = vpop.f32.mrf.mxu0  ;;  %v4498_v27 = vld [vmem:[#allocation2 + $0x48] sm:$0xff]  ;;  %v4501_v58 = vld [vmem:[#allocation2 + $0x60] sm:$0xff] }
 0xdc6   :  { %4066 = vst.msk [vmem:[#allocation2 + $0x58] sm:$0xff] %vm719_vm4, %v4060_v24  ;;  %4167 = vst.msk [vmem:[#allocation2 + $0x70] sm:$0xff] %vm719_vm4, %v4161_v37  ;;  %v10026_v43 = vadd.f32 %v9968_v9, %v4498_v27  ;;  %v10033_v39 = vadd.f32 %v9968_v9, %v4501_v58 }
 0xdc7   :  { %v7883_v28 = vpop.f32.mrf.mxu1  ;;  %v7898_v8 = vpop.f32.mrf.mxu0 }
 0xdc8   :  { %v4564_v10 = vsel %vm719_vm4, %v10026_v43, -inf  ;;  %v4573_v57 = vsel %vm719_vm4, %v10033_v39, -inf }
 0xdc9   :  { %4565 = vmax.xlane.f32.xlu0 %v4564_v10  ;;  %4562 = vmax.xlane.f32.xlu1 %v4561_v11  ;;  %v4258_v48 = vpop.f32.mrf.mxu1  ;;  %v4502_v41 = vld [vmem:[#allocation2 + $0x68] sm:$0xff]  ;;  %v4499_v22 = vld [vmem:[#allocation2 + $0x50] sm:$0xff] }
 0xdca   :  { %4272 = vst.msk [vmem:[#allocation2 + $0x78] sm:$0xff] %vm719_vm4, %v4258_v48  ;;  %v10037_v17 = vadd.f32 %v9968_v9, %v4502_v41  ;;  %v10044_v51 = vadd.f32 %v9968_v9, %v4499_v22 }
 0xdcb   :  { %v7907_v15 = vpop.f32.mrf.mxu1 }
 0xdcc   :  { %v4576_v26 = vsel %vm719_vm4, %v10037_v17, -inf  ;;  %v4567_v30 = vsel %vm719_vm4, %v10044_v51, -inf }
 0xdcd   :  { %4574 = vmax.xlane.f32.xlu0 %v4573_v57  ;;  %4577 = vmax.xlane.f32.xlu1 %v4576_v26  ;;  %v4263_v14 = vpop.f32.mrf.mxu1  ;;  %v4503_v33 = vld [vmem:[#allocation2 + $0x70] sm:$0xff]  ;;  %v4500_v45 = vld [vmem:[#allocation2 + $0x58] sm:$0xff] }
 0xdce   :  { %4273 = vst.msk [vmem:[#allocation2 + $0x80] sm:$0xff] %vm719_vm4, %v4263_v14  ;;  %v10048_v13 = vadd.f32 %v9968_v9, %v4503_v33  ;;  %v10055_v59 = vadd.f32 %v9968_v9, %v4500_v45  ;;  %v10091_v33 = vpop.permute.xlu0 %5122 }
 0xdcf   :  { %v7910_v54 = vpop.f32.mrf.mxu1 }
 0xdd0   :  { %v4579_v47 = vsel %vm719_vm4, %v10048_v13, -inf  ;;  %v4570_v3 = vsel %vm719_vm4, %v10055_v59, -inf }
 0xdd1   :  { %4568 = vmax.xlane.f32.xlu0 %v4567_v30  ;;  %4580 = vmax.xlane.f32.xlu1 %v4579_v47  ;;  %v4268_v35 = vpop.f32.mrf.mxu1  ;;  %v4504_v1 = vld [vmem:[#allocation2 + $0x78] sm:$0xff]  ;;  %v10103_v47 = vpop.permute.xlu1 %5013 }
 0xdd2   :  { %4274 = vst.msk [vmem:[#allocation2 + $0x88] sm:$0xff] %vm719_vm4, %v4268_v35  ;;  %v10061_v55 = vadd.f32 %v9968_v9, %v4504_v1  ;;  %v10093_v45 = vpop.permute.xlu0 %5330 }
 0xdd3   :  { %v7913_v50 = vpop.f32.mrf.mxu1 }
 0xdd4   :  { %v4582_v16 = vsel %vm719_vm4, %v10061_v55, -inf }
 0xdd5   :  { %4571 = vmax.xlane.f32.xlu0 %v4570_v3  ;;  %v4365_v36 = vpop.f32.mrf.mxu0  ;;  %v4505_v6 = vld [vmem:[#allocation2 + $0x80] sm:$0xff]  ;;  %v10106_v50 = vpop.permute.xlu1 %5126 }
 0xdd6   :  { %4379 = vst.msk [vmem:[#allocation2 + $0x90] sm:$0xff] %vm719_vm4, %v4365_v36  ;;  %v4472_v7 = vpop.f32.mrf.mxu1  ;;  %v10068_v0 = vadd.f32 %v9968_v9, %v4505_v6  ;;  %v10095_v54 = vpop.permute.xlu0 %5334 }
 0xdd7   :  { %4486 = vst.msk [vmem:[#allocation2 + $0xa8] sm:$0xff] %vm719_vm4, %v4472_v7  ;;  %v7922_v5 = vpop.f32.mrf.mxu0 }
 0xdd8   :  { %v7937_v21 = vpop.f32.mrf.mxu1  ;;  %v4585_v24 = vsel %vm719_vm4, %v10068_v0, -inf }
 0xdd9   :  { %4583 = vmax.xlane.f32.xlu0 %v4582_v16  ;;  %v4506_v58 = vld [vmem:[#allocation2 + $0x88] sm:$0xff] }
 0xdda   :  { %v4370_v19 = vpop.f32.mrf.mxu0  ;;  %v4477_v56 = vpop.f32.mrf.mxu1  ;;  %v10085_v15 = vadd.f32 %v9968_v9, %v4506_v58 }
 0xddb   :  { %4380 = vst.msk [vmem:[#allocation2 + $0x98] sm:$0xff] %vm719_vm4, %v4370_v19  ;;  %4487 = vst.msk [vmem:[#allocation2 + $0xb0] sm:$0xff] %vm719_vm4, %v4477_v56  ;;  %v10099_v30 = vpop.permute.xlu0 %5332 }
 0xddc   :  { %v7925_v4 = vpop.f32.mrf.mxu0  ;;  %v7940_v37 = vpop.f32.mrf.mxu1  ;;  %v4588_v14 = vsel %vm719_vm4, %v10085_v15, -inf }
 0xddd   :  { %4586 = vmax.xlane.f32.xlu0 %v4585_v24  ;;  %v4507_v27 = vld [vmem:[#allocation2 + $0x90] sm:$0xff]  ;;  %v4545_v7 = vpop.xlane.xlu1 %4544 }
 0xdde   :  { %v4375_v28 = vpop.f32.mrf.mxu0  ;;  %v10075_v8 = vadd.f32 %v9968_v9, %v4507_v27  ;;  %v4510_v10 = vld [vmem:[#allocation2 + $0xa8] sm:$0xff]  ;;  %v4482_v11 = vpop.f32.mrf.mxu1  ;;  %v4611_v21 = vsub.f32 %v9981_v32, %v4545_v7 }
 0xddf   :  { %4381 = vst.msk [vmem:[#allocation2 + $0xa0] sm:$0xff] %vm719_vm4, %v4375_v28  ;;  %v10079_v48 = vadd.f32 %v9968_v9, %v4510_v10  ;;  %4488 = vst.msk [vmem:[#allocation2 + $0xb8] sm:$0xff] %vm719_vm4, %v4482_v11  ;;  %v4539_v35 = vpop.xlane.xlu0 %4538 }
 0xde0   :  { %v7928_v41 = vpop.f32.mrf.mxu0  ;;  %v4591_v22 = vsel %vm719_vm4, %v10075_v8, -inf  ;;  %v7943_v57 = vpop.f32.mrf.mxu1  ;;  %v4609_v1 = vsub.f32 %v9971_v52, %v4539_v35  ;;  %v4637_v16 = vmul.f32 1.442695, %v4611_v21 }
 0xde1   :  { %4592 = vmax.xlane.f32.xlu1 %v4591_v22  ;;  %v4600_v26 = vsel %vm719_vm4, %v10079_v48, -inf }
 0xde2   :  { %4601 = vmax.xlane.f32.xlu0 %v4600_v26  ;;  %v4633_v36 = vmul.f32 1.442695, %v4609_v1 }
 0xde3   :  { %v4542_v3 = vpop.xlane.xlu0 %4541 }
 0xde4   :  { %v4610_v6 = vsub.f32 %v9976_v29, %v4542_v3  ;;  %8279 = vpow2.f32 %v4633_v36 }
 0xde5   :  { %4589 = vmax.xlane.f32.xlu1 %v4588_v14 }
 0xde6   :  { %v4635_v5 = vmul.f32 1.442695, %v4610_v6 }
 0xde8   :  { %8281 = vpow2.f32 %v4635_v5 }
 0xde9   :  { %8283 = vpow2.f32 %v4637_v16 }
 0xdf1   :  { %v10110_v19 = vpop.eup %8279 }
 0xdf2   :  { %v4681_v56 = vsel %vm719_vm4, %v10110_v19, 0.0 }
 0xdf5   :  { %v10114_v52 = vpop.eup %8281 }
 0xdf6   :  { %5560 = vrot.lane.b32.xlu1 %v9826_v18, %s8488_s15  ;;  %v4684_v4 = vsel %vm719_vm4, %v10114_v52, 0.0  ;;  %v10118_v29 = vpop.eup %8283 }
 0xdf7   :  { %v4687_v32 = vsel %vm719_vm4, %v10118_v29, 0.0 }
 0xdf8   :  { %5447 = vrot.lane.b32.xlu0 %v9826_v18, %s8487_s14 }
 0xe1a   :  { %4682 = vadd.xlane.f32.xlu1 %v4681_v56 }
 0xe1e   :  { %4685 = vadd.xlane.f32.xlu1 %v4684_v4 }
 0xe22   :  { %4688 = vadd.xlane.f32.xlu1 %v4687_v32 }
 0xe46   :  { %v4548_v24 = vpop.xlane.xlu1 %4547 }
 0xe47   :  { %v4612_v37 = vsub.f32 %v9992_v42, %v4548_v24 }
 0xe49   :  { %v4639_v27 = vmul.f32 1.442695, %v4612_v37 }
 0xe4a   :  { %v4557_v58 = vpop.xlane.xlu1 %4556  ;;  %v4551_v28 = vpop.xlane.xlu0 %4550 }
 0xe4b   :  { %8285 = vpow2.f32 %v4639_v27  ;;  %v4615_v10 = vsub.f32 %v9997_v44, %v4557_v58  ;;  %v4613_v11 = vsub.f32 %v10002_v61, %v4551_v28 }
 0xe4d   :  { %v4645_v41 = vmul.f32 1.442695, %v4615_v10  ;;  %v4641_v22 = vmul.f32 1.442695, %v4613_v11 }
 0xe4e   :  { %v4560_v57 = vpop.xlane.xlu1 %4559  ;;  %v4554_v26 = vpop.xlane.xlu0 %4553 }
 0xe4f   :  { %8287 = vpow2.f32 %v4645_v41  ;;  %v4616_v14 = vsub.f32 %v10009_v63, %v4560_v57  ;;  %v4614_v35 = vsub.f32 %v10014_v12, %v4554_v26 }
 0xe50   :  { %8289 = vpow2.f32 %v4641_v22 }
 0xe51   :  { %v4647_v1 = vmul.f32 1.442695, %v4616_v14  ;;  %v4643_v42 = vmul.f32 1.442695, %v4614_v35 }
 0xe52   :  { %v4563_v3 = vpop.xlane.xlu1 %4562  ;;  %v4566_v36 = vpop.xlane.xlu0 %4565 }
 0xe53   :  { %8291 = vpow2.f32 %v4647_v1  ;;  %v4617_v6 = vsub.f32 %v10021_v46, %v4563_v3  ;;  %v4618_v44 = vsub.f32 %v10026_v43, %v4566_v36 }
 0xe54   :  { %8293 = vpow2.f32 %v4643_v42 }
 0xe55   :  { %v4649_v61 = vmul.f32 1.442695, %v4617_v6  ;;  %v4651_v7 = vmul.f32 1.442695, %v4618_v44 }
 0xe56   :  { %v4578_v5 = vpop.xlane.xlu1 %4577  ;;  %v4575_v21 = vpop.xlane.xlu0 %4574 }
 0xe57   :  { %8295 = vpow2.f32 %v4649_v61  ;;  %v4622_v63 = vsub.f32 %v10037_v17, %v4578_v5  ;;  %v4621_v12 = vsub.f32 %v10033_v39, %v4575_v21 }
 0xe58   :  { %v10131_v16 = vpop.eup %8285  ;;  %8297 = vpow2.f32 %v4651_v7 }
 0xe59   :  { %v4657_v56 = vmul.f32 1.442695, %v4621_v12  ;;  %v4690_v4 = vsel %vm719_vm4, %v10131_v16, 0.0  ;;  %v4659_v46 = vmul.f32 1.442695, %v4622_v63 }
 0xe5a   :  { %4691 = vadd.xlane.f32.xlu0 %v4690_v4  ;;  %v4569_v43 = vpop.xlane.xlu0 %4568  ;;  %v4581_v32 = vpop.xlane.xlu1 %4580 }
 0xe5b   :  { %v4619_v24 = vsub.f32 %v10044_v51, %v4569_v43  ;;  %8299 = vpow2.f32 %v4657_v56  ;;  %v4623_v58 = vsub.f32 %v10048_v13, %v4581_v32 }
 0xe5c   :  { %v10136_v37 = vpop.eup %8287  ;;  %8301 = vpow2.f32 %v4659_v46 }
 0xe5d   :  { %v10138_v27 = vpop.eup %8289  ;;  %v4653_v17 = vmul.f32 1.442695, %v4619_v24  ;;  %v4699_v39 = vsel %vm719_vm4, %v10136_v37, 0.0  ;;  %v4661_v26 = vmul.f32 1.442695, %v4623_v58 }
 0xe5e   :  { %4700 = vadd.xlane.f32.xlu1 %v4699_v39  ;;  %v4693_v28 = vsel %vm719_vm4, %v10138_v27, 0.0  ;;  %v4572_v10 = vpop.xlane.xlu0 %4571 }
 0xe5f   :  { %4694 = vadd.xlane.f32.xlu0 %v4693_v28  ;;  %v4620_v51 = vsub.f32 %v10055_v59, %v4572_v10  ;;  %8303 = vpow2.f32 %v4653_v17 }
 0xe60   :  { %v10146_v11 = vpop.eup %8291 }
 0xe61   :  { %v10148_v41 = vpop.eup %8293  ;;  %v4655_v22 = vmul.f32 1.442695, %v4620_v51  ;;  %v4702_v57 = vsel %vm719_vm4, %v10146_v11, 0.0 }
 0xe62   :  { %4703 = vadd.xlane.f32.xlu1 %v4702_v57  ;;  %v4696_v13 = vsel %vm719_vm4, %v10148_v41, 0.0  ;;  %v4584_v14 = vpop.xlane.xlu0 %4583 }
 0xe63   :  { %8305 = vpow2.f32 %v4655_v22  ;;  %4697 = vadd.xlane.f32.xlu0 %v4696_v13  ;;  %v4624_v35 = vsub.f32 %v10061_v55, %v4584_v14 }
 0xe64   :  { %v10155_v59 = vpop.eup %8295  ;;  %8307 = vpow2.f32 %v4661_v26 }
 0xe65   :  { %v10157_v1 = vpop.eup %8297  ;;  %v4663_v42 = vmul.f32 1.442695, %v4624_v35  ;;  %v4705_v3 = vsel %vm719_vm4, %v10155_v59, 0.0 }
 0xe66   :  { %4706 = vadd.xlane.f32.xlu1 %v4705_v3  ;;  %v4708_v36 = vsel %vm719_vm4, %v10157_v1, 0.0  ;;  %v4587_v32 = vpop.xlane.xlu0 %4586 }
 0xe67   :  { %8309 = vpow2.f32 %v4663_v42  ;;  %4709 = vadd.xlane.f32.xlu0 %v4708_v36  ;;  %v4625_v17 = vsub.f32 %v10068_v0, %v4587_v32 }
 0xe68   :  { %v10163_v6 = vpop.eup %8299 }
 0xe69   :  { %v4717_v55 = vsel %vm719_vm4, %v10163_v6, 0.0  ;;  %v10167_v44 = vpop.eup %8301  ;;  %v4665_v28 = vmul.f32 1.442695, %v4625_v17 }
 0xe6a   :  { %4718 = vadd.xlane.f32.xlu1 %v4717_v55  ;;  %v4720_v7 = vsel %vm719_vm4, %v10167_v44, 0.0  ;;  %v4593_v43 = vpop.xlane.xlu1 %4592 }
 0xe6b   :  { %v4627_v24 = vsub.f32 %v10075_v8, %v4593_v43  ;;  %v4602_v51 = vpop.xlane.xlu0 %4601  ;;  %v4509_v43 = vld [vmem:[#allocation2 + $0xa0] sm:$0xff] }
 0xe6c   :  { %v10169_v61 = vpop.eup %8303  ;;  %v4630_v22 = vsub.f32 %v10079_v48, %v4602_v51 }
 0xe6d   :  { %v4711_v5 = vsel %vm719_vm4, %v10169_v61, 0.0  ;;  %v4669_v58 = vmul.f32 1.442695, %v4627_v24  ;;  %v10243_v24 = vadd.f32 %v9968_v9, %v4509_v43 }
 0xe6e   :  { %4721 = vadd.xlane.f32.xlu1 %v4720_v7  ;;  %4712 = vadd.xlane.f32.xlu0 %v4711_v5  ;;  %v4590_v39 = vpop.xlane.xlu1 %4589  ;;  %v4675_v26 = vmul.f32 1.442695, %v4630_v22 }
 0xe6f   :  { %v4626_v10 = vsub.f32 %v10085_v15, %v4590_v39  ;;  %8311 = vpow2.f32 %v4669_v58  ;;  %v4597_v58 = vsel %vm719_vm4, %v10243_v24, -inf }
 0xe70   :  { %v10175_v21 = vpop.eup %8305  ;;  %8313 = vpow2.f32 %v4665_v28 }
 0xe71   :  { %v4714_v63 = vsel %vm719_vm4, %v10175_v21, 0.0  ;;  %v10179_v12 = vpop.eup %8307  ;;  %v4667_v57 = vmul.f32 1.442695, %v4626_v10 }
 0xe72   :  { %4715 = vadd.xlane.f32.xlu1 %v4714_v63  ;;  %v4723_v46 = vsel %vm719_vm4, %v10179_v12, 0.0  ;;  %v10195_v13 = vpop.permute.xlu1 %5560 }
 0xe73   :  { %8315 = vpow2.f32 %v4667_v57 }
 0xe74   :  { %v10181_v56 = vpop.eup %8309  ;;  %8317 = vpow2.f32 %v4675_v26 }
 0xe75   :  { %v4726_v4 = vsel %vm719_vm4, %v10181_v56, 0.0 }
 0xe76   :  { %4727 = vadd.xlane.f32.xlu0 %v4726_v4  ;;  %4724 = vadd.xlane.f32.xlu1 %v4723_v46 }
 0xe7c   :  { %v10197_v8 = vpop.eup %8311 }
 0xe7d   :  { %v10199_v35 = vpop.eup %8313  ;;  %v4735_v15 = vsel %vm719_vm4, %v10197_v8, 0.0 }
 0xe7e   :  { %v4729_v48 = vsel %vm719_vm4, %v10199_v35, 0.0 }
 0xe80   :  { %v10205_v3 = vpop.eup %8315 }
 0xe81   :  { %v4732_v36 = vsel %vm719_vm4, %v10205_v3, 0.0  ;;  %v10209_v55 = vpop.eup %8317 }
 0xe82   :  { %v4744_v63 = vsel %vm719_vm4, %v10209_v55, 0.0 }
 0xe87   :  { %5558 = vrot.lane.b32.xlu1 %v9832_v38, %s8488_s15 }
 0xe8c   :  { %5445 = vrot.lane.b32.xlu0 %v9832_v38, %s8487_s14 }
 0xea3   :  { %v4683_v14 = vpop.xlane.xlu1 %4682 }
 0xea4   :  { %8319 = vrcp.f32 %v4683_v14 }
 0xea7   :  { %v4686_v0 = vpop.xlane.xlu1 %4685 }
 0xea8   :  { %8321 = vrcp.f32 %v4686_v0 }
 0xeab   :  { %v4689_v42 = vpop.xlane.xlu1 %4688  ;;  %4736 = vadd.xlane.f32.xlu0 %v4735_v15  ;;  %4730 = vadd.xlane.f32.xlu1 %v4729_v48 }
 0xeac   :  { %8323 = vrcp.f32 %v4689_v42 }
 0xeaf   :  { %4733 = vadd.xlane.f32.xlu1 %v4732_v36 }
 0xeb1   :  { %v8320_v7 = vpop.eup %8319 }
 0xeb2   :  { %v4777_v5 = vmul.f32 %v8320_v7, %v10110_v19 }
 0xeb3   :  { %4745 = vadd.xlane.f32.xlu1 %v4744_v63 }
 0xeb4   :  { %7951 = vmatmul.mubr.msk.f32.vlgmr.msra.gmra.mxu0 %vm719_vm4, %v4777_v5 }
 0xeb5   :  { %v8322_v4 = vpop.eup %8321  ;;  %7975 = vmatpush3.msra.mxu0 %v10103_v47  ;;  %7953 = vmatprep.mubr.msk.f32.mxu0 %vm8485_vm2, %v8484_v60 }
 0xeb6   :  { %7976 = vmatprep.subr.mxu0 %v8484_v60  ;;  %v4778_v46 = vmul.f32 %v8322_v4, %v10114_v52  ;;  %v10238_v52 = vpop.permute.xlu0 %5447 }
 0xeb7   :  { %7977 = vmatpush3.msra.mxu0 %v9947_v62  ;;  %v4508_v62 = vld [vmem:[#allocation2 + $0x98] sm:$0xff] }
 0xeb8   :  { %7978 = vmatprep.subr.mxu0 %v8484_v60  ;;  %7954 = vmatmul.mubr.msk.f32.gmra.mxu0 %vm719_vm4, %v4778_v46 }
 0xeb9   :  { %v8324_v19 = vpop.eup %8323  ;;  %7979 = vmatpush3.msra.mxu0 %v9955_v23  ;;  %7956 = vmatprep.mubr.msk.f32.mxu0 %vm8485_vm2, %v8484_v60  ;;  %v10236_v23 = vadd.f32 %v9968_v9, %v4508_v62 }
 0xeba   :  { %v4779_v47 = vmul.f32 %v8324_v19, %v10118_v29  ;;  %8004 = vmatprep.subr.mxu0 %v8484_v60 }
 0xebb   :  { %v4594_v29 = vsel %vm719_vm4, %v10236_v23, -inf }
 0xebc   :  { %7957 = vmatmul.mubr.msk.f32.gmra.mxu0 %vm719_vm4, %v4779_v47 }
 0xebd   :  { %7980 = vmatprep.mubr.msk.f32.mxu0 %vm8485_vm2, %v8484_v60 }
 0xec1   :  { %5443 = vrot.lane.b32.xlu0 %v9820_v20, %s8487_s14 }
 0xec4   :  { %5556 = vrot.lane.b32.xlu1 %v9820_v20, %s8488_s15 }
 0xee0   :  { %4595 = vmax.xlane.f32.xlu0 %v4594_v29 }
 0xee3   :  { %v4692_v32 = vpop.xlane.xlu0 %4691 }
 0xee4   :  { %8325 = vrcp.f32 %v4692_v32 }
 0xee7   :  { %v4701_v17 = vpop.xlane.xlu1 %4700 }
 0xee8   :  { %8327 = vrcp.f32 %v4701_v17  ;;  %v4695_v39 = vpop.xlane.xlu0 %4694  ;;  %4598 = vmax.xlane.f32.xlu1 %v4597_v58 }
 0xee9   :  { %8329 = vrcp.f32 %v4695_v39 }
 0xeeb   :  { %v4704_v28 = vpop.xlane.xlu1 %4703 }
 0xeec   :  { %8331 = vrcp.f32 %v4704_v28  ;;  %v4698_v10 = vpop.xlane.xlu0 %4697 }
 0xeed   :  { %8333 = vrcp.f32 %v4698_v10 }
 0xeef   :  { %v4707_v51 = vpop.xlane.xlu1 %4706 }
 0xef0   :  { %8335 = vrcp.f32 %v4707_v51  ;;  %v4710_v22 = vpop.xlane.xlu0 %4709 }
 0xef1   :  { %v8326_v57 = vpop.eup %8325  ;;  %8337 = vrcp.f32 %v4710_v22 }
 0xef2   :  { %v4780_v9 = vmul.f32 %v8326_v57, %v10131_v16 }
 0xef3   :  { %v4719_v26 = vpop.xlane.xlu1 %4718 }
 0xef4   :  { %7966 = vmatmul.mubr.msk.f32.vlgmr.msra.gmra.mxu1 %vm719_vm4, %v4780_v9  ;;  %8339 = vrcp.f32 %v4719_v26 }
 0xef5   :  { %v8328_v14 = vpop.eup %8327  ;;  %7990 = vmatpush3.msra.mxu1 %v10106_v50  ;;  %7968 = vmatprep.mubr.msk.f32.mxu1 %vm8485_vm2, %v8484_v60 }
 0xef6   :  { %v8330_v0 = vpop.eup %8329  ;;  %v4783_v15 = vmul.f32 %v8328_v14, %v10136_v37  ;;  %7991 = vmatprep.subr.mxu1 %v8484_v60 }
 0xef7   :  { %7992 = vmatpush3.msra.mxu1 %v9957_v49  ;;  %v4781_v42 = vmul.f32 %v8330_v0, %v10138_v27  ;;  %v4722_v16 = vpop.xlane.xlu1 %4721  ;;  %v4713_v48 = vpop.xlane.xlu0 %4712 }
 0xef8   :  { %7993 = vmatprep.subr.mxu1 %v8484_v60  ;;  %7981 = vmatmul.mubr.msk.f32.vlgmr.msra.gmra.mxu0 %vm719_vm4, %v4783_v15  ;;  %8341 = vrcp.f32 %v4722_v16 }
 0xef9   :  { %v8332_v36 = vpop.eup %8331  ;;  %7969 = vmatmul.mubr.msk.f32.gmra.mxu1 %vm719_vm4, %v4781_v42  ;;  %8005 = vmatpush3.msra.mxu0 %v9826_v18  ;;  %8343 = vrcp.f32 %v4713_v48 }
 0xefa   :  { %v8334_v50 = vpop.eup %8333  ;;  %7994 = vmatpush3.msra.mxu1 %v10091_v33  ;;  %8006 = vmatprep.subr.mxu0 %v8484_v60  ;;  %v4784_v49 = vmul.f32 %v8332_v36, %v10146_v11 }
 0xefb   :  { %8007 = vmatpush3.msra.mxu0 %v9832_v38  ;;  %7983 = vmatprep.mubr.msk.f32.mxu0 %vm8485_vm2, %v8484_v60  ;;  %v4782_v37 = vmul.f32 %v8334_v50, %v10148_v41  ;;  %v4716_v27 = vpop.xlane.xlu1 %4715 }
 0xefc   :  { %8008 = vmatprep.subr.mxu0 %v8484_v60  ;;  %7971 = vmatprep.mubr.msk.f32.mxu1 %vm8485_vm2, %v8484_v60  ;;  %8345 = vrcp.f32 %v4716_v27 }
 0xefd   :  { %v8336_v18 = vpop.eup %8335  ;;  %7972 = vmatmul.mubr.msk.f32.gmra.mxu1 %vm719_vm4, %v4782_v37  ;;  %7984 = vmatmul.mubr.msk.f32.gmra.mxu0 %vm719_vm4, %v4784_v49 }
 0xefe   :  { %v8338_v33 = vpop.eup %8337  ;;  %8009 = vmatpush3.msra.mxu0 %v9820_v20  ;;  %7986 = vmatprep.mubr.msk.f32.mxu0 %vm8485_vm2, %v8484_v60  ;;  %v4785_v38 = vmul.f32 %v8336_v18, %v10155_v59 }
 0xeff   :  { %v4786_v11 = vmul.f32 %v8338_v33, %v10157_v1  ;;  %7995 = vmatprep.mubr.msk.f32.mxu1 %vm8485_vm2, %v8484_v60  ;;  %8019 = vmatprep.subr.mxu1 %v8484_v60  ;;  %v4728_v41 = vpop.xlane.xlu0 %4727  ;;  %v4725_v7 = vpop.xlane.xlu1 %4724  ;;  %v3219_v33 = vld [vmem:[%s10636_s2 + $0x168] sm:$0xff] }
 0xf00   :  { %8347 = vrcp.f32 %v4728_v41  ;;  %8034 = vmatprep.subr.mxu0 %v8484_v60 }
 0xf01   :  { %8349 = vrcp.f32 %v4725_v7  ;;  %7987 = vmatmul.mubr.msk.f32.gmra.mxu0 %vm719_vm4, %v4785_v38  ;;  %7996 = vmatmul.mubr.msk.f32.vlgmr.msra.gmra.mxu1 %vm719_vm4, %v4786_v11  ;;  %v8340_v20 = vpop.eup %8339  ;;  %v3218_v38 = vld [vmem:[%s10636_s2 + $0x160] sm:$0xff] }
 0xf02   :  { %8020 = vmatpush3.msra.mxu1 %v10095_v54  ;;  %8010 = vmatprep.mubr.msk.f32.mxu0 %vm8485_vm2, %v8484_v60  ;;  %v4789_v59 = vmul.f32 %v8340_v20, %v10163_v6 }
 0xf03   :  { %8021 = vmatprep.subr.mxu1 %v8484_v60  ;;  %7998 = vmatprep.mubr.msk.f32.mxu1 %vm8485_vm2, %v8484_v60  ;;  %v5446_v5 = vpop.permute.xlu0 %5445 }
 0xf04   :  { %8022 = vmatpush3.msra.mxu1 %v10099_v30 }
 0xf05   :  { %8023 = vmatprep.subr.mxu1 %v8484_v60  ;;  %8011 = vmatmul.mubr.msk.f32.vlgmr.msra.gmra.mxu0 %vm719_vm4, %v4789_v59  ;;  %v8342_v1 = vpop.eup %8341  ;;  %v3217_v59 = vld [vmem:[%s10636_s2 + $0x158] sm:$0xff] }
 0xf06   :  { %8024 = vmatpush3.msra.mxu1 %v10093_v45  ;;  %8035 = vmatpush3.msra.mxu0 %v10238_v52  ;;  %v8344_v54 = vpop.eup %8343  ;;  %v4790_v6 = vmul.f32 %v8342_v1, %v10167_v44 }
 0xf07   :  { %8036 = vmatprep.subr.mxu0 %v8484_v60  ;;  %8013 = vmatprep.mubr.msk.f32.mxu0 %vm8485_vm2, %v8484_v60  ;;  %v4787_v30 = vmul.f32 %v8344_v54, %v10169_v61 }
 0xf08   :  { %8037 = vmatpush3.msra.mxu0 %v5446_v5  ;;  %8049 = vmatprep.subr.mxu1 %v8484_v60  ;;  %v3216_v5 = vld [vmem:[%s10636_s2 + $0x150] sm:$0xff] }
 0xf09   :  { %8014 = vmatmul.mubr.msk.f32.gmra.mxu0 %vm719_vm4, %v4790_v6  ;;  %8038 = vmatprep.subr.mxu0 %v8484_v60  ;;  %v8346_v45 = vpop.eup %8345 }
 0xf0a   :  { %7999 = vmatmul.mubr.msk.f32.gmra.mxu1 %vm719_vm4, %v4787_v30  ;;  %8016 = vmatprep.mubr.msk.f32.mxu0 %vm8485_vm2, %v8484_v60  ;;  %v4788_v44 = vmul.f32 %v8346_v45, %v10175_v21  ;;  %v5559_v21 = vpop.permute.xlu1 %5558 }
 0xf0b   :  { %8001 = vmatprep.mubr.msk.f32.mxu1 %vm8485_vm2, %v8484_v60 }
 0xf0d   :  { %v8348_v63 = vpop.eup %8347 }
 0xf0e   :  { %v8350_v4 = vpop.eup %8349  ;;  %v4792_v61 = vmul.f32 %v8348_v63, %v10181_v56  ;;  %8002 = vmatmul.mubr.msk.f32.gmra.mxu1 %vm719_vm4, %v4788_v44 }
 0xf0f   :  { %8025 = vmatprep.mubr.msk.f32.mxu1 %vm8485_vm2, %v8484_v60  ;;  %v4791_v46 = vmul.f32 %v8350_v4, %v10179_v12 }
 0xf11   :  { %8017 = vmatmul.mubr.msk.f32.gmra.mxu0 %vm719_vm4, %v4791_v46 }
 0xf12   :  { %8026 = vmatmul.mubr.msk.f32.vlgmr.msra.gmra.mxu1 %vm719_vm4, %v4792_v61  ;;  %8040 = vmatprep.mubr.msk.f32.mxu0 %vm8485_vm2, %v8484_v60 }
 0xf13   :  { %8050 = vmatpush3.msra.mxu1 %v10195_v13  ;;  %8028 = vmatprep.mubr.msk.f32.mxu1 %vm8485_vm2, %v8484_v60 }
 0xf14   :  { %8051 = vmatprep.subr.mxu1 %v8484_v60 }
 0xf15   :  { %8052 = vmatpush3.msra.mxu1 %v5559_v21 }
 0xf16   :  { %8053 = vmatprep.subr.mxu1 %v8484_v60 }
 0xf34   :  { %v4737_v56 = vpop.xlane.xlu0 %4736  ;;  %v4731_v12 = vpop.xlane.xlu1 %4730 }
 0xf35   :  { %8351 = vrcp.f32 %v4737_v56 }
 0xf36   :  { %8353 = vrcp.f32 %v4731_v12 }
 0xf38   :  { %v5444_v19 = vpop.permute.xlu0 %5443  ;;  %v4734_v47 = vpop.xlane.xlu1 %4733 }
 0xf39   :  { %8039 = vmatpush3.msra.mxu0 %v5444_v19  ;;  %8355 = vrcp.f32 %v4734_v47 }
 0xf3a   :  { %8064 = vmatprep.subr.mxu0 %v3219_v33 }
 0xf3c   :  { %v4746_v62 = vpop.xlane.xlu1 %4745 }
 0xf3d   :  { %8357 = vrcp.f32 %v4746_v62 }
 0xf40   :  { %v5557_v13 = vpop.permute.xlu1 %5556 }
 0xf41   :  { %8054 = vmatpush3.msra.mxu1 %v5557_v13 }
 0xf42   :  { %v8352_v52 = vpop.eup %8351 }
 0xf43   :  { %v8354_v29 = vpop.eup %8353  ;;  %v4795_v43 = vmul.f32 %v8352_v52, %v10197_v8 }
 0xf44   :  { %v4793_v32 = vmul.f32 %v8354_v29, %v10199_v35 }
 0xf45   :  { %8041 = vmatmul.mubr.msk.f32.vlgmr.msra.gmra.mxu0 %vm719_vm4, %v4795_v43 }
 0xf46   :  { %8029 = vmatmul.mubr.msk.f32.gmra.mxu1 %vm719_vm4, %v4793_v32  ;;  %8043 = vmatprep.mubr.msk.f32.mxu0 %vm8485_vm2, %v8484_v60  ;;  %v8356_v17 = vpop.eup %8355 }
 0xf47   :  { %8031 = vmatprep.mubr.msk.f32.mxu1 %vm8485_vm2, %v8484_v60  ;;  %v4794_v39 = vmul.f32 %v8356_v17, %v10205_v3  ;;  %8065 = vmatpush3.msra.mxu0 %v3219_v33 }
 0xf48   :  { %8066 = vmatprep.subr.mxu0 %v3218_v38 }
 0xf49   :  { %8067 = vmatpush3.msra.mxu0 %v3218_v38 }
 0xf4a   :  { %8032 = vmatmul.mubr.msk.f32.gmra.mxu1 %vm719_vm4, %v4794_v39  ;;  %v8358_v58 = vpop.eup %8357  ;;  %8068 = vmatprep.subr.mxu0 %v3217_v59 }
 0xf4b   :  { %8055 = vmatprep.mubr.msk.f32.mxu1 %vm8485_vm2, %v8484_v60  ;;  %v4798_v8 = vmul.f32 %v8358_v58, %v10209_v55  ;;  %8069 = vmatpush3.msra.mxu0 %v3217_v59 }
 0xf4c   :  { %8070 = vmatprep.subr.mxu0 %v3216_v5 }
 0xf4d   :  { %8071 = vmatpush3.msra.mxu0 %v3216_v5 }
 0xf4e   :  { %8056 = vmatmul.mubr.msk.f32.vlgmr.msra.gmra.mxu1 %vm719_vm4, %v4798_v8 }
 0xf4f   :  { %8058 = vmatprep.mubr.msk.f32.mxu1 %vm8485_vm2, %v8484_v60 }
 0xf69   :  { %v4596_v35 = vpop.xlane.xlu0 %4595 }
 0xf6a   :  { %v4628_v28 = vsub.f32 %v10236_v23, %v4596_v35 }
 0xf6c   :  { %v4671_v10 = vmul.f32 1.442695, %v4628_v28 }
 0xf6e   :  { %8359 = vpow2.f32 %v4671_v10  ;;  %v4511_v10 = vld [vmem:[#allocation2 + $0xb0] sm:$0xff] }
 0xf71   :  { %v4599_v51 = vpop.xlane.xlu1 %4598 }
 0xf72   :  { %v4629_v3 = vsub.f32 %v10243_v24, %v4599_v51 }
 0xf74   :  { %v4876_v22 = vpop.f32.mrf.mxu0  ;;  %v4673_v57 = vmul.f32 1.442695, %v4629_v3  ;;  %v8414_v3 = vld [vmem:[%s10635_s1 + $0x30] ss:$0 sm:$0xff] }
 0xf75   :  { %4890 = vst.msk [vmem:[#allocation3] sm:$0xff] %vm620_vm3, %v4876_v22  ;;  %v4535_v22 = vadd.f32 %v8414_v3, %v4511_v10 }
 0xf76   :  { %v7952_v9 = vpop.f32.mrf.mxu0  ;;  %8361 = vpow2.f32 %v4673_v57 }
 0xf77   :  { %v4603_v57 = vsel %vm719_vm4, %v4535_v22, -inf }
 0xf78   :  { %v4881_v55 = vpop.f32.mrf.mxu0 }
 0xf79   :  { %4891 = vst.msk [vmem:[#allocation3 + $0x8] sm:$0xff] %vm620_vm3, %v4881_v55 }
 0xf7a   :  { %v7955_v26 = vpop.f32.mrf.mxu0 }
 0xf7b   :  { %v10343_v14 = vpop.eup %8359  ;;  %v4512_v26 = vld [vmem:[#allocation2 + $0xb8] sm:$0xff] }
 0xf7c   :  { %v4886_v0 = vpop.f32.mrf.mxu0  ;;  %v4738_v23 = vsel %vm719_vm4, %v10343_v14, 0.0 }
 0xf7d   :  { %4892 = vst.msk [vmem:[#allocation3 + $0x10] sm:$0xff] %vm620_vm3, %v4886_v0  ;;  %4739 = vadd.xlane.f32.xlu0 %v4738_v23  ;;  %v4536_v0 = vadd.f32 %v8414_v3, %v4512_v26  ;;  %v3222_v26 = vld [vmem:[%s10636_s2 + $0x180] sm:$0xff] }
 0xf7e   :  { %v7958_v24 = vpop.f32.mrf.mxu0 }
 0xf83   :  { %v10348_v15 = vpop.eup %8361 }
 0xf84   :  { %v4741_v42 = vsel %vm719_vm4, %v10348_v15, 0.0 }
 0xf85   :  { %4742 = vadd.xlane.f32.xlu0 %v4741_v42 }
 0xfb4   :  { %v4980_v16 = vpop.f32.mrf.mxu1 }
 0xfb5   :  { %4997 = vrot.lane.b32.xlu1 %v4980_v16, %s8489_s20 }
 0xfb6   :  { %v7967_v48 = vpop.f32.mrf.mxu1 }
 0xfb8   :  { %v5093_v36 = vpop.f32.mrf.mxu0 }
 0xfb9   :  { %v4985_v50 = vpop.f32.mrf.mxu1  ;;  %5110 = vrot.lane.b32.xlu1 %v5093_v36, %s8483_s25 }
 0xfba   :  { %4999 = vrot.lane.b32.xlu0 %v4985_v50, %s8489_s20  ;;  %v7982_v49 = vpop.f32.mrf.mxu0 }
 0xfbb   :  { %v7970_v37 = vpop.f32.mrf.mxu1 }
 0xfbd   :  { %v4990_v27 = vpop.f32.mrf.mxu1  ;;  %v5098_v18 = vpop.f32.mrf.mxu0 }
 0xfbe   :  { %5112 = vrot.lane.b32.xlu1 %v5098_v18, %s8483_s25  ;;  %5001 = vrot.lane.b32.xlu0 %v4990_v27, %s8489_s20 }
 0xfbf   :  { %v7973_v11 = vpop.f32.mrf.mxu1  ;;  %v7985_v41 = vpop.f32.mrf.mxu0 }
 0xfc1   :  { %v5103_v7 = vpop.f32.mrf.mxu0  ;;  %v5206_v20 = vpop.f32.mrf.mxu1 }
 0xfc2   :  { %5114 = vrot.lane.b32.xlu1 %v5103_v7, %s8483_s25  ;;  %5223 = vrot.lane.b32.xlu0 %v5206_v20, %s8490_s29 }
 0xfc3   :  { %v7988_v1 = vpop.f32.mrf.mxu0  ;;  %v7997_v54 = vpop.f32.mrf.mxu1 }
 0xfc5   :  { %v5310_v6 = vpop.f32.mrf.mxu0 }
 0xfc6   :  { %5324 = vst.msk [vmem:[#allocation3 + $0x18] sm:$0xff] %vm620_vm3, %v5310_v6  ;;  %v10419_v6 = vld [vmem:[%s10635_s1 + $0x40] ss:$0 sm:$0xff] }
 0xfc7   :  { %v8012_v30 = vpop.f32.mrf.mxu0 }
 0xfc9   :  { %v5315_v45 = vpop.f32.mrf.mxu0 }
 0xfca   :  { %v5211_v44 = vpop.f32.mrf.mxu1  ;;  %5325 = vst.msk [vmem:[#allocation3 + $0x20] sm:$0xff] %vm620_vm3, %v5315_v45 }
 0xfcb   :  { %5225 = vrot.lane.b32.xlu1 %v5211_v44, %s8490_s29  ;;  %v8015_v63 = vpop.f32.mrf.mxu0 }
 0xfcc   :  { %v8000_v4 = vpop.f32.mrf.mxu1 }
 0xfce   :  { %v5216_v61 = vpop.f32.mrf.mxu1 }
 0xfcf   :  { %5227 = vrot.lane.b32.xlu1 %v5216_v61, %s8490_s29 }
 0xfd0   :  { %v8003_v46 = vpop.f32.mrf.mxu1 }
 0xfd1   :  { %v5320_v21 = vpop.f32.mrf.mxu0 }
 0xfd2   :  { %5326 = vst.msk [vmem:[#allocation3 + $0x28] sm:$0xff] %vm620_vm3, %v5320_v21  ;;  %v5414_v56 = vpop.f32.mrf.mxu1 }
 0xfd3   :  { %5431 = vrot.lane.b32.xlu0 %v5414_v56, %s8489_s20  ;;  %v8018_v12 = vpop.f32.mrf.mxu0 }
 0xfd4   :  { %v8027_v19 = vpop.f32.mrf.mxu1 }
0x1005   :  { %v5527_v47 = vpop.f32.mrf.mxu0 }
0x1006   :  { %v10377_v62 = vpop.f32.mrf.mxu1  ;;  %5544 = vrot.lane.b32.xlu0 %v5527_v47, %s8483_s25  ;;  %v4740_v13 = vpop.xlane.xlu0 %4739 }
0x1007   :  { %8363 = vrcp.f32 %v4740_v13  ;;  %v8042_v52 = vpop.f32.mrf.mxu0 }
0x1008   :  { %v8030_v29 = vpop.f32.mrf.mxu1 }
0x100a   :  { %v10380_v43 = vpop.f32.mrf.mxu1 }
0x100c   :  { %v8033_v32 = vpop.f32.mrf.mxu1 }
0x100e   :  { %v5640_v17 = vpop.f32.mrf.mxu1  ;;  %v4743_v39 = vpop.xlane.xlu0 %4742 }
0x100f   :  { %5657 = vrot.lane.b32.xlu1 %v5640_v17, %s8490_s29  ;;  %8365 = vrcp.f32 %v4743_v39 }
0x1010   :  { %v8057_v58 = vpop.f32.mrf.mxu1 }
0x1014   :  { %v8364_v8 = vpop.eup %8363 }
0x1015   :  { %v4796_v35 = vmul.f32 %v8364_v8, %v10343_v14 }
0x1017   :  { %8044 = vmatmul.mubr.msk.f32.gmra.mxu0 %vm719_vm4, %v4796_v35 }
0x1018   :  { %8046 = vmatprep.mubr.msk.f32.mxu0 %vm8485_vm2, %v8484_v60 }
0x101c   :  { %v8366_v28 = vpop.eup %8365 }
0x101d   :  { %v4797_v51 = vmul.f32 %v8366_v28, %v10348_v15  ;;  %v4606_v15 = vsel %vm719_vm4, %v4536_v0, -inf }
0x101f   :  { %8047 = vmatmul.mubr.msk.f32.gmra.mxu0 %vm719_vm4, %v4797_v51 }
0x1025   :  { %4604 = vmax.xlane.f32.xlu0 %v4603_v57 }
0x1027   :  { %v4998_v9 = vpop.permute.xlu1 %4997 }
0x1028   :  { %5006 = vst.msk [vmem:[#allocation3] sm:$0xff] %vm1994_vm5, %v4998_v9 }
0x102b   :  { %v5111_v55 = vpop.permute.xlu1 %5110 }
0x102c   :  { %5119 = vst.msk [vmem:[#allocation3] sm:$0xff] %vm2108_vm6, %v5111_v55  ;;  %v5000_v14 = vpop.permute.xlu0 %4999  ;;  %v3223_v55 = vld [vmem:[%s10636_s2 + $0x188] sm:$0xff] }
0x102d   :  { %5007 = vst.msk [vmem:[#allocation3 + $0x8] sm:$0xff] %vm1994_vm5, %v5000_v14  ;;  %8081 = vmatprep.subr.mxu1 %v3223_v55  ;;  %v3221_v14 = vld [vmem:[%s10636_s2 + $0x178] sm:$0xff] }
0x102e   :  { %8082 = vmatpush3.msra.mxu1 %v3223_v55  ;;  %v3227_v55 = vld [vmem:[%s10636_s2 + $0x1a8] sm:$0xff] }
0x102f   :  { %8083 = vmatprep.subr.mxu1 %v3222_v26 }
0x1030   :  { %v5113_v23 = vpop.permute.xlu1 %5112  ;;  %v5002_v24 = vpop.permute.xlu0 %5001  ;;  %8084 = vmatpush3.msra.mxu1 %v3222_v26  ;;  %v3226_v26 = vld [vmem:[%s10636_s2 + $0x1a0] sm:$0xff] }
0x1031   :  { %5120 = vst.msk [vmem:[#allocation3 + $0x8] sm:$0xff] %vm2108_vm6, %v5113_v23  ;;  %8085 = vmatprep.subr.mxu1 %v3221_v14 }
0x1032   :  { %5008 = vst.msk [vmem:[#allocation3 + $0x10] sm:$0xff] %vm1994_vm5, %v5002_v24  ;;  %8086 = vmatpush3.msra.mxu1 %v3221_v14 }
0x1033   :  { %4607 = vmax.xlane.f32.xlu1 %v4606_v15 }
0x1034   :  { %v5115_v42 = vpop.permute.xlu1 %5114  ;;  %v5224_v16 = vpop.permute.xlu0 %5223 }
0x1035   :  { %5121 = vst.msk [vmem:[#allocation3 + $0x10] sm:$0xff] %vm2108_vm6, %v5115_v42 }
0x1036   :  { %5232 = vst.msk [vmem:[#allocation3] sm:$0xff] %vm2222_vm7, %v5224_v16 }
0x103d   :  { %v5669_v48 = vld [vmem:[#allocation3] sm:$0xff]  ;;  %v5226_v36 = vpop.permute.xlu1 %5225 }
0x103e   :  { %8072 = vmatprep.mubr.msk.f32.mxu0 %vm205_vm1, %v5669_v48  ;;  %5233 = vst.msk [vmem:[#allocation3 + $0x8] sm:$0xff] %vm2222_vm7, %v5226_v36 }
0x1041   :  { %v5228_v50 = vpop.permute.xlu1 %5227 }
0x1042   :  { %5234 = vst.msk [vmem:[#allocation3 + $0x10] sm:$0xff] %vm2222_vm7, %v5228_v50 }
0x1045   :  { %v5432_v49 = vpop.permute.xlu0 %5431  ;;  %v5670_v37 = vld [vmem:[#allocation3 + $0x8] sm:$0xff] }
0x1046   :  { %5440 = vst.msk [vmem:[#allocation3 + $0x18] sm:$0xff] %vm1994_vm5, %v5432_v49  ;;  %8073 = vmatmul.mubr.msk.f32.vlgmr.msra.gmra.mxu0 %vm205_vm1, %v5670_v37 }
0x1049   :  { %v5671_v27 = vld [vmem:[#allocation3 + $0x10] sm:$0xff] }
0x104a   :  { %8075 = vmatprep.mubr.msk.f32.mxu0 %vm205_vm1, %v5671_v27 }
0x1078   :  { %v5545_v18 = vpop.permute.xlu0 %5544 }
0x1079   :  { %5553 = vst.msk [vmem:[#allocation3 + $0x18] sm:$0xff] %vm2108_vm6, %v5545_v18 }
0x1081   :  { %v5658_v33 = vpop.permute.xlu1 %5657 }
0x1082   :  { %5666 = vst.msk [vmem:[#allocation3 + $0x18] sm:$0xff] %vm2222_vm7, %v5658_v33 }
0x1089   :  { %v5672_v38 = vld [vmem:[#allocation3 + $0x18] sm:$0xff] }
0x108a   :  { %8076 = vmatmul.mubr.msk.f32.gmra.mxu0 %vm205_vm1, %v5672_v38 }
0x10ae   :  { %v4605_v4 = vpop.xlane.xlu0 %4604 }
0x10af   :  { %v4631_v61 = vsub.f32 %v4535_v22, %v4605_v4 }
0x10b1   :  { %v4677_v21 = vmul.f32 1.442695, %v4631_v61 }
0x10d7   :  { %v10410_v11 = vpop.f32.mrf.mxu0 }
0x10d9   :  { %v8045_v41 = vpop.f32.mrf.mxu0 }
0x10df   :  { %v10412_v7 = vpop.f32.mrf.mxu0 }
0x10e1   :  { %v8048_v20 = vpop.f32.mrf.mxu0 }
0x1106   :  { %v8074_v59 = vpop.f32.mrf.mxu0 }
0x1107   :  { %v5789_v54 = vadd.f32 %v8074_v59, %v9573_v25  ;;  %v4608_v25 = vpop.xlane.xlu1 %4607 }
0x1108   :  { %v5759_v1 = vpop.f32.mrf.mxu0 }
0x1109   :  { %v5788_v5 = vadd.f32 %v5759_v1, %v9576_v31  ;;  %v5799_v45 = vadd.f32 %v10419_v6, %v5789_v54  ;;  %v4632_v31 = vsub.f32 %v4536_v0, %v4608_v25  ;;  %v3220_v0 = vld [vmem:[%s10636_s2 + $0x170] sm:$0xff] }
0x110a   :  { %8087 = vmatprep.subr.mxu1 %v3220_v0 }
0x110b   :  { %v10422_v30 = vadd.f32 %v10419_v6, %v5788_v5  ;;  %v5807_v63 = vsel %vm205_vm1, %v5799_v45, 0.0  ;;  %v4679_v46 = vmul.f32 1.442695, %v4632_v31  ;;  %8088 = vmatpush3.msra.mxu1 %v3220_v0  ;;  %v3225_v0 = vld [vmem:[%s10636_s2 + $0x198] sm:$0xff] }
0x110d   :  { %v5804_v44 = vsel %vm205_vm1, %v10422_v30, 0.0  ;;  %8367 = vpow2.f32 %v4679_v46 }
0x110e   :  { %5805 = vadd.xlane.f32.xlu0 %v5804_v44  ;;  %8369 = vpow2.f32 %v4677_v21 }
0x1112   :  { %5808 = vadd.xlane.f32.xlu0 %v5807_v63  ;;  %v10472_v63 = vld [vmem:[%s10635_s1 + $0x41] ss:$0 sm:$0xff] }
0x111a   :  { %v8368_v32 = vpop.eup %8367 }
0x111b   :  { %v8370_v39 = vpop.eup %8369  ;;  %v4750_v58 = vsel %vm719_vm4, %v8368_v32, 0.0 }
0x114a   :  { %v8077_v56 = vpop.f32.mrf.mxu0 }
0x114b   :  { %v5791_v12 = vadd.f32 %v8077_v56, %v9583_v34  ;;  %v4747_v34 = vsel %vm719_vm4, %v8370_v39, 0.0 }
0x114c   :  { %v5769_v19 = vpop.f32.mrf.mxu0 }
0x114d   :  { %v10430_v47 = vadd.f32 %v10419_v6, %v5791_v12  ;;  %v5790_v13 = vadd.f32 %v5769_v19, %v9586_v40 }
0x114f   :  { %v5800_v52 = vadd.f32 %v10419_v6, %v5790_v13  ;;  %v5813_v29 = vsel %vm205_vm1, %v10430_v47, 0.0 }
0x1150   :  { %5814 = vadd.xlane.f32.xlu0 %v5813_v29 }
0x1151   :  { %v5810_v17 = vsel %vm205_vm1, %v5800_v52, 0.0 }
0x1152   :  { %5811 = vadd.xlane.f32.xlu1 %v5810_v17 }
0x1154   :  { %4751 = vadd.xlane.f32.xlu0 %v4750_v58 }
0x1156   :  { %4748 = vadd.xlane.f32.xlu1 %v4747_v34 }
0x1197   :  { %v5806_v8 = vpop.xlane.xlu0 %5805 }
0x1198   :  { %v5822_v35 = vmul.f32 0.03125, %v5806_v8 }
0x119a   :  { %v5828_v40 = vsub.f32 %v10422_v30, %v5822_v35 }
0x119b   :  { %v5809_v28 = vpop.xlane.xlu0 %5808 }
0x119c   :  { %v5823_v10 = vmul.f32 0.03125, %v5809_v28  ;;  %v5834_v51 = vmul.f32 %v5828_v40, %v5828_v40 }
0x119e   :  { %v5829_v3 = vsub.f32 %v5799_v45, %v5823_v10  ;;  %v5840_v22 = vsel %vm205_vm1, %v5834_v51, 0.0 }
0x119f   :  { %5841 = vadd.xlane.f32.xlu1 %v5840_v22  ;;  %v3230_v22 = vld [vmem:[%s10636_s2 + $0x1c0] sm:$0xff] }
0x11a0   :  { %v5835_v57 = vmul.f32 %v5829_v3, %v5829_v3 }
0x11a2   :  { %v5843_v9 = vsel %vm205_vm1, %v5835_v57, 0.0  ;;  %v3229_v57 = vld [vmem:[%s10636_s2 + $0x1b8] sm:$0xff] }
0x11a3   :  { %5844 = vadd.xlane.f32.xlu0 %v5843_v9  ;;  %v3228_v9 = vld [vmem:[%s10636_s2 + $0x1b0] sm:$0xff] }
0x11d9   :  { %v5815_v23 = vpop.xlane.xlu0 %5814 }
0x11da   :  { %v5825_v24 = vmul.f32 0.03125, %v5815_v23  ;;  %v3224_v23 = vld [vmem:[%s10636_s2 + $0x190] sm:$0xff] }
0x11db   :  { %v5812_v15 = vpop.xlane.xlu1 %5811 }
0x11dc   :  { %v5831_v42 = vsub.f32 %v10430_v47, %v5825_v24  ;;  %v5824_v16 = vmul.f32 0.03125, %v5812_v15 }
0x11dd   :  { %v4752_v50 = vpop.xlane.xlu0 %4751 }
0x11de   :  { %v5830_v48 = vsub.f32 %v5800_v52, %v5824_v16  ;;  %v5837_v36 = vmul.f32 %v5831_v42, %v5831_v42  ;;  %v10524_v16 = vld [vmem:[%s10635_s1 + $0x43] ss:$0 sm:$0xff] }
0x11df   :  { %v4749_v49 = vpop.xlane.xlu1 %4748 }
0x11e0   :  { %8371 = vrcp.f32 %v4749_v49  ;;  %v5849_v37 = vsel %vm205_vm1, %v5837_v36, 0.0  ;;  %v5836_v27 = vmul.f32 %v5830_v48, %v5830_v48 }
0x11e1   :  { %5850 = vadd.xlane.f32.xlu0 %v5849_v37  ;;  %8373 = vrcp.f32 %v4752_v50 }
0x11e2   :  { %v5846_v18 = vsel %vm205_vm1, %v5836_v27, 0.0 }
0x11e3   :  { %5847 = vadd.xlane.f32.xlu1 %v5846_v18 }
0x11ed   :  { %v8372_v33 = vpop.eup %8371 }
0x11ee   :  { %v4799_v38 = vmul.f32 %v8372_v33, %v8370_v39  ;;  %v8374_v41 = vpop.eup %8373 }
0x11ef   :  { %v4800_v20 = vmul.f32 %v8374_v41, %v8368_v32 }
0x11f0   :  { %8059 = vmatmul.mubr.msk.f32.gmra.mxu1 %vm719_vm4, %v4799_v38 }
0x11f1   :  { %8061 = vmatprep.mubr.msk.f32.mxu1 %vm8485_vm2, %v8484_v60 }
0x11f4   :  { %5433 = vrot.lane.b32.xlu1 %v10377_v62, %s8489_s20  ;;  %8062 = vmatmul.mubr.msk.f32.gmra.mxu1 %vm719_vm4, %v4800_v20 }
0x11f7   :  { %5435 = vrot.lane.b32.xlu0 %v10380_v43, %s8489_s20 }
0x11f8   :  { %5546 = vrot.lane.b32.xlu1 %v10410_v11, %s8483_s25  ;;  %v10477_v11 = vld [vmem:[%s10635_s1 + $0x42] ss:$0 sm:$0xff] }
0x11fc   :  { %5548 = vrot.lane.b32.xlu1 %v10412_v7, %s8483_s25 }
0x1228   :  { %v5842_v59 = vpop.xlane.xlu1 %5841 }
0x1229   :  { %v5858_v1 = vmul.f32 0.03125, %v5842_v59 }
0x122b   :  { %v5864_v54 = vadd.f32 1e-12, %v5858_v1 }
0x122c   :  { %v5845_v5 = vpop.xlane.xlu0 %5844 }
0x122d   :  { %8375 = vrsqrt.f32 %v5864_v54  ;;  %v5859_v45 = vmul.f32 0.03125, %v5845_v5 }
0x122f   :  { %v5865_v44 = vadd.f32 1e-12, %v5859_v45 }
0x1231   :  { %8377 = vrsqrt.f32 %v5865_v44 }
0x123a   :  { %v8376_v62 = vpop.eup %8375 }
0x123b   :  { %v5876_v43 = vmul.f32 %v8376_v62, %v5828_v40 }
0x123d   :  { %v5886_v7 = vmul.f32 %v10472_v63, %v5876_v43 }
0x123e   :  { %v8378_v25 = vpop.eup %8377 }
0x123f   :  { %v5877_v4 = vmul.f32 %v8378_v25, %v5829_v3  ;;  %v5896_v31 = vadd.f32 %v10477_v11, %v5886_v7  ;;  %v3231_v3 = vld [vmem:[%s10636_s2 + $0x1c8] sm:$0xff] }
0x1240   :  { %8098 = vmatprep.subr.mxu0 %v3231_v3 }
0x1241   :  { %v5887_v61 = vmul.f32 %v10472_v63, %v5877_v4  ;;  %8089 = vmatprep.mubr.msk.f32.mxu1 %vm205_vm1, %v5896_v31  ;;  %8099 = vmatpush3.msra.mxu0 %v3231_v3 }
0x1242   :  { %8100 = vmatprep.subr.mxu0 %v3230_v22 }
0x1243   :  { %v5897_v46 = vadd.f32 %v10477_v11, %v5887_v61  ;;  %8101 = vmatpush3.msra.mxu0 %v3230_v22 }
0x1244   :  { %8102 = vmatprep.subr.mxu0 %v3229_v57 }
0x1245   :  { %8090 = vmatmul.mubr.msk.f32.vlgmr.msra.gmra.mxu1 %vm205_vm1, %v5897_v46  ;;  %8103 = vmatpush3.msra.mxu0 %v3229_v57 }
0x1246   :  { %8104 = vmatprep.subr.mxu0 %v3228_v9 }
0x1247   :  { %8105 = vmatpush3.msra.mxu0 %v3228_v9 }
0x1248   :  { %8106 = vmatprep.subr.mxu0 %v3227_v55 }
0x1249   :  { %8107 = vmatpush3.msra.mxu0 %v3227_v55 }
0x124a   :  { %8108 = vmatprep.subr.mxu0 %v3226_v26 }
0x124b   :  { %8109 = vmatpush3.msra.mxu0 %v3226_v26 }
0x124c   :  { %8110 = vmatprep.subr.mxu0 %v3225_v0 }
0x124d   :  { %8111 = vmatpush3.msra.mxu0 %v3225_v0 }
0x124e   :  { %8112 = vmatprep.subr.mxu0 %v3224_v23 }
0x124f   :  { %8113 = vmatpush3.msra.mxu0 %v3224_v23 }
0x126a   :  { %v5851_v21 = vpop.xlane.xlu0 %5850 }
0x126b   :  { %v5861_v56 = vmul.f32 0.03125, %v5851_v21 }
0x126c   :  { %v5848_v12 = vpop.xlane.xlu1 %5847 }
0x126d   :  { %v5867_v19 = vadd.f32 1e-12, %v5861_v56  ;;  %v5860_v13 = vmul.f32 0.03125, %v5848_v12 }
0x126e   :  { %v5436_v52 = vpop.permute.xlu0 %5435 }
0x126f   :  { %8379 = vrsqrt.f32 %v5867_v19  ;;  %v5866_v29 = vadd.f32 1e-12, %v5860_v13  ;;  %5442 = vst.msk [vmem:[#allocation3 + $0x28] sm:$0xff] %vm1994_vm5, %v5436_v52 }
0x1270   :  { %v5434_v32 = vpop.permute.xlu1 %5433 }
0x1271   :  { %8381 = vrsqrt.f32 %v5866_v29  ;;  %5441 = vst.msk [vmem:[#allocation3 + $0x20] sm:$0xff] %vm1994_vm5, %v5434_v32 }
0x1274   :  { %v5547_v17 = vpop.permute.xlu1 %5546 }
0x1275   :  { %5554 = vst.msk [vmem:[#allocation3 + $0x20] sm:$0xff] %vm2108_vm6, %v5547_v17 }
0x1278   :  { %v5549_v39 = vpop.permute.xlu1 %5548 }
0x1279   :  { %5555 = vst.msk [vmem:[#allocation3 + $0x28] sm:$0xff] %vm2108_vm6, %v5549_v39 }
0x127c   :  { %v8380_v58 = vpop.eup %8379 }
0x127d   :  { %v5879_v34 = vmul.f32 %v8380_v58, %v5831_v42 }
0x127e   :  { %v8382_v8 = vpop.eup %8381 }
0x127f   :  { %v5878_v35 = vmul.f32 %v8382_v8, %v5830_v48  ;;  %v5889_v40 = vmul.f32 %v10472_v63, %v5879_v34 }
0x1281   :  { %v5888_v28 = vmul.f32 %v10472_v63, %v5878_v35  ;;  %v5899_v51 = vadd.f32 %v10477_v11, %v5889_v40 }
0x1283   :  { %v5898_v10 = vadd.f32 %v10477_v11, %v5888_v28 }
0x1285   :  { %8092 = vmatprep.mubr.msk.f32.mxu1 %vm205_vm1, %v5898_v10 }
0x1286   :  { %8093 = vmatmul.mubr.msk.f32.gmra.mxu1 %vm205_vm1, %v5899_v51 }
0x12b0   :  { %v5645_v14 = vpop.f32.mrf.mxu1 }
0x12b1   :  { %5659 = vrot.lane.b32.xlu0 %v5645_v14, %s8490_s29 }
0x12b2   :  { %v8060_v24 = vpop.f32.mrf.mxu1 }
0x12b4   :  { %v5650_v15 = vpop.f32.mrf.mxu1 }
0x12b5   :  { %5661 = vrot.lane.b32.xlu1 %v5650_v15, %s8490_s29 }
0x12b6   :  { %v8063_v42 = vpop.f32.mrf.mxu1 }
0x1305   :  { %v8091_v48 = vpop.f32.mrf.mxu1 }
0x1306   :  { %v5996_v36 = vadd.f32 %v8091_v48, %v10524_v16 }
0x1307   :  { %v5990_v50 = vpop.f32.mrf.mxu1 }
0x1308   :  { %v5991_v49 = vadd.f32 %v10524_v16, %v5990_v50  ;;  %v6026_v37 = vmul.f32 0.044715, %v5996_v36  ;;  %v6020_v46 = vmul.f32 0.5, %v5996_v36 }
0x130a   :  { %v6025_v27 = vmul.f32 0.044715, %v5991_v49  ;;  %v6032_v33 = vmul.f32 %v6026_v37, %v5996_v36  ;;  %v6019_v25 = vmul.f32 0.5, %v5991_v49 }
0x130c   :  { %v6031_v18 = vmul.f32 %v6025_v27, %v5991_v49  ;;  %v6038_v41 = vmul.f32 %v6032_v33, %v5996_v36  ;;  %v7075_v27 = vld [vmem:[%s10635_s1 + $0x44] ss:$0 sm:$0xff] }
0x130e   :  { %v6037_v38 = vmul.f32 %v6031_v18, %v5991_v49  ;;  %v6044_v59 = vadd.f32 %v6038_v41, %v5996_v36 }
0x1310   :  { %v6043_v20 = vadd.f32 %v6037_v38, %v5991_v49  ;;  %v6050_v54 = vmul.f32 0.7978846, %v6044_v59 }
0x1312   :  { %v6049_v1 = vmul.f32 0.7978846, %v6043_v20 }
0x1314   :  { %8383 = vtanh.f32 %v6049_v1 }
0x1315   :  { %8385 = vtanh.f32 %v6050_v54 }
0x1321   :  { %v8384_v44 = vpop.eup %8383 }
0x1322   :  { %v8386_v62 = vpop.eup %8385  ;;  %v6061_v7 = vadd.f32 1.0, %v8384_v44 }
0x1323   :  { %v5660_v5 = vpop.permute.xlu0 %5659  ;;  %v6062_v4 = vadd.f32 1.0, %v8386_v62 }
0x1324   :  { %5667 = vst.msk [vmem:[#allocation3 + $0x20] sm:$0xff] %vm2222_vm7, %v5660_v5  ;;  %v6067_v61 = vmul.f32 %v6061_v7, %v6019_v25 }
0x1325   :  { %v6068_v21 = vmul.f32 %v6062_v4, %v6020_v46  ;;  %v6235_v46 = vld [vmem:[%s10637_s3 + $0x60] sm:$0xff] }
0x1327   :  { %v5662_v45 = vpop.permute.xlu1 %5661 }
0x1328   :  { %5668 = vst.msk [vmem:[#allocation3 + $0x28] sm:$0xff] %vm2222_vm7, %v5662_v45 }
0x132b   :  { %v5673_v43 = vld [vmem:[#allocation3 + $0x20] sm:$0xff] }
0x132c   :  { %8078 = vmatprep.mubr.msk.f32.mxu0 %vm205_vm1, %v5673_v43 }
0x132f   :  { %v5674_v31 = vld [vmem:[#allocation3 + $0x28] sm:$0xff] }
0x1330   :  { %8079 = vmatmul.mubr.msk.f32.gmra.mxu0 %vm205_vm1, %v5674_v31 }
0x1331   :  { %8114 = vmatprep.mubr.msk.f32.mxu0 %vm3064_vm8, %v6067_v61  ;;  %v6236_v61 = vld [vmem:[%s10637_s3 + $0x68] sm:$0xff] }
0x1332   :  { %6421 = vmatprep.subr.mxu1 %v6236_v61  ;;  %v6328_v61 = vld [vmem:[#allocation4 + $0x2b8] sm:$0xff] }
0x1333   :  { %6422 = vmatpush1.msra.mxu1 %v6235_v46  ;;  %v6256_v46 = vld [vmem:[#allocation4 + $0x78] sm:$0xff] }
0x1334   :  { %8115 = vmatmul.mubr.msk.f32.vlgmr.msra.gmra.mxu0 %vm3064_vm8, %v6068_v21  ;;  %v6232_v21 = vld [vmem:[%s10637_s3 + $0x48] sm:$0xff] }
0x1335   :  { %6423 = vmatprep.subr.mxu1 %v6232_v21  ;;  %v6327_v21 = vld [vmem:[#allocation4 + $0x2b0] sm:$0xff] }
0x1346   :  { %v8094_v56 = vpop.f32.mrf.mxu1 }
0x1347   :  { %v6006_v12 = vadd.f32 %v8094_v56, %v10524_v16  ;;  %v6231_v56 = vld [vmem:[%s10637_s3 + $0x40] sm:$0xff] }
0x1348   :  { %v6000_v19 = vpop.f32.mrf.mxu1  ;;  %6424 = vmatpush1.msra.mxu1 %v6231_v56  ;;  %v6255_v56 = vld [vmem:[#allocation4 + $0x70] sm:$0xff] }
0x1349   :  { %v6028_v13 = vmul.f32 0.044715, %v6006_v12  ;;  %v6001_v52 = vadd.f32 %v10524_v16, %v6000_v19  ;;  %v6022_v57 = vmul.f32 0.5, %v6006_v12  ;;  %v6227_v19 = vld [vmem:[%s10637_s3 + $0x20] sm:$0xff] }
0x134b   :  { %v6034_v29 = vmul.f32 %v6028_v13, %v6006_v12  ;;  %v6027_v32 = vmul.f32 0.044715, %v6001_v52  ;;  %v6021_v3 = vmul.f32 0.5, %v6001_v52  ;;  %v6224_v13 = vld [vmem:[%s10637_s3 + $0x8] sm:$0xff] }
0x134d   :  { %v6040_v17 = vmul.f32 %v6034_v29, %v6006_v12  ;;  %v6033_v39 = vmul.f32 %v6027_v32, %v6001_v52  ;;  %v6238_v29 = vld [vmem:[%s10637_s3 + $0x78] sm:$0xff] }
0x134f   :  { %v6046_v58 = vadd.f32 %v6040_v17, %v6006_v12  ;;  %v6039_v34 = vmul.f32 %v6033_v39, %v6001_v52  ;;  %v6228_v12 = vld [vmem:[%s10637_s3 + $0x28] sm:$0xff] }
0x1350   :  { %6425 = vmatprep.subr.mxu1 %v6228_v12  ;;  %v6326_v12 = vld [vmem:[#allocation4 + $0x2a8] sm:$0xff] }
0x1351   :  { %v6052_v8 = vmul.f32 0.7978846, %v6046_v58  ;;  %v6045_v35 = vadd.f32 %v6039_v34, %v6001_v52  ;;  %6426 = vmatpush1.msra.mxu1 %v6227_v19  ;;  %v6223_v52 = vld [vmem:[%s10637_s3] sm:$0xff]  ;;  %v6254_v19 = vld [vmem:[#allocation4 + $0x68] sm:$0xff] }
0x1352   :  { %6427 = vmatprep.subr.mxu1 %v6224_v13  ;;  %v6325_v13 = vld [vmem:[#allocation4 + $0x2a0] sm:$0xff] }
0x1353   :  { %8387 = vtanh.f32 %v6052_v8  ;;  %v6051_v40 = vmul.f32 0.7978846, %v6045_v35  ;;  %6428 = vmatpush1.msra.mxu1 %v6223_v52  ;;  %v6253_v52 = vld [vmem:[#allocation4 + $0x60] sm:$0xff] }
0x1354   :  { %6492 = vmatprep.subr.mxu1 %v6238_v29  ;;  %v6324_v29 = vld [vmem:[#allocation4 + $0x298] sm:$0xff] }
0x1355   :  { %8389 = vtanh.f32 %v6051_v40 }
0x1360   :  { %v8388_v28 = vpop.eup %8387 }
0x1361   :  { %v6064_v51 = vadd.f32 1.0, %v8388_v28 }
0x1362   :  { %v8390_v10 = vpop.eup %8389 }
0x1363   :  { %v6063_v22 = vadd.f32 1.0, %v8390_v10  ;;  %v6070_v55 = vmul.f32 %v6064_v51, %v6022_v57 }
0x1365   :  { %v6069_v9 = vmul.f32 %v6063_v22, %v6021_v3 }
0x1367   :  { %8117 = vmatprep.mubr.msk.f32.mxu0 %vm3064_vm8, %v6069_v9 }
0x1368   :  { %8118 = vmatmul.mubr.msk.f32.gmra.mxu0 %vm3064_vm8, %v6070_v55 }
0x13f0   :  { %v8080_v26 = vpop.f32.mrf.mxu0 }
0x13f1   :  { %v5793_v14 = vadd.f32 %v8080_v26, %v9593_v53 }
0x13f2   :  { %v5779_v0 = vpop.f32.mrf.mxu0 }
0x13f3   :  { %v5803_v23 = vadd.f32 %v10419_v6, %v5793_v14  ;;  %v5792_v24 = vadd.f32 %v5779_v0, %v9596_v2  ;;  %v7076_v0 = vld [vmem:[%s10635_s1 + $0x45] ss:$0 sm:$0xff] }
0x13f4   :  { %v8116_v15 = vpop.f32.mrf.mxu0 }
0x13f5   :  { %v5802_v42 = vadd.f32 %v10419_v6, %v5792_v24  ;;  %v5819_v48 = vsel %vm205_vm1, %v5803_v23, 0.0  ;;  %v6237_v15 = vld [vmem:[%s10637_s3 + $0x70] sm:$0xff] }
0x13f6   :  { %5820 = vadd.xlane.f32.xlu1 %v5819_v48  ;;  %v6157_v50 = vpop.f32.mrf.mxu0  ;;  %v6233_v48 = vld [vmem:[%s10637_s3 + $0x50] sm:$0xff] }
0x13f7   :  { %v5816_v36 = vsel %vm205_vm1, %v5802_v42, 0.0  ;;  %v6182_v37 = vadd.f32 %v6157_v50, %v10422_v30  ;;  %v6229_v50 = vld [vmem:[%s10637_s3 + $0x30] sm:$0xff] }
0x13f8   :  { %5817 = vadd.xlane.f32.xlu0 %v5816_v36  ;;  %v6230_v36 = vld [vmem:[%s10637_s3 + $0x38] sm:$0xff] }
0x13f9   :  { %v6188_v6 = vadd.f32 %v7075_v27, %v6182_v37  ;;  %v6225_v37 = vld [vmem:[%s10637_s3 + $0x10] sm:$0xff] }
0x1428   :  { %v8119_v49 = vpop.f32.mrf.mxu0 }
0x1429   :  { %v6183_v53 = vadd.f32 %v8119_v49, %v10430_v47  ;;  %v6226_v49 = vld [vmem:[%s10637_s3 + $0x18] sm:$0xff] }
0x142a   :  { %v6166_v2 = vpop.f32.mrf.mxu0 }
0x142b   :  { %v6189_v18 = vadd.f32 %v7075_v27, %v6183_v53  ;;  %v6271_v53 = vld [vmem:[#allocation4 + $0xf0] sm:$0xff]  ;;  %v6270_v27 = vld [vmem:[#allocation4 + $0xe8] sm:$0xff]  ;;  %v6269_v2 = vld [vmem:[#allocation4 + $0xe0] sm:$0xff] }
0x142d   :  { %v6194_v33 = vrot.slane %v6189_v18, 7  ;;  %v6268_v18 = vld [vmem:[#allocation4 + $0xd8] sm:$0xff] }
0x142f   :  { %v6197_v38 = vsel %vm6196_vm9, %v6188_v6, %v6194_v33  ;;  %v6336_v6 = vld [vmem:[#allocation4 + $0x2f8] sm:$0xff]  ;;  %v6267_v33 = vld [vmem:[#allocation4 + $0xd0] sm:$0xff] }
0x1430   :  { %v6199_v41 = vsel %vm6198_vm10, %v6197_v38, 0.0 }
0x1431   :  { %6200 = vadd.xlane.f32.xlu0 %v6199_v41  ;;  %v6266_v41 = vld [vmem:[#allocation4 + $0xc8] sm:$0xff] }
0x147f   :  { %v5821_v20 = vpop.xlane.xlu1 %5820 }
0x1480   :  { %v5827_v59 = vmul.f32 0.03125, %v5821_v20  ;;  %v6334_v20 = vld [vmem:[#allocation4 + $0x2e8] sm:$0xff] }
0x1481   :  { %v5818_v1 = vpop.xlane.xlu0 %5817 }
0x1482   :  { %v5833_v30 = vsub.f32 %v5803_v23, %v5827_v59  ;;  %v5826_v54 = vmul.f32 0.03125, %v5818_v1  ;;  %v6333_v59 = vld [vmem:[#allocation4 + $0x2e0] sm:$0xff] }
0x1483   :  { %v6265_v1 = vld [vmem:[#allocation4 + $0xc0] sm:$0xff] }
0x1484   :  { %v5832_v47 = vsub.f32 %v5802_v42, %v5826_v54  ;;  %v5839_v5 = vmul.f32 %v5833_v30, %v5833_v30  ;;  %v6234_v42 = vld [vmem:[%s10637_s3 + $0x58] sm:$0xff]  ;;  %v6264_v54 = vld [vmem:[#allocation4 + $0xb8] sm:$0xff] }
0x1486   :  { %v5855_v45 = vsel %vm205_vm1, %v5839_v5, 0.0  ;;  %v5838_v44 = vmul.f32 %v5832_v47, %v5832_v47  ;;  %v6263_v5 = vld [vmem:[#allocation4 + $0xb0] sm:$0xff] }
0x1487   :  { %5856 = vadd.xlane.f32.xlu1 %v5855_v45  ;;  %v6262_v45 = vld [vmem:[#allocation4 + $0xa8] sm:$0xff] }
0x1488   :  { %v5852_v62 = vsel %vm205_vm1, %v5838_v44, 0.0  ;;  %v6261_v44 = vld [vmem:[#allocation4 + $0xa0] sm:$0xff] }
0x1489   :  { %5853 = vadd.xlane.f32.xlu0 %v5852_v62  ;;  %v6260_v62 = vld [vmem:[#allocation4 + $0x98] sm:$0xff] }
0x14ba   :  { %v6201_v43 = vpop.xlane.xlu0 %6200 }
0x14bb   :  { %v6202_v7 = vmul.f32 0.03125, %v6201_v43  ;;  %v6259_v43 = vld [vmem:[#allocation4 + $0x90] sm:$0xff] }
0x14bd   :  { %v6203_v25 = vsub.f32 %v6197_v38, %v6202_v7  ;;  %v6335_v38 = vld [vmem:[#allocation4 + $0x2f0] sm:$0xff]  ;;  %v6330_v7 = vld [vmem:[#allocation4 + $0x2c8] sm:$0xff] }
0x14bf   :  { %v6204_v4 = vmul.f32 %v6203_v25, %v6203_v25 }
0x14c1   :  { %v6205_v31 = vsel %vm6198_vm10, %v6204_v4, 0.0  ;;  %v6329_v4 = vld [vmem:[#allocation4 + $0x2c0] sm:$0xff] }
0x14c2   :  { %6206 = vadd.xlane.f32.xlu0 %v6205_v31  ;;  %v6257_v31 = vld [vmem:[#allocation4 + $0x80] sm:$0xff] }
0x1510   :  { %v5857_v32 = vpop.xlane.xlu1 %5856 }
0x1511   :  { %v5863_v17 = vmul.f32 0.03125, %v5857_v32  ;;  %v6252_v32 = vld [vmem:[#allocation4 + $0x58] sm:$0xff] }
0x1512   :  { %v5854_v39 = vpop.xlane.xlu0 %5853 }
0x1513   :  { %v5869_v58 = vadd.f32 1e-12, %v5863_v17  ;;  %v5862_v34 = vmul.f32 0.03125, %v5854_v39  ;;  %v6323_v17 = vld [vmem:[#allocation4 + $0x290] sm:$0xff] }
0x1514   :  { %v6251_v39 = vld [vmem:[#allocation4 + $0x50] sm:$0xff] }
0x1515   :  { %8391 = vrsqrt.f32 %v5869_v58  ;;  %v5868_v8 = vadd.f32 1e-12, %v5862_v34  ;;  %v6322_v58 = vld [vmem:[#allocation4 + $0x288] sm:$0xff] }
0x1516   :  { %v6250_v34 = vld [vmem:[#allocation4 + $0x48] sm:$0xff] }
0x1517   :  { %8393 = vrsqrt.f32 %v5868_v8  ;;  %v6321_v8 = vld [vmem:[#allocation4 + $0x280] sm:$0xff] }
0x1522   :  { %v8392_v35 = vpop.eup %8391 }
0x1523   :  { %v5881_v40 = vmul.f32 %v8392_v35, %v5833_v30  ;;  %v6332_v30 = vld [vmem:[#allocation4 + $0x2d8] sm:$0xff]  ;;  %v6249_v35 = vld [vmem:[#allocation4 + $0x40] sm:$0xff] }
0x1524   :  { %v8394_v28 = vpop.eup %8393 }
0x1525   :  { %v5880_v10 = vmul.f32 %v8394_v28, %v5832_v47  ;;  %v5891_v51 = vmul.f32 %v10472_v63, %v5881_v40  ;;  %v6331_v47 = vld [vmem:[#allocation4 + $0x2d0] sm:$0xff]  ;;  %v6320_v40 = vld [vmem:[#allocation4 + $0x278] sm:$0xff] }
0x1526   :  { %v6248_v28 = vld [vmem:[#allocation4 + $0x38] sm:$0xff] }
0x1527   :  { %v5890_v3 = vmul.f32 %v10472_v63, %v5880_v10  ;;  %v5901_v57 = vadd.f32 %v10477_v11, %v5891_v51  ;;  %v6319_v10 = vld [vmem:[#allocation4 + $0x270] sm:$0xff] }
0x1528   :  { %v6247_v51 = vld [vmem:[#allocation4 + $0x30] sm:$0xff] }
0x1529   :  { %v5900_v22 = vadd.f32 %v10477_v11, %v5890_v3  ;;  %v7077_v11 = vld [vmem:[%s10635_s1 + $0x46] ss:$0 sm:$0xff]  ;;  %v6318_v3 = vld [vmem:[#allocation4 + $0x268] sm:$0xff] }
0x152b   :  { %8095 = vmatprep.mubr.msk.f32.mxu1 %vm205_vm1, %v5900_v22  ;;  %v6246_v22 = vld [vmem:[#allocation4 + $0x28] sm:$0xff] }
0x152c   :  { %8096 = vmatmul.mubr.msk.f32.gmra.mxu1 %vm205_vm1, %v5901_v57  ;;  %v6317_v57 = vld [vmem:[#allocation4 + $0x260] sm:$0xff] }
0x152d   :  { %6461 = vmatprep.mubr.f32.mxu1 %v8484_v60 }
0x154b   :  { %v6207_v9 = vpop.xlane.xlu0 %6206 }
0x154c   :  { %v6208_v55 = vmul.f32 0.03125, %v6207_v9  ;;  %v6245_v9 = vld [vmem:[#allocation4 + $0x20] sm:$0xff] }
0x154e   :  { %v6209_v26 = vadd.f32 1e-12, %v6208_v55  ;;  %v6316_v55 = vld [vmem:[#allocation4 + $0x258] sm:$0xff] }
0x1550   :  { %8395 = vrsqrt.f32 %v6209_v26  ;;  %v6244_v26 = vld [vmem:[#allocation4 + $0x18] sm:$0xff] }
0x155d   :  { %v8396_v14 = vpop.eup %8395 }
0x155e   :  { %v6211_v63 = vmul.f32 %v8396_v14, %v6203_v25  ;;  %v6258_v25 = vld [vmem:[#allocation4 + $0x88] sm:$0xff]  ;;  %v6315_v14 = vld [vmem:[#allocation4 + $0x250] sm:$0xff] }
0x1560   :  { %v6216_v23 = vmul.f32 %v7076_v0, %v6211_v63  ;;  %v6243_v0 = vld [vmem:[#allocation4 + $0x10] sm:$0xff]  ;;  %v6314_v63 = vld [vmem:[#allocation4 + $0x248] sm:$0xff] }
0x1562   :  { %v6221_v24 = vadd.f32 %v7077_v11, %v6216_v23  ;;  %v6242_v11 = vld [vmem:[#allocation4 + $0x8] sm:$0xff]  ;;  %v6313_v23 = vld [vmem:[#allocation4 + $0x240] sm:$0xff] }
0x1564   :  { %6222 = vst.msk [vmem:[#allocation7] sm:$0x3] %vm6198_vm10, %v6221_v24  ;;  %7079 = vmatmul.mubr.msk.f32.vlgmr.msra.gmra.mxu1 %vm205_vm1, %v6221_v24 }
0x1565   :  { %6493 = vmatpush1.msra.mxu1 %v6237_v15  ;;  %6532 = vmatprep.mubr.f32.mxu1 %v8484_v60  ;;  %v6272_v60 = vld [vmem:[#allocation4 + $0xf8] sm:$0xff] }
0x1566   :  { %6494 = vmatprep.subr.mxu1 %v6234_v42  ;;  %6570 = vmatprep.subr.mxu0 %v6272_v60  ;;  %v6312_v15 = vld [vmem:[#allocation4 + $0x238] sm:$0xff]  ;;  %v6301_v60 = vld [vmem:[#allocation4 + $0x1e0] sm:$0xff] }
0x1567   :  { %6495 = vmatpush1.msra.mxu1 %v6233_v48  ;;  %6571 = vmatpush1.msra.mxu0 %v6271_v53  ;;  %v6304_v42 = vld [vmem:[#allocation4 + $0x1f8] sm:$0xff]  ;;  %v6311_v48 = vld [vmem:[#allocation4 + $0x230] sm:$0xff] }
0x1568   :  { %6496 = vmatprep.subr.mxu1 %v6230_v36  ;;  %6572 = vmatprep.subr.mxu0 %v6270_v27  ;;  %v6303_v36 = vld [vmem:[#allocation4 + $0x1f0] sm:$0xff]  ;;  %v6308_v53 = vld [vmem:[#allocation4 + $0x218] sm:$0xff] }
0x1569   :  { %6497 = vmatpush1.msra.mxu1 %v6229_v50  ;;  %6573 = vmatpush1.msra.mxu0 %v6269_v2  ;;  %v6310_v50 = vld [vmem:[#allocation4 + $0x228] sm:$0xff]  ;;  %v6300_v27 = vld [vmem:[#allocation4 + $0x1d8] sm:$0xff]  ;;  %v6307_v2 = vld [vmem:[#allocation4 + $0x210] sm:$0xff] }
0x156a   :  { %6498 = vmatprep.subr.mxu1 %v6226_v49  ;;  %6574 = vmatprep.subr.mxu0 %v6268_v18  ;;  %v6302_v49 = vld [vmem:[#allocation4 + $0x1e8] sm:$0xff]  ;;  %v6299_v18 = vld [vmem:[#allocation4 + $0x1d0] sm:$0xff] }
0x156b   :  { %6499 = vmatpush1.msra.mxu1 %v6225_v37  ;;  %6575 = vmatpush1.msra.mxu0 %v6267_v33  ;;  %v6309_v37 = vld [vmem:[#allocation4 + $0x220] sm:$0xff]  ;;  %v6298_v33 = vld [vmem:[#allocation4 + $0x1c8] sm:$0xff] }
0x156c   :  { %7080 = vmatmul.mubr.msk.f32.vlgmr.msra.gmra.mxu1 %vm205_vm1, %v6221_v24  ;;  %6641 = vmatprep.subr.mxu1 %v6336_v6  ;;  %v6241_v24 = vld [vmem:[#allocation4] sm:$0xff]  ;;  %v6306_v6 = vld [vmem:[#allocation4 + $0x208] sm:$0xff] }
0x156d   :  { %6642 = vmatpush1.msra.mxu1 %v6335_v38  ;;  %6576 = vmatprep.subr.mxu0 %v6266_v41  ;;  %v6305_v38 = vld [vmem:[#allocation4 + $0x200] sm:$0xff] }
0x156e   :  { %6643 = vmatprep.subr.mxu1 %v6334_v20  ;;  %6577 = vmatpush1.msra.mxu0 %v6265_v1  ;;  %v6297_v41 = vld [vmem:[#allocation4 + $0x1c0] sm:$0xff]  ;;  %v6368_v20 = vld [vmem:[#allocation4 + $0x3f8] sm:$0xff]  ;;  %v6367_v1 = vld [vmem:[#allocation4 + $0x3f0] sm:$0xff] }
0x156f   :  { %6644 = vmatpush1.msra.mxu1 %v6333_v59  ;;  %6578 = vmatprep.subr.mxu0 %v6264_v54  ;;  %v6296_v59 = vld [vmem:[#allocation4 + $0x1b8] sm:$0xff]  ;;  %v6366_v54 = vld [vmem:[#allocation4 + $0x3e8] sm:$0xff] }
0x1570   :  { %6645 = vmatprep.subr.mxu1 %v6332_v30  ;;  %6579 = vmatpush1.msra.mxu0 %v6263_v5  ;;  %v6295_v30 = vld [vmem:[#allocation4 + $0x1b0] sm:$0xff]  ;;  %v6365_v5 = vld [vmem:[#allocation4 + $0x3e0] sm:$0xff] }
0x1571   :  { %6646 = vmatpush1.msra.mxu1 %v6331_v47  ;;  %6580 = vmatprep.subr.mxu0 %v6262_v45  ;;  %v6294_v47 = vld [vmem:[#allocation4 + $0x1a8] sm:$0xff]  ;;  %v6293_v45 = vld [vmem:[#allocation4 + $0x1a0] sm:$0xff] }
0x1572   :  { %6581 = vmatpush1.msra.mxu0 %v6261_v44  ;;  %6647 = vmatprep.subr.mxu1 %v6330_v7  ;;  %v6364_v44 = vld [vmem:[#allocation4 + $0x3d8] sm:$0xff]  ;;  %v6291_v7 = vld [vmem:[#allocation4 + $0x190] sm:$0xff] }
0x1573   :  { %6582 = vmatprep.subr.mxu0 %v6260_v62  ;;  %6648 = vmatpush1.msra.mxu1 %v6329_v4  ;;  %v6292_v62 = vld [vmem:[#allocation4 + $0x198] sm:$0xff]  ;;  %v6290_v4 = vld [vmem:[#allocation4 + $0x188] sm:$0xff] }
0x1574   :  { %6583 = vmatpush1.msra.mxu0 %v6259_v43  ;;  %6649 = vmatprep.subr.mxu1 %v6328_v61  ;;  %v6363_v43 = vld [vmem:[#allocation4 + $0x3d0] sm:$0xff]  ;;  %v6289_v61 = vld [vmem:[#allocation4 + $0x180] sm:$0xff] }
0x1575   :  { %6584 = vmatprep.subr.mxu0 %v6258_v25  ;;  %6650 = vmatpush1.msra.mxu1 %v6327_v21  ;;  %v6362_v25 = vld [vmem:[#allocation4 + $0x3c8] sm:$0xff]  ;;  %v6288_v21 = vld [vmem:[#allocation4 + $0x178] sm:$0xff] }
0x1576   :  { %6585 = vmatpush1.msra.mxu0 %v6257_v31  ;;  %6651 = vmatprep.subr.mxu1 %v6326_v12  ;;  %v6361_v31 = vld [vmem:[#allocation4 + $0x3c0] sm:$0xff]  ;;  %v6287_v12 = vld [vmem:[#allocation4 + $0x170] sm:$0xff] }
0x1577   :  { %6586 = vmatprep.subr.mxu0 %v6256_v46  ;;  %6652 = vmatpush1.msra.mxu1 %v6325_v13  ;;  %v6360_v46 = vld [vmem:[#allocation4 + $0x3b8] sm:$0xff]  ;;  %v6286_v13 = vld [vmem:[#allocation4 + $0x168] sm:$0xff] }
0x1578   :  { %6587 = vmatpush1.msra.mxu0 %v6255_v56  ;;  %6653 = vmatprep.subr.mxu1 %v6324_v29  ;;  %v6359_v56 = vld [vmem:[#allocation4 + $0x3b0] sm:$0xff]  ;;  %v6285_v29 = vld [vmem:[#allocation4 + $0x160] sm:$0xff] }
0x1579   :  { %6588 = vmatprep.subr.mxu0 %v6254_v19  ;;  %6654 = vmatpush1.msra.mxu1 %v6323_v17  ;;  %v6358_v19 = vld [vmem:[#allocation4 + $0x3a8] sm:$0xff]  ;;  %v6284_v17 = vld [vmem:[#allocation4 + $0x158] sm:$0xff] }
0x157a   :  { %6589 = vmatpush1.msra.mxu0 %v6253_v52  ;;  %6655 = vmatprep.subr.mxu1 %v6322_v58  ;;  %v6357_v52 = vld [vmem:[#allocation4 + $0x3a0] sm:$0xff]  ;;  %v6283_v58 = vld [vmem:[#allocation4 + $0x150] sm:$0xff] }
0x157b   :  { %6590 = vmatprep.subr.mxu0 %v6252_v32  ;;  %6656 = vmatpush1.msra.mxu1 %v6321_v8  ;;  %v6356_v32 = vld [vmem:[#allocation4 + $0x398] sm:$0xff]  ;;  %v6282_v8 = vld [vmem:[#allocation4 + $0x148] sm:$0xff] }
0x157c   :  { %6591 = vmatpush1.msra.mxu0 %v6251_v39  ;;  %6657 = vmatprep.subr.mxu1 %v6320_v40  ;;  %v6355_v39 = vld [vmem:[#allocation4 + $0x390] sm:$0xff]  ;;  %v6281_v40 = vld [vmem:[#allocation4 + $0x140] sm:$0xff] }
0x157d   :  { %6592 = vmatprep.subr.mxu0 %v6250_v34  ;;  %6658 = vmatpush1.msra.mxu1 %v6319_v10  ;;  %v6354_v34 = vld [vmem:[#allocation4 + $0x388] sm:$0xff]  ;;  %v6280_v10 = vld [vmem:[#allocation4 + $0x138] sm:$0xff] }
0x157e   :  { %6593 = vmatpush1.msra.mxu0 %v6249_v35  ;;  %6659 = vmatprep.subr.mxu1 %v6318_v3  ;;  %v6353_v35 = vld [vmem:[#allocation4 + $0x380] sm:$0xff]  ;;  %v6279_v3 = vld [vmem:[#allocation4 + $0x130] sm:$0xff] }
0x157f   :  { %6594 = vmatprep.subr.mxu0 %v6248_v28  ;;  %6660 = vmatpush1.msra.mxu1 %v6317_v57  ;;  %v6352_v28 = vld [vmem:[#allocation4 + $0x378] sm:$0xff]  ;;  %v6278_v57 = vld [vmem:[#allocation4 + $0x128] sm:$0xff] }
0x1580   :  { %6595 = vmatpush1.msra.mxu0 %v6247_v51  ;;  %6661 = vmatprep.subr.mxu1 %v6316_v55  ;;  %v6351_v51 = vld [vmem:[#allocation4 + $0x370] sm:$0xff]  ;;  %v6277_v55 = vld [vmem:[#allocation4 + $0x120] sm:$0xff] }
0x1581   :  { %6596 = vmatprep.subr.mxu0 %v6246_v22  ;;  %6662 = vmatpush1.msra.mxu1 %v6315_v14  ;;  %v6350_v22 = vld [vmem:[#allocation4 + $0x368] sm:$0xff]  ;;  %v6276_v14 = vld [vmem:[#allocation4 + $0x118] sm:$0xff] }
0x1582   :  { %6597 = vmatpush1.msra.mxu0 %v6245_v9  ;;  %6663 = vmatprep.subr.mxu1 %v6314_v63  ;;  %v6349_v9 = vld [vmem:[#allocation4 + $0x360] sm:$0xff]  ;;  %v6275_v63 = vld [vmem:[#allocation4 + $0x110] sm:$0xff] }
0x1583   :  { %6598 = vmatprep.subr.mxu0 %v6244_v26  ;;  %6664 = vmatpush1.msra.mxu1 %v6313_v23  ;;  %v6348_v26 = vld [vmem:[#allocation4 + $0x358] sm:$0xff]  ;;  %v6274_v23 = vld [vmem:[#allocation4 + $0x108] sm:$0xff] }
0x1584   :  { %6599 = vmatpush1.msra.mxu0 %v6243_v0  ;;  %6665 = vmatprep.subr.mxu1 %v6312_v15  ;;  %v6347_v0 = vld [vmem:[#allocation4 + $0x350] sm:$0xff]  ;;  %v6273_v15 = vld [vmem:[#allocation4 + $0x100] sm:$0xff] }
0x1585   :  { %6600 = vmatprep.subr.mxu0 %v6242_v11  ;;  %6666 = vmatpush1.msra.mxu1 %v6311_v48  ;;  %v6346_v11 = vld [vmem:[#allocation4 + $0x348] sm:$0xff]  ;;  %v6343_v48 = vld [vmem:[#allocation4 + $0x330] sm:$0xff] }
0x1586   :  { %6601 = vmatpush1.msra.mxu0 %v6241_v24  ;;  %6667 = vmatprep.subr.mxu1 %v6310_v50  ;;  %v6345_v24 = vld [vmem:[#allocation4 + $0x340] sm:$0xff] }
0x1587   :  { %6602 = vmatprep.subr.mxu0 %v6304_v42  ;;  %6668 = vmatpush1.msra.mxu1 %v6309_v37  ;;  %v6344_v42 = vld [vmem:[#allocation4 + $0x338] sm:$0xff]  ;;  %v6341_v50 = vld [vmem:[#allocation4 + $0x320] sm:$0xff]  ;;  %v6339_v37 = vld [vmem:[#allocation4 + $0x310] sm:$0xff] }
0x1588   :  { %6603 = vmatpush2.msra.mxu0 %v6303_v36  ;;  %6669 = vmatprep.subr.mxu1 %v6308_v53  ;;  %v6342_v36 = vld [vmem:[#allocation4 + $0x328] sm:$0xff]  ;;  %v6337_v53 = vld [vmem:[#allocation4 + $0x300] sm:$0xff] }
0x1589   :  { %6604 = vmatprep.subr.mxu0 %v6302_v49  ;;  %6670 = vmatpush1.msra.mxu1 %v6307_v2  ;;  %v6340_v49 = vld [vmem:[#allocation4 + $0x318] sm:$0xff] }
0x158a   :  { %6605 = vmatpush2.msra.mxu0 %v6301_v60  ;;  %6671 = vmatprep.subr.mxu1 %v6306_v6  ;;  %v6338_v60 = vld [vmem:[#allocation4 + $0x308] sm:$0xff] }
0x158b   :  { %6606 = vmatprep.subr.mxu0 %v6300_v27  ;;  %6672 = vmatpush1.msra.mxu1 %v6305_v38 }
0x158c   :  { %6607 = vmatpush2.msra.mxu0 %v6299_v18  ;;  %6673 = vmatprep.subr.mxu1 %v6368_v20 }
0x158d   :  { %6608 = vmatprep.subr.mxu0 %v6298_v33  ;;  %6674 = vmatpush2.msra.mxu1 %v6367_v1 }
0x158e   :  { %6609 = vmatpush2.msra.mxu0 %v6297_v41  ;;  %6675 = vmatprep.subr.mxu1 %v6366_v54 }
0x158f   :  { %6610 = vmatprep.subr.mxu0 %v6296_v59  ;;  %6676 = vmatpush2.msra.mxu1 %v6365_v5 }
0x1590   :  { %6611 = vmatpush2.msra.mxu0 %v6295_v30  ;;  %6677 = vmatprep.subr.mxu1 %v6364_v44 }
0x1591   :  { %6612 = vmatprep.subr.mxu0 %v6294_v47  ;;  %6678 = vmatpush2.msra.mxu1 %v6363_v43 }
0x1592   :  { %6613 = vmatpush2.msra.mxu0 %v6293_v45  ;;  %6679 = vmatprep.subr.mxu1 %v6362_v25 }
0x1593   :  { %6614 = vmatprep.subr.mxu0 %v6292_v62  ;;  %6680 = vmatpush2.msra.mxu1 %v6361_v31 }
0x1594   :  { %6615 = vmatpush2.msra.mxu0 %v6291_v7  ;;  %6681 = vmatprep.subr.mxu1 %v6360_v46 }
0x1595   :  { %6616 = vmatprep.subr.mxu0 %v6290_v4  ;;  %6682 = vmatpush2.msra.mxu1 %v6359_v56 }
0x1596   :  { %6617 = vmatpush2.msra.mxu0 %v6289_v61  ;;  %6683 = vmatprep.subr.mxu1 %v6358_v19 }
0x1597   :  { %6618 = vmatprep.subr.mxu0 %v6288_v21  ;;  %6684 = vmatpush2.msra.mxu1 %v6357_v52  ;;  %v7078_v21 = vld [vmem:[%s10637_s3 + $0x80] ss:$8 sm:$0xf]  ;;  %s8491_s3 = smov [#allocation7]  }
0x1598   :  { %6619 = vmatpush2.msra.mxu0 %v6287_v12  ;;  %6685 = vmatprep.subr.mxu1 %v6356_v32  ;;  %s6810_s18 = sshll.u32 %s8491_s3, 4  ;;  %s6811_s18 = int_to_ptr.vmem [resolvable:$true] %s6810_s18 }
0x1599   :  { %6620 = vmatprep.subr.mxu0 %v6286_v13  ;;  %6686 = vmatpush2.msra.mxu1 %v6355_v39  ;;  %s8435_s19 = scalar_lea.vmem %s6811_s18, 32  ;;  %p8440_p6 = scmp.lt.s32.totalorder %s6811_s18, %s6811_s18 }
0x159a   :  { %6621 = vmatpush2.msra.mxu0 %v6285_v29  ;;  %6687 = vmatprep.subr.mxu1 %v6354_v34  ;;  %p8436_p5 = scmp.ne.s32.totalorder %s6811_s18, %s8435_s19  ;;  %p8441_p7 = scmp.lt.s32.totalorder %s8435_s19, %s8435_s19 }
0x159b   :  { %6622 = vmatprep.subr.mxu0 %v6284_v17  ;;  %6688 = vmatpush2.msra.mxu1 %v6353_v35 }
0x159c   :  { %6623 = vmatpush2.msra.mxu0 %v6283_v58  ;;  %6689 = vmatprep.subr.mxu1 %v6352_v28  ;;  %p8442_p8 = por %p8441_p7, %p8440_p6 }
0x159d   :  { %6624 = vmatprep.subr.mxu0 %v6282_v8  ;;  %6690 = vmatpush2.msra.mxu1 %v6351_v51 }
0x159e   :  { %6625 = vmatpush2.msra.mxu0 %v6281_v40  ;;  %6691 = vmatprep.subr.mxu1 %v6350_v22  ;;  %p8443_p9 = pnand %p8442_p8, %p8436_p5 }
0x159f   :  { %6626 = vmatprep.subr.mxu0 %v6280_v10  ;;  %6692 = vmatpush2.msra.mxu1 %v6349_v9 }
0x15a0   :  { %6627 = vmatpush2.msra.mxu0 %v6279_v3  ;;  %6693 = vmatprep.subr.mxu1 %v6348_v26 }
0x15a1   :  { %6628 = vmatprep.subr.mxu0 %v6278_v57  ;;  %6694 = vmatpush2.msra.mxu1 %v6347_v0 }
0x15a2   :  { %6629 = vmatpush2.msra.mxu0 %v6277_v55  ;;  %6695 = vmatprep.subr.mxu1 %v6346_v11 }
0x15a3   :  { %6630 = vmatprep.subr.mxu0 %v6276_v14  ;;  %6696 = vmatpush2.msra.mxu1 %v6345_v24 }
0x15a4   :  { %6631 = vmatpush2.msra.mxu0 %v6275_v63  ;;  %6697 = vmatprep.subr.mxu1 %v6344_v42 }
0x15a5   :  { %6632 = vmatprep.subr.mxu0 %v6274_v23  ;;  %6698 = vmatpush2.msra.mxu1 %v6343_v48 }
0x15a6   :  { %6633 = vmatpush2.msra.mxu0 %v6273_v15  ;;  %6699 = vmatprep.subr.mxu1 %v6342_v36 }
0x15a7   :  { %6700 = vmatpush2.msra.mxu1 %v6341_v50 }
0x15a8   :  { %6701 = vmatprep.subr.mxu1 %v6340_v49 }
0x15a9   :  { %6702 = vmatpush2.msra.mxu1 %v6339_v37  ;;  %v6372_v37 = vld [vmem:[#allocation4 + $0x408] sm:$0x1e] }
0x15aa   :  { %6703 = vmatprep.subr.mxu1 %v6338_v60  ;;  %v6729_v60 = vrot.slane %v6372_v37, 1 }
0x15ab   :  { %6704 = vmatpush2.msra.mxu1 %v6337_v53  ;;  %v6371_v53 = vld [vmem:[#allocation4 + $0x400] sm:$0x1e] }
0x15ac   :  { %6762 = vmatprep.subr.mxu0 %v6729_v60 }
0x15ec   :  { %v8097_v27 = vpop.f32.mrf.mxu1 }
0x15ed   :  { %v6016_v2 = vadd.f32 %v8097_v27, %v10524_v16  ;;  %v6728_v27 = vrot.slane %v6371_v53, 1 }
0x15ee   :  { %v6010_v18 = vpop.f32.mrf.mxu1 }
0x15ef   :  { %v6030_v6 = vmul.f32 0.044715, %v6016_v2  ;;  %v6011_v33 = vadd.f32 %v10524_v16, %v6010_v18  ;;  %v6024_v25 = vmul.f32 0.5, %v6016_v2  ;;  %v6374_v16 = vlaneseq }
0x15f1   :  { %v6036_v38 = vmul.f32 %v6030_v6, %v6016_v2  ;;  %v6029_v41 = vmul.f32 0.044715, %v6011_v33  ;;  %v6023_v43 = vmul.f32 0.5, %v6011_v33  ;;  %v6375_v61 = vshrl.u32 %v6374_v16, 7 }
0x15f2   :  { %v6370_v6 = vld [vmem:[#allocation4 + $0x400] ss:$8 sm:$0x3] }
0x15f3   :  { %v6042_v20 = vmul.f32 %v6036_v38, %v6016_v2  ;;  %v6035_v59 = vmul.f32 %v6029_v41, %v6011_v33  ;;  %v6376_v46 = vsub.s32 0, %v6375_v61  ;;  %v6380_v56 = vsub.s32 1, %v6375_v61 }
0x15f4   :  { %v6384_v29 = vsub.s32 2, %v6375_v61  ;;  %v6388_v58 = vsub.s32 3, %v6375_v61 }
0x15f5   :  { %v6048_v1 = vadd.f32 %v6042_v20, %v6016_v2  ;;  %v6041_v30 = vmul.f32 %v6035_v59, %v6011_v33  ;;  %v6377_v12 = vrot.slane %v7078_v21, %v6376_v46  ;;  %v6381_v19 = vrot.slane %v7078_v21, %v6380_v56 }
0x15f6   :  { %v6385_v8 = vrot.slane %v7078_v21, %v6384_v29  ;;  %v6389_v35 = vrot.slane %v7078_v21, %v6388_v58  ;;  %v6563_v38 = vrot.slane %v6370_v6, %v6376_v46  ;;  %v6567_v41 = vrot.slane %v6370_v6, %v6380_v56 }
0x15f7   :  { %v6054_v54 = vmul.f32 0.7978846, %v6048_v1  ;;  %v6047_v47 = vadd.f32 %v6041_v30, %v6011_v33 }
0x15f9   :  { %8397 = vtanh.f32 %v6054_v54  ;;  %v6053_v5 = vmul.f32 0.7978846, %v6047_v47 }
0x15fb   :  { %8399 = vtanh.f32 %v6053_v5 }
0x1606   :  { %v8398_v45 = vpop.eup %8397 }
0x1607   :  { %v6066_v62 = vadd.f32 1.0, %v8398_v45 }
0x1608   :  { %v8400_v44 = vpop.eup %8399 }
0x1609   :  { %v6065_v7 = vadd.f32 1.0, %v8400_v44  ;;  %v6072_v31 = vmul.f32 %v6066_v62, %v6024_v25 }
0x160b   :  { %v6071_v4 = vmul.f32 %v6065_v7, %v6023_v43 }
0x160d   :  { %8120 = vmatprep.mubr.msk.f32.mxu0 %vm3064_vm8, %v6071_v4 }
0x160e   :  { %8121 = vmatmul.mubr.msk.f32.gmra.mxu0 %vm3064_vm8, %v6072_v31 }
0x1624   :  { %v6463_v13 = vpop.f32.mrf.mxu1 }
0x1625   :  { %v6464_v52 = vadd.f32 %v6463_v13, %v6377_v12 }
0x1626   :  { %v6465_v32 = vpop.f32.mrf.mxu1 }
0x1627   :  { %v6539_v17 = vmul.f32 0.5, %v6464_v52  ;;  %v6466_v39 = vadd.f32 %v6465_v32, %v6381_v19 }
0x1629   :  { %8401 = vtanh.f32 %v6539_v17  ;;  %v6540_v34 = vmul.f32 0.5, %v6466_v39 }
0x162b   :  { %8403 = vtanh.f32 %v6540_v34 }
0x162c   :  { %v6534_v40 = vpop.f32.mrf.mxu1 }
0x162d   :  { %v6535_v28 = vadd.f32 %v6534_v40, %v6385_v8 }
0x162e   :  { %v6536_v10 = vpop.f32.mrf.mxu1 }
0x162f   :  { %v6541_v51 = vmul.f32 0.5, %v6535_v28  ;;  %v6537_v3 = vadd.f32 %v6536_v10, %v6389_v35 }
0x1631   :  { %8405 = vtanh.f32 %v6541_v51  ;;  %v6542_v22 = vmul.f32 0.5, %v6537_v3 }
0x1633   :  { %8407 = vtanh.f32 %v6542_v22 }
0x1636   :  { %v8402_v57 = vpop.eup %8401 }
0x1637   :  { %v6547_v9 = vadd.f32 1.0, %v8402_v57 }
0x1638   :  { %v8404_v55 = vpop.eup %8403 }
0x1639   :  { %v6548_v26 = vadd.f32 1.0, %v8404_v55  ;;  %v6551_v14 = vmul.f32 0.5, %v6547_v9 }
0x163b   :  { %v6552_v0 = vmul.f32 0.5, %v6548_v26  ;;  %v6555_v23 = vmul.f32 %v6551_v14, %v6464_v52 }
0x163d   :  { %v6556_v63 = vmul.f32 %v6552_v0, %v6466_v39 }
0x163e   :  { %v8406_v11 = vpop.eup %8405 }
0x163f   :  { %v6549_v24 = vadd.f32 1.0, %v8406_v11  ;;  %6634 = vmatprep.mubr.f32.mxu0 %v6556_v63 }
0x1640   :  { %v8408_v15 = vpop.eup %8407  ;;  %6635 = vmatmul.mubr.f32.vlgmr.msra.gmra.mxu0 %v6555_v23 }
0x1641   :  { %v6550_v42 = vadd.f32 1.0, %v8408_v15  ;;  %v6553_v48 = vmul.f32 0.5, %v6549_v24  ;;  %6763 = vmatpush1.xpose.msra.mxu0 %v6728_v27 }
0x1643   :  { %v6554_v36 = vmul.f32 0.5, %v6550_v42  ;;  %v6557_v49 = vmul.f32 %v6553_v48, %v6535_v28 }
0x1645   :  { %v6558_v50 = vmul.f32 %v6554_v36, %v6537_v3 }
0x1647   :  { %6705 = vmatprep.mubr.f32.mxu1 %v6558_v50 }
0x1648   :  { %6706 = vmatmul.mubr.f32.vlgmr.msra.gmra.mxu1 %v6557_v49 }
0x16ce   :  { %v8122_v2 = vpop.f32.mrf.mxu0 }
0x16d0   :  { %v6175_v18 = vpop.f32.mrf.mxu0 }
0x1700   :  { %v6636_v33 = vpop.f32.mrf.mxu0 }
0x1701   :  { %v6637_v59 = vadd.f32 %v6636_v33, %v6563_v38 }
0x1702   :  { %v6638_v20 = vpop.f32.mrf.mxu0 }
0x1703   :  { %v6639_v30 = vadd.f32 %v6638_v20, %v6567_v41 }
0x1708   :  { %v6707_v1 = vpop.f32.mrf.mxu1 }
0x1709   :  { %v6708_v54 = vadd.f32 %v6707_v1, %v6637_v59 }
0x170a   :  { %v6709_v47 = vpop.f32.mrf.mxu1 }
0x170b   :  { %v6712_v5 = vmul.f32 0.5, %v6708_v54  ;;  %v6710_v45 = vadd.f32 %v6709_v47, %v6639_v30 }
0x170d   :  { %8409 = vtanh.f32 %v6712_v5  ;;  %v6713_v44 = vmul.f32 0.5, %v6710_v45 }
0x170f   :  { %8411 = vtanh.f32 %v6713_v44 }
0x171a   :  { %v8410_v62 = vpop.eup %8409 }
0x171b   :  { %v6716_v43 = vadd.f32 1.0, %v8410_v62 }
0x171c   :  { %v8412_v7 = vpop.eup %8411 }
0x171d   :  { %v6717_v25 = vadd.f32 1.0, %v8412_v7  ;;  %v6718_v4 = vmul.f32 0.5, %v6716_v43 }
0x171f   :  { %v6719_v31 = vmul.f32 0.5, %v6717_v25  ;;  %v6720_v61 = vmul.f32 %v6718_v4, %v6708_v54 }
0x1721   :  { %v6721_v16 = vmul.f32 %v6719_v31, %v6710_v45 }
0x1723   :  { %6796 = vmatprep.mubr.f32.mxu0 %v6721_v16 }
0x1724   :  { %6797 = vmatmul.mubr.f32.vlgmr.msra.gmra.mxu0 %v6720_v61 }
0x1725   :  { %8446 = shalt.err (!%p8443_p9)
}
0x1726   :  { %6813 = dma.vmem_to_hbm [thread:$0]  %s6811_s18, 32, %s10639_s5, [#allocation6]   ;;  %v7081_v46 = vld [vmem:[%s10635_s1 + $0x47] ss:$0 sm:$0xff]  ;;  %vm6802_vm11 = vcmask 25600  }
0x1727   :  { %s8492_s0 = smov [#allocation8]  }
0x1728   :  { %s6820_s26 = sshll.u32 %s8492_s0, 4  ;;  %s6821_s26 = int_to_ptr.vmem [resolvable:$true] %s6820_s26 }
0x1729   :  { %s8455_s27 = scalar_lea.vmem %s6821_s26, 32  ;;  %p8460_p11 = scmp.lt.s32.totalorder %s6821_s26, %s6821_s26 }
0x172a   :  { %p8456_p10 = scmp.ne.s32.totalorder %s6821_s26, %s8455_s27  ;;  %p8461_p12 = scmp.lt.s32.totalorder %s8455_s27, %s8455_s27 }
0x172c   :  { %p8462_p13 = por %p8461_p12, %p8460_p11 }
0x172e   :  { %p8463_p0 = pnand %p8462_p13, %p8456_p10 }
0x17e4   :  { %v6798_v21 = vpop.f32.mrf.mxu0 }
0x17e5   :  { %v6799_v56 = vadd.f32 %v7081_v46, %v6798_v21 }
0x17e6   :  { %v6800_v12 = vpop.f32.mrf.mxu0 }
0x17e7   :  { %6803 = vst.msk [vmem:[#allocation8] sm:$0x3] %vm6802_vm11, %v6799_v56 }
0x17e8   :  { %8466 = shalt.err (!%p8463_p0)
}
0x17e9   :  { %6823 = dma.vmem_to_hbm [thread:$0]  %s6821_s26, 32, %s10640_s6, [#allocation9]  }
0x17ea   :  { %8477 = dma.done.wait [#allocation6], 32  }
0x17eb   :  { %8478 = vsyncadd [#allocation6], 4294967264 }
0x17ec   :  { %8479 = dma.done.wait [#allocation9], 32  }
0x17ed   :  { %8480 = vsyncadd [#allocation9], 4294967264 }
0x17ee   :  { %6830 = vsyncpa [#allocation5], 1 }
0x17ef   :  { %6831 = vsyncpa [#allocation6], 1 }
0x17f0   :  { %6832 = vsyncpa [#allocation9], 1 }

</bundles_post_ra>
